<compile_context>
chip_gen: v7x
topology: tpu7x:2x2x1
jax: 0.10.0
libtpu: 0.0.40
codegen_flags: <defaults>
</compile_context>

<pallas_src>
import jax
import jax.numpy as jnp
from jax import lax  # noqa: F401  (kept for parity with typical Pallas kernels)
from jax.experimental import pallas as pl
from jax.experimental.pallas import tpu as pltpu

NP = 16      # node-count pad (sublane dim): all node counts <= 16 (multiple of 8)
FPAD = 16    # feature pad (lane dim): all feature dims (16 / 12 / 8 / 1) fit in 16

F = {'ind': 16, 'org': 12, 'ext': 8}         # num_features_ind / _org / _ext
NUM_FEATURES_TXN_EDGE = 4                    # unused in forward (see TODO above)
N = {'ind': 10, 'org': 6, 'ext': 5}          # node counts of the synthetic graph
E_PER_REL = 24                               # edges per relation

TYPES = ('ind', 'org', 'ext')
TYPE_IDX = {'ind': 0, 'org': 1, 'ext': 2}

REL_ALL = [
    ('ind', 'txn', 'ind'), ('org', 'txn', 'ind'), ('ext', 'txn', 'ind'),
    ('ind', 'txn', 'org'), ('org', 'txn', 'org'), ('ext', 'txn', 'org'),
    ('ind', 'txn', 'ext'), ('org', 'txn', 'ext'),
    ('ind', 'role', 'org'),
    ('ind', 'rev_txn', 'ind'), ('org', 'rev_txn', 'ind'), ('ext', 'rev_txn', 'ind'),
    ('ind', 'rev_txn', 'org'), ('org', 'rev_txn', 'org'), ('ext', 'rev_txn', 'org'),
    ('ind', 'rev_txn', 'ext'), ('org', 'rev_txn', 'ext'),
    ('org', 'rev_role', 'ind'),
]
REL_IDX = {r: i for i, r in enumerate(REL_ALL)}
REL_L4 = [r for r in REL_ALL if r[2] != 'ext']   # conv4 has no relations targeting 'ext'
NUM_REL = len(REL_ALL)
NUM_LAYERS = 4


def _layer_rels(layer):
    return REL_ALL if layer < 3 else REL_L4


def _layer_dst_types(layer):
    return TYPES if layer < 3 else TYPES[:2]


# ---------------- fused 4-layer Pallas kernel ----------------

def _sage4_fused_kernel(x_ref, a_ref, wl_ref, wr_ref, b_ref, out_ref):
    """Whole SAGEConv4Layer forward in one kernel invocation (no grid).

    x_ref:  [3, NP, FPAD]            node features per type (ind/org/ext), zero padded
    a_ref:  [NUM_REL, NP, NP]        dense mean-aggregation matrix per relation
    wl_ref: [4, NUM_REL, FPAD, FPAD] W_l^T per (layer, relation), densely padded to 16x16
    wr_ref: [4, 3, FPAD, FPAD]       sum over each dst group of W_r^T (pre-summed in wrapper)
    b_ref:  [4, 3, 1, FPAD]          sum over each dst group of lin_l biases
    out_ref:[2, NP, FPAD]            sigmoid(conv4 output) for dst groups ind / org
    """
    # Load all node-feature tiles once; everything below stays in vregs/VMEM.
    h = [x_ref[0], x_ref[1], x_ref[2]]                       # each [NP, FPAD] f32

    for l in range(NUM_LAYERS):                              # unrolled at trace time
        rels = _layer_rels(l)
        new_h = list(h)
        for g, dst in enumerate(_layer_dst_types(l)):
            # root term: x_dst @ (sum_r W_r^T) + sum_r b_r   (pure reassociation of
            # HeteroConv's aggr='sum'; pre-summed in the wrapper)
            acc = jnp.dot(h[TYPE_IDX[dst]], wr_ref[l, g],
                          preferred_element_type=jnp.float32) + b_ref[l, g]
            # per-relation: lin_l(mean-aggregated source features), accumulated in f32
            for r in rels:
                if r[2] != dst:
                    continue
                agg = jnp.dot(a_ref[REL_IDX[r]], h[TYPE_IDX[r[0]]],
                              preferred_element_type=jnp.float32)     # [NP, FPAD]
                acc = acc + jnp.dot(agg, wl_ref[l, REL_IDX[r]],
                                    preferred_element_type=jnp.float32)
            # sigmoid between layers (and after conv4 for ind/org), via EUP tanh.
            # No pad-masking needed: padded A columns / padded W rows+cols are zero,
            # so the pad region can never leak into the valid rows/columns.
            new_h[g] = 0.5 * (jnp.tanh(0.5 * acc) + 1.0)
        h = new_h

    out_ref[0] = h[0]                                        # ind
    out_ref[1] = h[1]                                        # org


@jax.jit
def sage4_forward(x_pack, a_pack, wl_pack, wr_pack, b_pack):
    n_rel_apps = sum(len(_layer_rels(l)) for l in range(NUM_LAYERS))        # 68
    n_groups = sum(len(_layer_dst_types(l)) for l in range(NUM_LAYERS))     # 11
    flops = (2 * n_rel_apps + n_groups) * 2 * NP * FPAD * FPAD
    bytes_accessed = 4 * (x_pack.size + a_pack.size + wl_pack.size
                          + wr_pack.size + b_pack.size + 2 * NP * FPAD)

    out = pl.pallas_call(
        _sage4_fused_kernel,
        out_shape=jax.ShapeDtypeStruct((2, NP, FPAD), jnp.float32),
        in_specs=[pl.BlockSpec(memory_space=pltpu.MemorySpace.VMEM)] * 5,
        out_specs=pl.BlockSpec(memory_space=pltpu.MemorySpace.VMEM),
        cost_estimate=pl.CostEstimate(flops=flops,
                                      transcendentals=n_groups * NP * FPAD,
                                      bytes_accessed=bytes_accessed),
    )(x_pack, a_pack, wl_pack, wr_pack, b_pack)

    return out[0, :N['ind'], 0], out[1, :N['org'], 0]


# ---------------- glue: padding, params, adjacency ----------------

def pad2(x, rows, cols):
    out = jnp.zeros((rows, cols), jnp.float32)
    return out.at[:x.shape[0], :x.shape[1]].set(x.astype(jnp.float32))


def init_rel_params(key, f_src, f_dst, f_out):
    """PyG SAGEConv((f_src, f_dst), f_out): lin_l (W_l + bias) on aggr, lin_r (W_r) on dst."""
    k1, k2, k3 = jax.random.split(key, 3)
    wl = jax.random.normal(k1, (f_out, f_src), jnp.float32) * 0.1
    wr = jax.random.normal(k2, (f_out, f_dst), jnp.float32) * 0.1
    b = jax.random.normal(k3, (f_out,), jnp.float32) * 0.1
    return wl, wr, b


def build_mean_adj(src_idx, dst_idx, n_src, n_dst):
    counts = jnp.zeros((n_dst, n_src), jnp.float32).at[dst_idx, src_idx].add(1.0)
    deg = counts.sum(axis=1, keepdims=True)
    return counts / jnp.maximum(deg, 1.0)          # unpadded [n_dst, n_src]


def pack_adj(a_raw):
    a = jnp.zeros((NUM_REL, NP, NP), jnp.float32)
    for r in REL_ALL:
        a = a.at[REL_IDX[r]].set(pad2(a_raw[r], NP, NP))
    return a                                        # [NUM_REL, NP, NP]


def pack_params(raw_params_layers):
    """Dense 16x16 packing of every per-relation weight, plus per-group pre-sums."""
    wl = jnp.zeros((NUM_LAYERS, NUM_REL, FPAD, FPAD), jnp.float32)
    wr = jnp.zeros((NUM_LAYERS, len(TYPES), FPAD, FPAD), jnp.float32)
    b = jnp.zeros((NUM_LAYERS, len(TYPES), 1, FPAD), jnp.float32)
    for l in range(NUM_LAYERS):
        params = raw_params_layers[l]
        for r, (wl_r, _, _) in params.items():
            wl = wl.at[l, REL_IDX[r]].set(pad2(wl_r.T, FPAD, FPAD))
        for g, dst in enumerate(_layer_dst_types(l)):
            rels = [r for r in _layer_rels(l) if r[2] == dst]
            wr_sum = sum(params[r][1].T for r in rels)        # pre-sum lin_r over group
            b_sum = sum(params[r][2] for r in rels)           # pre-sum biases over group
            wr = wr.at[l, g].set(pad2(wr_sum, FPAD, FPAD))
            b = b.at[l, g].set(pad2(b_sum[None, :], 1, FPAD))
    return wl, wr, b


def reference_forward(x_raw, a_raw, raw_params_layers):
    """Pure-JAX (unpadded) reference of the PyTorch forward, for a correctness check."""
    x = dict(x_raw)
    for li in range(NUM_LAYERS):
        rel_list = _layer_rels(li)
        out = {}
        for rel in rel_list:
            s, _, d = rel
            wl, wr, b = raw_params_layers[li][rel]
            y = (a_raw[rel] @ x[s]) @ wl.T + x[d] @ wr.T + b
            out[d] = out[d] + y if d in out else y
        x = {k: jax.nn.sigmoid(v) for k, v in out.items()}
    return x['ind'][:, 0], x['org'][:, 0]


# ---------------- main ----------------

if __name__ == "__main__":
    key = jax.random.PRNGKey(0)

    # node features x_dict, stacked/padded into one [3, NP, FPAD] tensor (ind=0, org=1, ext=2)
    key, k_ind, k_org, k_ext = jax.random.split(key, 4)
    x_raw = {
        'ind': jax.random.normal(k_ind, (N['ind'], F['ind']), jnp.float32),
        'org': jax.random.normal(k_org, (N['org'], F['org']), jnp.float32),
        'ext': jax.random.normal(k_ext, (N['ext'], F['ext']), jnp.float32),
    }
    x_pack = jnp.stack([pad2(x_raw[t], NP, FPAD) for t in TYPES])

    # synthetic edge_index_dict -> dense per-relation mean-aggregation matrices
    a_raw = {}
    for rel in REL_ALL:
        key, ks, kd = jax.random.split(key, 3)
        src_idx = jax.random.randint(ks, (E_PER_REL,), 0, N[rel[0]])
        dst_idx = jax.random.randint(kd, (E_PER_REL,), 0, N[rel[2]])
        a_raw[rel] = build_mean_adj(src_idx, dst_idx, N[rel[0]], N[rel[2]])
    a_pack = pack_adj(a_raw)

    # parameters for the 4 HeteroConv layers (raw for reference, densely packed for kernel)
    raw_params_layers = []
    for li in range(NUM_LAYERS):
        rel_params = {}
        for rel in _layer_rels(li):
            key, kp = jax.random.split(key)
            f_out = F[rel[2]] if li < 3 else 1
            rel_params[rel] = init_rel_params(kp, F[rel[0]], F[rel[2]], f_out)
        raw_params_layers.append(rel_params)
    wl_pack, wr_pack, b_pack = pack_params(raw_params_layers)

    out_ind, out_org = sage4_forward(x_pack, a_pack, wl_pack, wr_pack, b_pack)
    jax.block_until_ready((out_ind, out_org))
    assert out_ind.shape == (N['ind'],) and out_org.shape == (N['org'],)

    # correctness check against the unpadded pure-JAX reference
    ref_ind, ref_org = reference_forward(x_raw, a_raw, raw_params_layers)
    err_ind = float(jnp.max(jnp.abs(out_ind - ref_ind)))
    err_org = float(jnp.max(jnp.abs(out_org - ref_org)))
    assert err_ind < 5e-3 and err_org < 5e-3, (err_ind, err_org)

    print("KERNEL_OK")
</pallas_src>

<mosaic_0001>
module attributes {stable_mosaic.version = 11 : i64} {
  func.func @_sage4_fused_kernel(%arg0: memref<3x16x16xf32, #tpu.memory_space<vmem>>, %arg1: memref<18x16x16xf32, #tpu.memory_space<vmem>>, %arg2: memref<4x18x16x16xf32, #tpu.memory_space<vmem>>, %arg3: memref<4x3x16x16xf32, #tpu.memory_space<vmem>>, %arg4: memref<4x3x1x16xf32, #tpu.memory_space<vmem>>, %arg5: memref<2x16x16xf32, #tpu.memory_space<vmem>>) attributes {dimension_semantics = [], scalar_prefetch = 0 : i64, scratch_operands = 0 : i64, tpu.core_type = #tpu.core_type<tc>} {
    %c0 = arith.constant 0 : index
    %c0_0 = arith.constant 0 : index
    %c0_1 = arith.constant 0 : index
    %0 = vector.load %arg0[%c0, %c0_0, %c0_1] : memref<3x16x16xf32, #tpu.memory_space<vmem>>, vector<1x16x16xf32>
    %1 = vector.shape_cast %0 : vector<1x16x16xf32> to vector<16x16xf32>
    %c1 = arith.constant 1 : index
    %c0_2 = arith.constant 0 : index
    %c0_3 = arith.constant 0 : index
    %2 = vector.load %arg0[%c1, %c0_2, %c0_3] : memref<3x16x16xf32, #tpu.memory_space<vmem>>, vector<1x16x16xf32>
    %3 = vector.shape_cast %2 : vector<1x16x16xf32> to vector<16x16xf32>
    %c2 = arith.constant 2 : index
    %c0_4 = arith.constant 0 : index
    %c0_5 = arith.constant 0 : index
    %4 = vector.load %arg0[%c2, %c0_4, %c0_5] : memref<3x16x16xf32, #tpu.memory_space<vmem>>, vector<1x16x16xf32>
    %5 = vector.shape_cast %4 : vector<1x16x16xf32> to vector<16x16xf32>
    %c0_6 = arith.constant 0 : index
    %c0_7 = arith.constant 0 : index
    %c0_8 = arith.constant 0 : index
    %c0_9 = arith.constant 0 : index
    %6 = vector.load %arg3[%c0_6, %c0_7, %c0_8, %c0_9] : memref<4x3x16x16xf32, #tpu.memory_space<vmem>>, vector<1x1x16x16xf32>
    %7 = vector.shape_cast %6 : vector<1x1x16x16xf32> to vector<16x16xf32>
    %cst = arith.constant dense<0.000000e+00> : vector<16x16xf32>
    %8 = tpu.matmul %1, %7, %cst {dimension_numbers = #tpu.dot_dimension_numbers<[1], [0], [0], [1], [0, 0, 1, 1], [], []>} : vector<16x16xf32>, vector<16x16xf32>, vector<16x16xf32> -> vector<16x16xf32>
    %c0_10 = arith.constant 0 : index
    %c0_11 = arith.constant 0 : index
    %c0_12 = arith.constant 0 : index
    %c0_13 = arith.constant 0 : index
    %9 = vector.load %arg4[%c0_10, %c0_11, %c0_12, %c0_13] : memref<4x3x1x16xf32, #tpu.memory_space<vmem>>, vector<1x1x1x16xf32>
    %10 = vector.shape_cast %9 : vector<1x1x1x16xf32> to vector<1x16xf32>
    %11 = vector.broadcast %10 : vector<1x16xf32> to vector<16x16xf32>
    %12 = arith.addf %8, %11 : vector<16x16xf32>
    %c0_14 = arith.constant 0 : index
    %c0_15 = arith.constant 0 : index
    %c0_16 = arith.constant 0 : index
    %13 = vector.load %arg1[%c0_14, %c0_15, %c0_16] : memref<18x16x16xf32, #tpu.memory_space<vmem>>, vector<1x16x16xf32>
    %14 = vector.shape_cast %13 : vector<1x16x16xf32> to vector<16x16xf32>
    %cst_17 = arith.constant dense<0.000000e+00> : vector<16x16xf32>
    %15 = tpu.matmul %14, %1, %cst_17 {dimension_numbers = #tpu.dot_dimension_numbers<[1], [0], [0], [1], [0, 0, 1, 1], [], []>} : vector<16x16xf32>, vector<16x16xf32>, vector<16x16xf32> -> vector<16x16xf32>
    %c0_18 = arith.constant 0 : index
    %c0_19 = arith.constant 0 : index
    %c0_20 = arith.constant 0 : index
    %c0_21 = arith.constant 0 : index
    %16 = vector.load %arg2[%c0_18, %c0_19, %c0_20, %c0_21] : memref<4x18x16x16xf32, #tpu.memory_space<vmem>>, vector<1x1x16x16xf32>
    %17 = vector.shape_cast %16 : vector<1x1x16x16xf32> to vector<16x16xf32>
    %cst_22 = arith.constant dense<0.000000e+00> : vector<16x16xf32>
    %18 = tpu.matmul %15, %17, %cst_22 {dimension_numbers = #tpu.dot_dimension_numbers<[1], [0], [0], [1], [0, 0, 1, 1], [], []>} : vector<16x16xf32>, vector<16x16xf32>, vector<16x16xf32> -> vector<16x16xf32>
    %19 = arith.addf %12, %18 : vector<16x16xf32>
    %c1_23 = arith.constant 1 : index
    %c0_24 = arith.constant 0 : index
    %c0_25 = arith.constant 0 : index
    %20 = vector.load %arg1[%c1_23, %c0_24, %c0_25] : memref<18x16x16xf32, #tpu.memory_space<vmem>>, vector<1x16x16xf32>
    %21 = vector.shape_cast %20 : vector<1x16x16xf32> to vector<16x16xf32>
    %cst_26 = arith.constant dense<0.000000e+00> : vector<16x16xf32>
    %22 = tpu.matmul %21, %3, %cst_26 {dimension_numbers = #tpu.dot_dimension_numbers<[1], [0], [0], [1], [0, 0, 1, 1], [], []>} : vector<16x16xf32>, vector<16x16xf32>, vector<16x16xf32> -> vector<16x16xf32>
    %c0_27 = arith.constant 0 : index
    %c1_28 = arith.constant 1 : index
    %c0_29 = arith.constant 0 : index
    %c0_30 = arith.constant 0 : index
    %23 = vector.load %arg2[%c0_27, %c1_28, %c0_29, %c0_30] : memref<4x18x16x16xf32, #tpu.memory_space<vmem>>, vector<1x1x16x16xf32>
    %24 = vector.shape_cast %23 : vector<1x1x16x16xf32> to vector<16x16xf32>
    %cst_31 = arith.constant dense<0.000000e+00> : vector<16x16xf32>
    %25 = tpu.matmul %22, %24, %cst_31 {dimension_numbers = #tpu.dot_dimension_numbers<[1], [0], [0], [1], [0, 0, 1, 1], [], []>} : vector<16x16xf32>, vector<16x16xf32>, vector<16x16xf32> -> vector<16x16xf32>
    %26 = arith.addf %19, %25 : vector<16x16xf32>
    %c2_32 = arith.constant 2 : index
    %c0_33 = arith.constant 0 : index
    %c0_34 = arith.constant 0 : index
    %27 = vector.load %arg1[%c2_32, %c0_33, %c0_34] : memref<18x16x16xf32, #tpu.memory_space<vmem>>, vector<1x16x16xf32>
    %28 = vector.shape_cast %27 : vector<1x16x16xf32> to vector<16x16xf32>
    %cst_35 = arith.constant dense<0.000000e+00> : vector<16x16xf32>
    %29 = tpu.matmul %28, %5, %cst_35 {dimension_numbers = #tpu.dot_dimension_numbers<[1], [0], [0], [1], [0, 0, 1, 1], [], []>} : vector<16x16xf32>, vector<16x16xf32>, vector<16x16xf32> -> vector<16x16xf32>
    %c0_36 = arith.constant 0 : index
    %c2_37 = arith.constant 2 : index
    %c0_38 = arith.constant 0 : index
    %c0_39 = arith.constant 0 : index
    %30 = vector.load %arg2[%c0_36, %c2_37, %c0_38, %c0_39] : memref<4x18x16x16xf32, #tpu.memory_space<vmem>>, vector<1x1x16x16xf32>
    %31 = vector.shape_cast %30 : vector<1x1x16x16xf32> to vector<16x16xf32>
    %cst_40 = arith.constant dense<0.000000e+00> : vector<16x16xf32>
    %32 = tpu.matmul %29, %31, %cst_40 {dimension_numbers = #tpu.dot_dimension_numbers<[1], [0], [0], [1], [0, 0, 1, 1], [], []>} : vector<16x16xf32>, vector<16x16xf32>, vector<16x16xf32> -> vector<16x16xf32>
    %33 = arith.addf %26, %32 : vector<16x16xf32>
    %c9 = arith.constant 9 : index
    %c0_41 = arith.constant 0 : index
    %c0_42 = arith.constant 0 : index
    %34 = vector.load %arg1[%c9, %c0_41, %c0_42] : memref<18x16x16xf32, #tpu.memory_space<vmem>>, vector<1x16x16xf32>
    %35 = vector.shape_cast %34 : vector<1x16x16xf32> to vector<16x16xf32>
    %cst_43 = arith.constant dense<0.000000e+00> : vector<16x16xf32>
    %36 = tpu.matmul %35, %1, %cst_43 {dimension_numbers = #tpu.dot_dimension_numbers<[1], [0], [0], [1], [0, 0, 1, 1], [], []>} : vector<16x16xf32>, vector<16x16xf32>, vector<16x16xf32> -> vector<16x16xf32>
    %c0_44 = arith.constant 0 : index
    %c9_45 = arith.constant 9 : index
    %c0_46 = arith.constant 0 : index
    %c0_47 = arith.constant 0 : index
    %37 = vector.load %arg2[%c0_44, %c9_45, %c0_46, %c0_47] : memref<4x18x16x16xf32, #tpu.memory_space<vmem>>, vector<1x1x16x16xf32>
    %38 = vector.shape_cast %37 : vector<1x1x16x16xf32> to vector<16x16xf32>
    %cst_48 = arith.constant dense<0.000000e+00> : vector<16x16xf32>
    %39 = tpu.matmul %36, %38, %cst_48 {dimension_numbers = #tpu.dot_dimension_numbers<[1], [0], [0], [1], [0, 0, 1, 1], [], []>} : vector<16x16xf32>, vector<16x16xf32>, vector<16x16xf32> -> vector<16x16xf32>
    %40 = arith.addf %33, %39 : vector<16x16xf32>
    %c10 = arith.constant 10 : index
    %c0_49 = arith.constant 0 : index
    %c0_50 = arith.constant 0 : index
    %41 = vector.load %arg1[%c10, %c0_49, %c0_50] : memref<18x16x16xf32, #tpu.memory_space<vmem>>, vector<1x16x16xf32>
    %42 = vector.shape_cast %41 : vector<1x16x16xf32> to vector<16x16xf32>
    %cst_51 = arith.constant dense<0.000000e+00> : vector<16x16xf32>
    %43 = tpu.matmul %42, %3, %cst_51 {dimension_numbers = #tpu.dot_dimension_numbers<[1], [0], [0], [1], [0, 0, 1, 1], [], []>} : vector<16x16xf32>, vector<16x16xf32>, vector<16x16xf32> -> vector<16x16xf32>
    %c0_52 = arith.constant 0 : index
    %c10_53 = arith.constant 10 : index
    %c0_54 = arith.constant 0 : index
    %c0_55 = arith.constant 0 : index
    %44 = vector.load %arg2[%c0_52, %c10_53, %c0_54, %c0_55] : memref<4x18x16x16xf32, #tpu.memory_space<vmem>>, vector<1x1x16x16xf32>
    %45 = vector.shape_cast %44 : vector<1x1x16x16xf32> to vector<16x16xf32>
    %cst_56 = arith.constant dense<0.000000e+00> : vector<16x16xf32>
    %46 = tpu.matmul %43, %45, %cst_56 {dimension_numbers = #tpu.dot_dimension_numbers<[1], [0], [0], [1], [0, 0, 1, 1], [], []>} : vector<16x16xf32>, vector<16x16xf32>, vector<16x16xf32> -> vector<16x16xf32>
    %47 = arith.addf %40, %46 : vector<16x16xf32>
    %c11 = arith.constant 11 : index
    %c0_57 = arith.constant 0 : index
    %c0_58 = arith.constant 0 : index
    %48 = vector.load %arg1[%c11, %c0_57, %c0_58] : memref<18x16x16xf32, #tpu.memory_space<vmem>>, vector<1x16x16xf32>
    %49 = vector.shape_cast %48 : vector<1x16x16xf32> to vector<16x16xf32>
    %cst_59 = arith.constant dense<0.000000e+00> : vector<16x16xf32>
    %50 = tpu.matmul %49, %5, %cst_59 {dimension_numbers = #tpu.dot_dimension_numbers<[1], [0], [0], [1], [0, 0, 1, 1], [], []>} : vector<16x16xf32>, vector<16x16xf32>, vector<16x16xf32> -> vector<16x16xf32>
    %c0_60 = arith.constant 0 : index
    %c11_61 = arith.constant 11 : index
    %c0_62 = arith.constant 0 : index
    %c0_63 = arith.constant 0 : index
    %51 = vector.load %arg2[%c0_60, %c11_61, %c0_62, %c0_63] : memref<4x18x16x16xf32, #tpu.memory_space<vmem>>, vector<1x1x16x16xf32>
    %52 = vector.shape_cast %51 : vector<1x1x16x16xf32> to vector<16x16xf32>
    %cst_64 = arith.constant dense<0.000000e+00> : vector<16x16xf32>
    %53 = tpu.matmul %50, %52, %cst_64 {dimension_numbers = #tpu.dot_dimension_numbers<[1], [0], [0], [1], [0, 0, 1, 1], [], []>} : vector<16x16xf32>, vector<16x16xf32>, vector<16x16xf32> -> vector<16x16xf32>
    %54 = arith.addf %47, %53 : vector<16x16xf32>
    %c17 = arith.constant 17 : index
    %c0_65 = arith.constant 0 : index
    %c0_66 = arith.constant 0 : index
    %55 = vector.load %arg1[%c17, %c0_65, %c0_66] : memref<18x16x16xf32, #tpu.memory_space<vmem>>, vector<1x16x16xf32>
    %56 = vector.shape_cast %55 : vector<1x16x16xf32> to vector<16x16xf32>
    %cst_67 = arith.constant dense<0.000000e+00> : vector<16x16xf32>
    %57 = tpu.matmul %56, %3, %cst_67 {dimension_numbers = #tpu.dot_dimension_numbers<[1], [0], [0], [1], [0, 0, 1, 1], [], []>} : vector<16x16xf32>, vector<16x16xf32>, vector<16x16xf32> -> vector<16x16xf32>
    %c0_68 = arith.constant 0 : index
    %c17_69 = arith.constant 17 : index
    %c0_70 = arith.constant 0 : index
    %c0_71 = arith.constant 0 : index
    %58 = vector.load %arg2[%c0_68, %c17_69, %c0_70, %c0_71] : memref<4x18x16x16xf32, #tpu.memory_space<vmem>>, vector<1x1x16x16xf32>
    %59 = vector.shape_cast %58 : vector<1x1x16x16xf32> to vector<16x16xf32>
    %cst_72 = arith.constant dense<0.000000e+00> : vector<16x16xf32>
    %60 = tpu.matmul %57, %59, %cst_72 {dimension_numbers = #tpu.dot_dimension_numbers<[1], [0], [0], [1], [0, 0, 1, 1], [], []>} : vector<16x16xf32>, vector<16x16xf32>, vector<16x16xf32> -> vector<16x16xf32>
    %61 = arith.addf %54, %60 : vector<16x16xf32>
    %cst_73 = arith.constant 5.000000e-01 : f32
    %62 = vector.broadcast %cst_73 : f32 to vector<16x16xf32>
    %63 = arith.mulf %62, %61 : vector<16x16xf32>
    %64 = math.tanh %63 : vector<16x16xf32>
    %cst_74 = arith.constant 1.000000e+00 : f32
    %65 = vector.broadcast %cst_74 : f32 to vector<16x16xf32>
    %66 = arith.addf %64, %65 : vector<16x16xf32>
    %cst_75 = arith.constant 5.000000e-01 : f32
    %67 = vector.broadcast %cst_75 : f32 to vector<16x16xf32>
    %68 = arith.mulf %67, %66 : vector<16x16xf32>
    %c0_76 = arith.constant 0 : index
    %c1_77 = arith.constant 1 : index
    %c0_78 = arith.constant 0 : index
    %c0_79 = arith.constant 0 : index
    %69 = vector.load %arg3[%c0_76, %c1_77, %c0_78, %c0_79] : memref<4x3x16x16xf32, #tpu.memory_space<vmem>>, vector<1x1x16x16xf32>
    %70 = vector.shape_cast %69 : vector<1x1x16x16xf32> to vector<16x16xf32>
    %cst_80 = arith.constant dense<0.000000e+00> : vector<16x16xf32>
    %71 = tpu.matmul %3, %70, %cst_80 {dimension_numbers = #tpu.dot_dimension_numbers<[1], [0], [0], [1], [0, 0, 1, 1], [], []>} : vector<16x16xf32>, vector<16x16xf32>, vector<16x16xf32> -> vector<16x16xf32>
    %c0_81 = arith.constant 0 : index
    %c1_82 = arith.constant 1 : index
    %c0_83 = arith.constant 0 : index
    %c0_84 = arith.constant 0 : index
    %72 = vector.load %arg4[%c0_81, %c1_82, %c0_83, %c0_84] : memref<4x3x1x16xf32, #tpu.memory_space<vmem>>, vector<1x1x1x16xf32>
    %73 = vector.shape_cast %72 : vector<1x1x1x16xf32> to vector<1x16xf32>
    %74 = vector.broadcast %73 : vector<1x16xf32> to vector<16x16xf32>
    %75 = arith.addf %71, %74 : vector<16x16xf32>
    %c3 = arith.constant 3 : index
    %c0_85 = arith.constant 0 : index
    %c0_86 = arith.constant 0 : index
    %76 = vector.load %arg1[%c3, %c0_85, %c0_86] : memref<18x16x16xf32, #tpu.memory_space<vmem>>, vector<1x16x16xf32>
    %77 = vector.shape_cast %76 : vector<1x16x16xf32> to vector<16x16xf32>
    %cst_87 = arith.constant dense<0.000000e+00> : vector<16x16xf32>
    %78 = tpu.matmul %77, %1, %cst_87 {dimension_numbers = #tpu.dot_dimension_numbers<[1], [0], [0], [1], [0, 0, 1, 1], [], []>} : vector<16x16xf32>, vector<16x16xf32>, vector<16x16xf32> -> vector<16x16xf32>
    %c0_88 = arith.constant 0 : index
    %c3_89 = arith.constant 3 : index
    %c0_90 = arith.constant 0 : index
    %c0_91 = arith.constant 0 : index
    %79 = vector.load %arg2[%c0_88, %c3_89, %c0_90, %c0_91] : memref<4x18x16x16xf32, #tpu.memory_space<vmem>>, vector<1x1x16x16xf32>
    %80 = vector.shape_cast %79 : vector<1x1x16x16xf32> to vector<16x16xf32>
    %cst_92 = arith.constant dense<0.000000e+00> : vector<16x16xf32>
    %81 = tpu.matmul %78, %80, %cst_92 {dimension_numbers = #tpu.dot_dimension_numbers<[1], [0], [0], [1], [0, 0, 1, 1], [], []>} : vector<16x16xf32>, vector<16x16xf32>, vector<16x16xf32> -> vector<16x16xf32>
    %82 = arith.addf %75, %81 : vector<16x16xf32>
    %c4 = arith.constant 4 : index
    %c0_93 = arith.constant 0 : index
    %c0_94 = arith.constant 0 : index
    %83 = vector.load %arg1[%c4, %c0_93, %c0_94] : memref<18x16x16xf32, #tpu.memory_space<vmem>>, vector<1x16x16xf32>
    %84 = vector.shape_cast %83 : vector<1x16x16xf32> to vector<16x16xf32>
    %cst_95 = arith.constant dense<0.000000e+00> : vector<16x16xf32>
    %85 = tpu.matmul %84, %3, %cst_95 {dimension_numbers = #tpu.dot_dimension_numbers<[1], [0], [0], [1], [0, 0, 1, 1], [], []>} : vector<16x16xf32>, vector<16x16xf32>, vector<16x16xf32> -> vector<16x16xf32>
    %c0_96 = arith.constant 0 : index
    %c4_97 = arith.constant 4 : index
    %c0_98 = arith.constant 0 : index
    %c0_99 = arith.constant 0 : index
    %86 = vector.load %arg2[%c0_96, %c4_97, %c0_98, %c0_99] : memref<4x18x16x16xf32, #tpu.memory_space<vmem>>, vector<1x1x16x16xf32>
    %87 = vector.shape_cast %86 : vector<1x1x16x16xf32> to vector<16x16xf32>
    %cst_100 = arith.constant dense<0.000000e+00> : vector<16x16xf32>
    %88 = tpu.matmul %85, %87, %cst_100 {dimension_numbers = #tpu.dot_dimension_numbers<[1], [0], [0], [1], [0, 0, 1, 1], [], []>} : vector<16x16xf32>, vector<16x16xf32>, vector<16x16xf32> -> vector<16x16xf32>
    %89 = arith.addf %82, %88 : vector<16x16xf32>
    %c5 = arith.constant 5 : index
    %c0_101 = arith.constant 0 : index
    %c0_102 = arith.constant 0 : index
    %90 = vector.load %arg1[%c5, %c0_101, %c0_102] : memref<18x16x16xf32, #tpu.memory_space<vmem>>, vector<1x16x16xf32>
    %91 = vector.shape_cast %90 : vector<1x16x16xf32> to vector<16x16xf32>
    %cst_103 = arith.constant dense<0.000000e+00> : vector<16x16xf32>
    %92 = tpu.matmul %91, %5, %cst_103 {dimension_numbers = #tpu.dot_dimension_numbers<[1], [0], [0], [1], [0, 0, 1, 1], [], []>} : vector<16x16xf32>, vector<16x16xf32>, vector<16x16xf32> -> vector<16x16xf32>
    %c0_104 = arith.constant 0 : index
    %c5_105 = arith.constant 5 : index
    %c0_106 = arith.constant 0 : index
    %c0_107 = arith.constant 0 : index
    %93 = vector.load %arg2[%c0_104, %c5_105, %c0_106, %c0_107] : memref<4x18x16x16xf32, #tpu.memory_space<vmem>>, vector<1x1x16x16xf32>
    %94 = vector.shape_cast %93 : vector<1x1x16x16xf32> to vector<16x16xf32>
    %cst_108 = arith.constant dense<0.000000e+00> : vector<16x16xf32>
    %95 = tpu.matmul %92, %94, %cst_108 {dimension_numbers = #tpu.dot_dimension_numbers<[1], [0], [0], [1], [0, 0, 1, 1], [], []>} : vector<16x16xf32>, vector<16x16xf32>, vector<16x16xf32> -> vector<16x16xf32>
    %96 = arith.addf %89, %95 : vector<16x16xf32>
    %c8 = arith.constant 8 : index
    %c0_109 = arith.constant 0 : index
    %c0_110 = arith.constant 0 : index
    %97 = vector.load %arg1[%c8, %c0_109, %c0_110] : memref<18x16x16xf32, #tpu.memory_space<vmem>>, vector<1x16x16xf32>
    %98 = vector.shape_cast %97 : vector<1x16x16xf32> to vector<16x16xf32>
    %cst_111 = arith.constant dense<0.000000e+00> : vector<16x16xf32>
    %99 = tpu.matmul %98, %1, %cst_111 {dimension_numbers = #tpu.dot_dimension_numbers<[1], [0], [0], [1], [0, 0, 1, 1], [], []>} : vector<16x16xf32>, vector<16x16xf32>, vector<16x16xf32> -> vector<16x16xf32>
    %c0_112 = arith.constant 0 : index
    %c8_113 = arith.constant 8 : index
    %c0_114 = arith.constant 0 : index
    %c0_115 = arith.constant 0 : index
    %100 = vector.load %arg2[%c0_112, %c8_113, %c0_114, %c0_115] : memref<4x18x16x16xf32, #tpu.memory_space<vmem>>, vector<1x1x16x16xf32>
    %101 = vector.shape_cast %100 : vector<1x1x16x16xf32> to vector<16x16xf32>
    %cst_116 = arith.constant dense<0.000000e+00> : vector<16x16xf32>
    %102 = tpu.matmul %99, %101, %cst_116 {dimension_numbers = #tpu.dot_dimension_numbers<[1], [0], [0], [1], [0, 0, 1, 1], [], []>} : vector<16x16xf32>, vector<16x16xf32>, vector<16x16xf32> -> vector<16x16xf32>
    %103 = arith.addf %96, %102 : vector<16x16xf32>
    %c12 = arith.constant 12 : index
    %c0_117 = arith.constant 0 : index
    %c0_118 = arith.constant 0 : index
    %104 = vector.load %arg1[%c12, %c0_117, %c0_118] : memref<18x16x16xf32, #tpu.memory_space<vmem>>, vector<1x16x16xf32>
    %105 = vector.shape_cast %104 : vector<1x16x16xf32> to vector<16x16xf32>
    %cst_119 = arith.constant dense<0.000000e+00> : vector<16x16xf32>
    %106 = tpu.matmul %105, %1, %cst_119 {dimension_numbers = #tpu.dot_dimension_numbers<[1], [0], [0], [1], [0, 0, 1, 1], [], []>} : vector<16x16xf32>, vector<16x16xf32>, vector<16x16xf32> -> vector<16x16xf32>
    %c0_120 = arith.constant 0 : index
    %c12_121 = arith.constant 12 : index
    %c0_122 = arith.constant 0 : index
    %c0_123 = arith.constant 0 : index
    %107 = vector.load %arg2[%c0_120, %c12_121, %c0_122, %c0_123] : memref<4x18x16x16xf32, #tpu.memory_space<vmem>>, vector<1x1x16x16xf32>
    %108 = vector.shape_cast %107 : vector<1x1x16x16xf32> to vector<16x16xf32>
    %cst_124 = arith.constant dense<0.000000e+00> : vector<16x16xf32>
    %109 = tpu.matmul %106, %108, %cst_124 {dimension_numbers = #tpu.dot_dimension_numbers<[1], [0], [0], [1], [0, 0, 1, 1], [], []>} : vector<16x16xf32>, vector<16x16xf32>, vector<16x16xf32> -> vector<16x16xf32>
    %110 = arith.addf %103, %109 : vector<16x16xf32>
    %c13 = arith.constant 13 : index
    %c0_125 = arith.constant 0 : index
    %c0_126 = arith.constant 0 : index
    %111 = vector.load %arg1[%c13, %c0_125, %c0_126] : memref<18x16x16xf32, #tpu.memory_space<vmem>>, vector<1x16x16xf32>
    %112 = vector.shape_cast %111 : vector<1x16x16xf32> to vector<16x16xf32>
    %cst_127 = arith.constant dense<0.000000e+00> : vector<16x16xf32>
    %113 = tpu.matmul %112, %3, %cst_127 {dimension_numbers = #tpu.dot_dimension_numbers<[1], [0], [0], [1], [0, 0, 1, 1], [], []>} : vector<16x16xf32>, vector<16x16xf32>, vector<16x16xf32> -> vector<16x16xf32>
    %c0_128 = arith.constant 0 : index
    %c13_129 = arith.constant 13 : index
    %c0_130 = arith.constant 0 : index
    %c0_131 = arith.constant 0 : index
    %114 = vector.load %arg2[%c0_128, %c13_129, %c0_130, %c0_131] : memref<4x18x16x16xf32, #tpu.memory_space<vmem>>, vector<1x1x16x16xf32>
    %115 = vector.shape_cast %114 : vector<1x1x16x16xf32> to vector<16x16xf32>
    %cst_132 = arith.constant dense<0.000000e+00> : vector<16x16xf32>
    %116 = tpu.matmul %113, %115, %cst_132 {dimension_numbers = #tpu.dot_dimension_numbers<[1], [0], [0], [1], [0, 0, 1, 1], [], []>} : vector<16x16xf32>, vector<16x16xf32>, vector<16x16xf32> -> vector<16x16xf32>
    %117 = arith.addf %110, %116 : vector<16x16xf32>
    %c14 = arith.constant 14 : index
    %c0_133 = arith.constant 0 : index
    %c0_134 = arith.constant 0 : index
    %118 = vector.load %arg1[%c14, %c0_133, %c0_134] : memref<18x16x16xf32, #tpu.memory_space<vmem>>, vector<1x16x16xf32>
    %119 = vector.shape_cast %118 : vector<1x16x16xf32> to vector<16x16xf32>
    %cst_135 = arith.constant dense<0.000000e+00> : vector<16x16xf32>
    %120 = tpu.matmul %119, %5, %cst_135 {dimension_numbers = #tpu.dot_dimension_numbers<[1], [0], [0], [1], [0, 0, 1, 1], [], []>} : vector<16x16xf32>, vector<16x16xf32>, vector<16x16xf32> -> vector<16x16xf32>
    %c0_136 = arith.constant 0 : index
    %c14_137 = arith.constant 14 : index
    %c0_138 = arith.constant 0 : index
    %c0_139 = arith.constant 0 : index
    %121 = vector.load %arg2[%c0_136, %c14_137, %c0_138, %c0_139] : memref<4x18x16x16xf32, #tpu.memory_space<vmem>>, vector<1x1x16x16xf32>
    %122 = vector.shape_cast %121 : vector<1x1x16x16xf32> to vector<16x16xf32>
    %cst_140 = arith.constant dense<0.000000e+00> : vector<16x16xf32>
    %123 = tpu.matmul %120, %122, %cst_140 {dimension_numbers = #tpu.dot_dimension_numbers<[1], [0], [0], [1], [0, 0, 1, 1], [], []>} : vector<16x16xf32>, vector<16x16xf32>, vector<16x16xf32> -> vector<16x16xf32>
    %124 = arith.addf %117, %123 : vector<16x16xf32>
    %cst_141 = arith.constant 5.000000e-01 : f32
    %125 = vector.broadcast %cst_141 : f32 to vector<16x16xf32>
    %126 = arith.mulf %125, %124 : vector<16x16xf32>
    %127 = math.tanh %126 : vector<16x16xf32>
    %cst_142 = arith.constant 1.000000e+00 : f32
    %128 = vector.broadcast %cst_142 : f32 to vector<16x16xf32>
    %129 = arith.addf %127, %128 : vector<16x16xf32>
    %cst_143 = arith.constant 5.000000e-01 : f32
    %130 = vector.broadcast %cst_143 : f32 to vector<16x16xf32>
    %131 = arith.mulf %130, %129 : vector<16x16xf32>
    %c0_144 = arith.constant 0 : index
    %c2_145 = arith.constant 2 : index
    %c0_146 = arith.constant 0 : index
    %c0_147 = arith.constant 0 : index
    %132 = vector.load %arg3[%c0_144, %c2_145, %c0_146, %c0_147] : memref<4x3x16x16xf32, #tpu.memory_space<vmem>>, vector<1x1x16x16xf32>
    %133 = vector.shape_cast %132 : vector<1x1x16x16xf32> to vector<16x16xf32>
    %cst_148 = arith.constant dense<0.000000e+00> : vector<16x16xf32>
    %134 = tpu.matmul %5, %133, %cst_148 {dimension_numbers = #tpu.dot_dimension_numbers<[1], [0], [0], [1], [0, 0, 1, 1], [], []>} : vector<16x16xf32>, vector<16x16xf32>, vector<16x16xf32> -> vector<16x16xf32>
    %c0_149 = arith.constant 0 : index
    %c2_150 = arith.constant 2 : index
    %c0_151 = arith.constant 0 : index
    %c0_152 = arith.constant 0 : index
    %135 = vector.load %arg4[%c0_149, %c2_150, %c0_151, %c0_152] : memref<4x3x1x16xf32, #tpu.memory_space<vmem>>, vector<1x1x1x16xf32>
    %136 = vector.shape_cast %135 : vector<1x1x1x16xf32> to vector<1x16xf32>
    %137 = vector.broadcast %136 : vector<1x16xf32> to vector<16x16xf32>
    %138 = arith.addf %134, %137 : vector<16x16xf32>
    %c6 = arith.constant 6 : index
    %c0_153 = arith.constant 0 : index
    %c0_154 = arith.constant 0 : index
    %139 = vector.load %arg1[%c6, %c0_153, %c0_154] : memref<18x16x16xf32, #tpu.memory_space<vmem>>, vector<1x16x16xf32>
    %140 = vector.shape_cast %139 : vector<1x16x16xf32> to vector<16x16xf32>
    %cst_155 = arith.constant dense<0.000000e+00> : vector<16x16xf32>
    %141 = tpu.matmul %140, %1, %cst_155 {dimension_numbers = #tpu.dot_dimension_numbers<[1], [0], [0], [1], [0, 0, 1, 1], [], []>} : vector<16x16xf32>, vector<16x16xf32>, vector<16x16xf32> -> vector<16x16xf32>
    %c0_156 = arith.constant 0 : index
    %c6_157 = arith.constant 6 : index
    %c0_158 = arith.constant 0 : index
    %c0_159 = arith.constant 0 : index
    %142 = vector.load %arg2[%c0_156, %c6_157, %c0_158, %c0_159] : memref<4x18x16x16xf32, #tpu.memory_space<vmem>>, vector<1x1x16x16xf32>
    %143 = vector.shape_cast %142 : vector<1x1x16x16xf32> to vector<16x16xf32>
    %cst_160 = arith.constant dense<0.000000e+00> : vector<16x16xf32>
    %144 = tpu.matmul %141, %143, %cst_160 {dimension_numbers = #tpu.dot_dimension_numbers<[1], [0], [0], [1], [0, 0, 1, 1], [], []>} : vector<16x16xf32>, vector<16x16xf32>, vector<16x16xf32> -> vector<16x16xf32>
    %145 = arith.addf %138, %144 : vector<16x16xf32>
    %c7 = arith.constant 7 : index
    %c0_161 = arith.constant 0 : index
    %c0_162 = arith.constant 0 : index
    %146 = vector.load %arg1[%c7, %c0_161, %c0_162] : memref<18x16x16xf32, #tpu.memory_space<vmem>>, vector<1x16x16xf32>
    %147 = vector.shape_cast %146 : vector<1x16x16xf32> to vector<16x16xf32>
    %cst_163 = arith.constant dense<0.000000e+00> : vector<16x16xf32>
    %148 = tpu.matmul %147, %3, %cst_163 {dimension_numbers = #tpu.dot_dimension_numbers<[1], [0], [0], [1], [0, 0, 1, 1], [], []>} : vector<16x16xf32>, vector<16x16xf32>, vector<16x16xf32> -> vector<16x16xf32>
    %c0_164 = arith.constant 0 : index
    %c7_165 = arith.constant 7 : index
    %c0_166 = arith.constant 0 : index
    %c0_167 = arith.constant 0 : index
    %149 = vector.load %arg2[%c0_164, %c7_165, %c0_166, %c0_167] : memref<4x18x16x16xf32, #tpu.memory_space<vmem>>, vector<1x1x16x16xf32>
    %150 = vector.shape_cast %149 : vector<1x1x16x16xf32> to vector<16x16xf32>
    %cst_168 = arith.constant dense<0.000000e+00> : vector<16x16xf32>
    %151 = tpu.matmul %148, %150, %cst_168 {dimension_numbers = #tpu.dot_dimension_numbers<[1], [0], [0], [1], [0, 0, 1, 1], [], []>} : vector<16x16xf32>, vector<16x16xf32>, vector<16x16xf32> -> vector<16x16xf32>
    %152 = arith.addf %145, %151 : vector<16x16xf32>
    %c15 = arith.constant 15 : index
    %c0_169 = arith.constant 0 : index
    %c0_170 = arith.constant 0 : index
    %153 = vector.load %arg1[%c15, %c0_169, %c0_170] : memref<18x16x16xf32, #tpu.memory_space<vmem>>, vector<1x16x16xf32>
    %154 = vector.shape_cast %153 : vector<1x16x16xf32> to vector<16x16xf32>
    %cst_171 = arith.constant dense<0.000000e+00> : vector<16x16xf32>
    %155 = tpu.matmul %154, %1, %cst_171 {dimension_numbers = #tpu.dot_dimension_numbers<[1], [0], [0], [1], [0, 0, 1, 1], [], []>} : vector<16x16xf32>, vector<16x16xf32>, vector<16x16xf32> -> vector<16x16xf32>
    %c0_172 = arith.constant 0 : index
    %c15_173 = arith.constant 15 : index
    %c0_174 = arith.constant 0 : index
    %c0_175 = arith.constant 0 : index
    %156 = vector.load %arg2[%c0_172, %c15_173, %c0_174, %c0_175] : memref<4x18x16x16xf32, #tpu.memory_space<vmem>>, vector<1x1x16x16xf32>
    %157 = vector.shape_cast %156 : vector<1x1x16x16xf32> to vector<16x16xf32>
    %cst_176 = arith.constant dense<0.000000e+00> : vector<16x16xf32>
    %158 = tpu.matmul %155, %157, %cst_176 {dimension_numbers = #tpu.dot_dimension_numbers<[1], [0], [0], [1], [0, 0, 1, 1], [], []>} : vector<16x16xf32>, vector<16x16xf32>, vector<16x16xf32> -> vector<16x16xf32>
    %159 = arith.addf %152, %158 : vector<16x16xf32>
    %c16 = arith.constant 16 : index
    %c0_177 = arith.constant 0 : index
    %c0_178 = arith.constant 0 : index
    %160 = vector.load %arg1[%c16, %c0_177, %c0_178] : memref<18x16x16xf32, #tpu.memory_space<vmem>>, vector<1x16x16xf32>
    %161 = vector.shape_cast %160 : vector<1x16x16xf32> to vector<16x16xf32>
    %cst_179 = arith.constant dense<0.000000e+00> : vector<16x16xf32>
    %162 = tpu.matmul %161, %3, %cst_179 {dimension_numbers = #tpu.dot_dimension_numbers<[1], [0], [0], [1], [0, 0, 1, 1], [], []>} : vector<16x16xf32>, vector<16x16xf32>, vector<16x16xf32> -> vector<16x16xf32>
    %c0_180 = arith.constant 0 : index
    %c16_181 = arith.constant 16 : index
    %c0_182 = arith.constant 0 : index
    %c0_183 = arith.constant 0 : index
    %163 = vector.load %arg2[%c0_180, %c16_181, %c0_182, %c0_183] : memref<4x18x16x16xf32, #tpu.memory_space<vmem>>, vector<1x1x16x16xf32>
    %164 = vector.shape_cast %163 : vector<1x1x16x16xf32> to vector<16x16xf32>
    %cst_184 = arith.constant dense<0.000000e+00> : vector<16x16xf32>
    %165 = tpu.matmul %162, %164, %cst_184 {dimension_numbers = #tpu.dot_dimension_numbers<[1], [0], [0], [1], [0, 0, 1, 1], [], []>} : vector<16x16xf32>, vector<16x16xf32>, vector<16x16xf32> -> vector<16x16xf32>
    %166 = arith.addf %159, %165 : vector<16x16xf32>
    %cst_185 = arith.constant 5.000000e-01 : f32
    %167 = vector.broadcast %cst_185 : f32 to vector<16x16xf32>
    %168 = arith.mulf %167, %166 : vector<16x16xf32>
    %169 = math.tanh %168 : vector<16x16xf32>
    %cst_186 = arith.constant 1.000000e+00 : f32
    %170 = vector.broadcast %cst_186 : f32 to vector<16x16xf32>
    %171 = arith.addf %169, %170 : vector<16x16xf32>
    %cst_187 = arith.constant 5.000000e-01 : f32
    %172 = vector.broadcast %cst_187 : f32 to vector<16x16xf32>
    %173 = arith.mulf %172, %171 : vector<16x16xf32>
    %c1_188 = arith.constant 1 : index
    %c0_189 = arith.constant 0 : index
    %c0_190 = arith.constant 0 : index
    %c0_191 = arith.constant 0 : index
    %174 = vector.load %arg3[%c1_188, %c0_189, %c0_190, %c0_191] : memref<4x3x16x16xf32, #tpu.memory_space<vmem>>, vector<1x1x16x16xf32>
    %175 = vector.shape_cast %174 : vector<1x1x16x16xf32> to vector<16x16xf32>
    %cst_192 = arith.constant dense<0.000000e+00> : vector<16x16xf32>
    %176 = tpu.matmul %68, %175, %cst_192 {dimension_numbers = #tpu.dot_dimension_numbers<[1], [0], [0], [1], [0, 0, 1, 1], [], []>} : vector<16x16xf32>, vector<16x16xf32>, vector<16x16xf32> -> vector<16x16xf32>
    %c1_193 = arith.constant 1 : index
    %c0_194 = arith.constant 0 : index
    %c0_195 = arith.constant 0 : index
    %c0_196 = arith.constant 0 : index
    %177 = vector.load %arg4[%c1_193, %c0_194, %c0_195, %c0_196] : memref<4x3x1x16xf32, #tpu.memory_space<vmem>>, vector<1x1x1x16xf32>
    %178 = vector.shape_cast %177 : vector<1x1x1x16xf32> to vector<1x16xf32>
    %179 = vector.broadcast %178 : vector<1x16xf32> to vector<16x16xf32>
    %180 = arith.addf %176, %179 : vector<16x16xf32>
    %c0_197 = arith.constant 0 : index
    %c0_198 = arith.constant 0 : index
    %c0_199 = arith.constant 0 : index
    %181 = vector.load %arg1[%c0_197, %c0_198, %c0_199] : memref<18x16x16xf32, #tpu.memory_space<vmem>>, vector<1x16x16xf32>
    %182 = vector.shape_cast %181 : vector<1x16x16xf32> to vector<16x16xf32>
    %cst_200 = arith.constant dense<0.000000e+00> : vector<16x16xf32>
    %183 = tpu.matmul %182, %68, %cst_200 {dimension_numbers = #tpu.dot_dimension_numbers<[1], [0], [0], [1], [0, 0, 1, 1], [], []>} : vector<16x16xf32>, vector<16x16xf32>, vector<16x16xf32> -> vector<16x16xf32>
    %c1_201 = arith.constant 1 : index
    %c0_202 = arith.constant 0 : index
    %c0_203 = arith.constant 0 : index
    %c0_204 = arith.constant 0 : index
    %184 = vector.load %arg2[%c1_201, %c0_202, %c0_203, %c0_204] : memref<4x18x16x16xf32, #tpu.memory_space<vmem>>, vector<1x1x16x16xf32>
    %185 = vector.shape_cast %184 : vector<1x1x16x16xf32> to vector<16x16xf32>
    %cst_205 = arith.constant dense<0.000000e+00> : vector<16x16xf32>
    %186 = tpu.matmul %183, %185, %cst_205 {dimension_numbers = #tpu.dot_dimension_numbers<[1], [0], [0], [1], [0, 0, 1, 1], [], []>} : vector<16x16xf32>, vector<16x16xf32>, vector<16x16xf32> -> vector<16x16xf32>
    %187 = arith.addf %180, %186 : vector<16x16xf32>
    %c1_206 = arith.constant 1 : index
    %c0_207 = arith.constant 0 : index
    %c0_208 = arith.constant 0 : index
    %188 = vector.load %arg1[%c1_206, %c0_207, %c0_208] : memref<18x16x16xf32, #tpu.memory_space<vmem>>, vector<1x16x16xf32>
    %189 = vector.shape_cast %188 : vector<1x16x16xf32> to vector<16x16xf32>
    %cst_209 = arith.constant dense<0.000000e+00> : vector<16x16xf32>
    %190 = tpu.matmul %189, %131, %cst_209 {dimension_numbers = #tpu.dot_dimension_numbers<[1], [0], [0], [1], [0, 0, 1, 1], [], []>} : vector<16x16xf32>, vector<16x16xf32>, vector<16x16xf32> -> vector<16x16xf32>
    %c1_210 = arith.constant 1 : index
    %c1_211 = arith.constant 1 : index
    %c0_212 = arith.constant 0 : index
    %c0_213 = arith.constant 0 : index
    %191 = vector.load %arg2[%c1_210, %c1_211, %c0_212, %c0_213] : memref<4x18x16x16xf32, #tpu.memory_space<vmem>>, vector<1x1x16x16xf32>
    %192 = vector.shape_cast %191 : vector<1x1x16x16xf32> to vector<16x16xf32>
    %cst_214 = arith.constant dense<0.000000e+00> : vector<16x16xf32>
    %193 = tpu.matmul %190, %192, %cst_214 {dimension_numbers = #tpu.dot_dimension_numbers<[1], [0], [0], [1], [0, 0, 1, 1], [], []>} : vector<16x16xf32>, vector<16x16xf32>, vector<16x16xf32> -> vector<16x16xf32>
    %194 = arith.addf %187, %193 : vector<16x16xf32>
    %c2_215 = arith.constant 2 : index
    %c0_216 = arith.constant 0 : index
    %c0_217 = arith.constant 0 : index
    %195 = vector.load %arg1[%c2_215, %c0_216, %c0_217] : memref<18x16x16xf32, #tpu.memory_space<vmem>>, vector<1x16x16xf32>
    %196 = vector.shape_cast %195 : vector<1x16x16xf32> to vector<16x16xf32>
    %cst_218 = arith.constant dense<0.000000e+00> : vector<16x16xf32>
    %197 = tpu.matmul %196, %173, %cst_218 {dimension_numbers = #tpu.dot_dimension_numbers<[1], [0], [0], [1], [0, 0, 1, 1], [], []>} : vector<16x16xf32>, vector<16x16xf32>, vector<16x16xf32> -> vector<16x16xf32>
    %c1_219 = arith.constant 1 : index
    %c2_220 = arith.constant 2 : index
    %c0_221 = arith.constant 0 : index
    %c0_222 = arith.constant 0 : index
    %198 = vector.load %arg2[%c1_219, %c2_220, %c0_221, %c0_222] : memref<4x18x16x16xf32, #tpu.memory_space<vmem>>, vector<1x1x16x16xf32>
    %199 = vector.shape_cast %198 : vector<1x1x16x16xf32> to vector<16x16xf32>
    %cst_223 = arith.constant dense<0.000000e+00> : vector<16x16xf32>
    %200 = tpu.matmul %197, %199, %cst_223 {dimension_numbers = #tpu.dot_dimension_numbers<[1], [0], [0], [1], [0, 0, 1, 1], [], []>} : vector<16x16xf32>, vector<16x16xf32>, vector<16x16xf32> -> vector<16x16xf32>
    %201 = arith.addf %194, %200 : vector<16x16xf32>
    %c9_224 = arith.constant 9 : index
    %c0_225 = arith.constant 0 : index
    %c0_226 = arith.constant 0 : index
    %202 = vector.load %arg1[%c9_224, %c0_225, %c0_226] : memref<18x16x16xf32, #tpu.memory_space<vmem>>, vector<1x16x16xf32>
    %203 = vector.shape_cast %202 : vector<1x16x16xf32> to vector<16x16xf32>
    %cst_227 = arith.constant dense<0.000000e+00> : vector<16x16xf32>
    %204 = tpu.matmul %203, %68, %cst_227 {dimension_numbers = #tpu.dot_dimension_numbers<[1], [0], [0], [1], [0, 0, 1, 1], [], []>} : vector<16x16xf32>, vector<16x16xf32>, vector<16x16xf32> -> vector<16x16xf32>
    %c1_228 = arith.constant 1 : index
    %c9_229 = arith.constant 9 : index
    %c0_230 = arith.constant 0 : index
    %c0_231 = arith.constant 0 : index
    %205 = vector.load %arg2[%c1_228, %c9_229, %c0_230, %c0_231] : memref<4x18x16x16xf32, #tpu.memory_space<vmem>>, vector<1x1x16x16xf32>
    %206 = vector.shape_cast %205 : vector<1x1x16x16xf32> to vector<16x16xf32>
    %cst_232 = arith.constant dense<0.000000e+00> : vector<16x16xf32>
    %207 = tpu.matmul %204, %206, %cst_232 {dimension_numbers = #tpu.dot_dimension_numbers<[1], [0], [0], [1], [0, 0, 1, 1], [], []>} : vector<16x16xf32>, vector<16x16xf32>, vector<16x16xf32> -> vector<16x16xf32>
    %208 = arith.addf %201, %207 : vector<16x16xf32>
    %c10_233 = arith.constant 10 : index
    %c0_234 = arith.constant 0 : index
    %c0_235 = arith.constant 0 : index
    %209 = vector.load %arg1[%c10_233, %c0_234, %c0_235] : memref<18x16x16xf32, #tpu.memory_space<vmem>>, vector<1x16x16xf32>
    %210 = vector.shape_cast %209 : vector<1x16x16xf32> to vector<16x16xf32>
    %cst_236 = arith.constant dense<0.000000e+00> : vector<16x16xf32>
    %211 = tpu.matmul %210, %131, %cst_236 {dimension_numbers = #tpu.dot_dimension_numbers<[1], [0], [0], [1], [0, 0, 1, 1], [], []>} : vector<16x16xf32>, vector<16x16xf32>, vector<16x16xf32> -> vector<16x16xf32>
    %c1_237 = arith.constant 1 : index
    %c10_238 = arith.constant 10 : index
    %c0_239 = arith.constant 0 : index
    %c0_240 = arith.constant 0 : index
    %212 = vector.load %arg2[%c1_237, %c10_238, %c0_239, %c0_240] : memref<4x18x16x16xf32, #tpu.memory_space<vmem>>, vector<1x1x16x16xf32>
    %213 = vector.shape_cast %212 : vector<1x1x16x16xf32> to vector<16x16xf32>
    %cst_241 = arith.constant dense<0.000000e+00> : vector<16x16xf32>
    %214 = tpu.matmul %211, %213, %cst_241 {dimension_numbers = #tpu.dot_dimension_numbers<[1], [0], [0], [1], [0, 0, 1, 1], [], []>} : vector<16x16xf32>, vector<16x16xf32>, vector<16x16xf32> -> vector<16x16xf32>
    %215 = arith.addf %208, %214 : vector<16x16xf32>
    %c11_242 = arith.constant 11 : index
    %c0_243 = arith.constant 0 : index
    %c0_244 = arith.constant 0 : index
    %216 = vector.load %arg1[%c11_242, %c0_243, %c0_244] : memref<18x16x16xf32, #tpu.memory_space<vmem>>, vector<1x16x16xf32>
    %217 = vector.shape_cast %216 : vector<1x16x16xf32> to vector<16x16xf32>
    %cst_245 = arith.constant dense<0.000000e+00> : vector<16x16xf32>
    %218 = tpu.matmul %217, %173, %cst_245 {dimension_numbers = #tpu.dot_dimension_numbers<[1], [0], [0], [1], [0, 0, 1, 1], [], []>} : vector<16x16xf32>, vector<16x16xf32>, vector<16x16xf32> -> vector<16x16xf32>
    %c1_246 = arith.constant 1 : index
    %c11_247 = arith.constant 11 : index
    %c0_248 = arith.constant 0 : index
    %c0_249 = arith.constant 0 : index
    %219 = vector.load %arg2[%c1_246, %c11_247, %c0_248, %c0_249] : memref<4x18x16x16xf32, #tpu.memory_space<vmem>>, vector<1x1x16x16xf32>
    %220 = vector.shape_cast %219 : vector<1x1x16x16xf32> to vector<16x16xf32>
    %cst_250 = arith.constant dense<0.000000e+00> : vector<16x16xf32>
    %221 = tpu.matmul %218, %220, %cst_250 {dimension_numbers = #tpu.dot_dimension_numbers<[1], [0], [0], [1], [0, 0, 1, 1], [], []>} : vector<16x16xf32>, vector<16x16xf32>, vector<16x16xf32> -> vector<16x16xf32>
    %222 = arith.addf %215, %221 : vector<16x16xf32>
    %c17_251 = arith.constant 17 : index
    %c0_252 = arith.constant 0 : index
    %c0_253 = arith.constant 0 : index
    %223 = vector.load %arg1[%c17_251, %c0_252, %c0_253] : memref<18x16x16xf32, #tpu.memory_space<vmem>>, vector<1x16x16xf32>
    %224 = vector.shape_cast %223 : vector<1x16x16xf32> to vector<16x16xf32>
    %cst_254 = arith.constant dense<0.000000e+00> : vector<16x16xf32>
    %225 = tpu.matmul %224, %131, %cst_254 {dimension_numbers = #tpu.dot_dimension_numbers<[1], [0], [0], [1], [0, 0, 1, 1], [], []>} : vector<16x16xf32>, vector<16x16xf32>, vector<16x16xf32> -> vector<16x16xf32>
    %c1_255 = arith.constant 1 : index
    %c17_256 = arith.constant 17 : index
    %c0_257 = arith.constant 0 : index
    %c0_258 = arith.constant 0 : index
    %226 = vector.load %arg2[%c1_255, %c17_256, %c0_257, %c0_258] : memref<4x18x16x16xf32, #tpu.memory_space<vmem>>, vector<1x1x16x16xf32>
    %227 = vector.shape_cast %226 : vector<1x1x16x16xf32> to vector<16x16xf32>
    %cst_259 = arith.constant dense<0.000000e+00> : vector<16x16xf32>
    %228 = tpu.matmul %225, %227, %cst_259 {dimension_numbers = #tpu.dot_dimension_numbers<[1], [0], [0], [1], [0, 0, 1, 1], [], []>} : vector<16x16xf32>, vector<16x16xf32>, vector<16x16xf32> -> vector<16x16xf32>
    %229 = arith.addf %222, %228 : vector<16x16xf32>
    %cst_260 = arith.constant 5.000000e-01 : f32
    %230 = vector.broadcast %cst_260 : f32 to vector<16x16xf32>
    %231 = arith.mulf %230, %229 : vector<16x16xf32>
    %232 = math.tanh %231 : vector<16x16xf32>
    %cst_261 = arith.constant 1.000000e+00 : f32
    %233 = vector.broadcast %cst_261 : f32 to vector<16x16xf32>
    %234 = arith.addf %232, %233 : vector<16x16xf32>
    %cst_262 = arith.constant 5.000000e-01 : f32
    %235 = vector.broadcast %cst_262 : f32 to vector<16x16xf32>
    %236 = arith.mulf %235, %234 : vector<16x16xf32>
    %c1_263 = arith.constant 1 : index
    %c1_264 = arith.constant 1 : index
    %c0_265 = arith.constant 0 : index
    %c0_266 = arith.constant 0 : index
    %237 = vector.load %arg3[%c1_263, %c1_264, %c0_265, %c0_266] : memref<4x3x16x16xf32, #tpu.memory_space<vmem>>, vector<1x1x16x16xf32>
    %238 = vector.shape_cast %237 : vector<1x1x16x16xf32> to vector<16x16xf32>
    %cst_267 = arith.constant dense<0.000000e+00> : vector<16x16xf32>
    %239 = tpu.matmul %131, %238, %cst_267 {dimension_numbers = #tpu.dot_dimension_numbers<[1], [0], [0], [1], [0, 0, 1, 1], [], []>} : vector<16x16xf32>, vector<16x16xf32>, vector<16x16xf32> -> vector<16x16xf32>
    %c1_268 = arith.constant 1 : index
    %c1_269 = arith.constant 1 : index
    %c0_270 = arith.constant 0 : index
    %c0_271 = arith.constant 0 : index
    %240 = vector.load %arg4[%c1_268, %c1_269, %c0_270, %c0_271] : memref<4x3x1x16xf32, #tpu.memory_space<vmem>>, vector<1x1x1x16xf32>
    %241 = vector.shape_cast %240 : vector<1x1x1x16xf32> to vector<1x16xf32>
    %242 = vector.broadcast %241 : vector<1x16xf32> to vector<16x16xf32>
    %243 = arith.addf %239, %242 : vector<16x16xf32>
    %c3_272 = arith.constant 3 : index
    %c0_273 = arith.constant 0 : index
    %c0_274 = arith.constant 0 : index
    %244 = vector.load %arg1[%c3_272, %c0_273, %c0_274] : memref<18x16x16xf32, #tpu.memory_space<vmem>>, vector<1x16x16xf32>
    %245 = vector.shape_cast %244 : vector<1x16x16xf32> to vector<16x16xf32>
    %cst_275 = arith.constant dense<0.000000e+00> : vector<16x16xf32>
    %246 = tpu.matmul %245, %68, %cst_275 {dimension_numbers = #tpu.dot_dimension_numbers<[1], [0], [0], [1], [0, 0, 1, 1], [], []>} : vector<16x16xf32>, vector<16x16xf32>, vector<16x16xf32> -> vector<16x16xf32>
    %c1_276 = arith.constant 1 : index
    %c3_277 = arith.constant 3 : index
    %c0_278 = arith.constant 0 : index
    %c0_279 = arith.constant 0 : index
    %247 = vector.load %arg2[%c1_276, %c3_277, %c0_278, %c0_279] : memref<4x18x16x16xf32, #tpu.memory_space<vmem>>, vector<1x1x16x16xf32>
    %248 = vector.shape_cast %247 : vector<1x1x16x16xf32> to vector<16x16xf32>
    %cst_280 = arith.constant dense<0.000000e+00> : vector<16x16xf32>
    %249 = tpu.matmul %246, %248, %cst_280 {dimension_numbers = #tpu.dot_dimension_numbers<[1], [0], [0], [1], [0, 0, 1, 1], [], []>} : vector<16x16xf32>, vector<16x16xf32>, vector<16x16xf32> -> vector<16x16xf32>
    %250 = arith.addf %243, %249 : vector<16x16xf32>
    %c4_281 = arith.constant 4 : index
    %c0_282 = arith.constant 0 : index
    %c0_283 = arith.constant 0 : index
    %251 = vector.load %arg1[%c4_281, %c0_282, %c0_283] : memref<18x16x16xf32, #tpu.memory_space<vmem>>, vector<1x16x16xf32>
    %252 = vector.shape_cast %251 : vector<1x16x16xf32> to vector<16x16xf32>
    %cst_284 = arith.constant dense<0.000000e+00> : vector<16x16xf32>
    %253 = tpu.matmul %252, %131, %cst_284 {dimension_numbers = #tpu.dot_dimension_numbers<[1], [0], [0], [1], [0, 0, 1, 1], [], []>} : vector<16x16xf32>, vector<16x16xf32>, vector<16x16xf32> -> vector<16x16xf32>
    %c1_285 = arith.constant 1 : index
    %c4_286 = arith.constant 4 : index
    %c0_287 = arith.constant 0 : index
    %c0_288 = arith.constant 0 : index
    %254 = vector.load %arg2[%c1_285, %c4_286, %c0_287, %c0_288] : memref<4x18x16x16xf32, #tpu.memory_space<vmem>>, vector<1x1x16x16xf32>
    %255 = vector.shape_cast %254 : vector<1x1x16x16xf32> to vector<16x16xf32>
    %cst_289 = arith.constant dense<0.000000e+00> : vector<16x16xf32>
    %256 = tpu.matmul %253, %255, %cst_289 {dimension_numbers = #tpu.dot_dimension_numbers<[1], [0], [0], [1], [0, 0, 1, 1], [], []>} : vector<16x16xf32>, vector<16x16xf32>, vector<16x16xf32> -> vector<16x16xf32>
    %257 = arith.addf %250, %256 : vector<16x16xf32>
    %c5_290 = arith.constant 5 : index
    %c0_291 = arith.constant 0 : index
    %c0_292 = arith.constant 0 : index
    %258 = vector.load %arg1[%c5_290, %c0_291, %c0_292] : memref<18x16x16xf32, #tpu.memory_space<vmem>>, vector<1x16x16xf32>
    %259 = vector.shape_cast %258 : vector<1x16x16xf32> to vector<16x16xf32>
    %cst_293 = arith.constant dense<0.000000e+00> : vector<16x16xf32>
    %260 = tpu.matmul %259, %173, %cst_293 {dimension_numbers = #tpu.dot_dimension_numbers<[1], [0], [0], [1], [0, 0, 1, 1], [], []>} : vector<16x16xf32>, vector<16x16xf32>, vector<16x16xf32> -> vector<16x16xf32>
    %c1_294 = arith.constant 1 : index
    %c5_295 = arith.constant 5 : index
    %c0_296 = arith.constant 0 : index
    %c0_297 = arith.constant 0 : index
    %261 = vector.load %arg2[%c1_294, %c5_295, %c0_296, %c0_297] : memref<4x18x16x16xf32, #tpu.memory_space<vmem>>, vector<1x1x16x16xf32>
    %262 = vector.shape_cast %261 : vector<1x1x16x16xf32> to vector<16x16xf32>
    %cst_298 = arith.constant dense<0.000000e+00> : vector<16x16xf32>
    %263 = tpu.matmul %260, %262, %cst_298 {dimension_numbers = #tpu.dot_dimension_numbers<[1], [0], [0], [1], [0, 0, 1, 1], [], []>} : vector<16x16xf32>, vector<16x16xf32>, vector<16x16xf32> -> vector<16x16xf32>
    %264 = arith.addf %257, %263 : vector<16x16xf32>
    %c8_299 = arith.constant 8 : index
    %c0_300 = arith.constant 0 : index
    %c0_301 = arith.constant 0 : index
    %265 = vector.load %arg1[%c8_299, %c0_300, %c0_301] : memref<18x16x16xf32, #tpu.memory_space<vmem>>, vector<1x16x16xf32>
    %266 = vector.shape_cast %265 : vector<1x16x16xf32> to vector<16x16xf32>
    %cst_302 = arith.constant dense<0.000000e+00> : vector<16x16xf32>
    %267 = tpu.matmul %266, %68, %cst_302 {dimension_numbers = #tpu.dot_dimension_numbers<[1], [0], [0], [1], [0, 0, 1, 1], [], []>} : vector<16x16xf32>, vector<16x16xf32>, vector<16x16xf32> -> vector<16x16xf32>
    %c1_303 = arith.constant 1 : index
    %c8_304 = arith.constant 8 : index
    %c0_305 = arith.constant 0 : index
    %c0_306 = arith.constant 0 : index
    %268 = vector.load %arg2[%c1_303, %c8_304, %c0_305, %c0_306] : memref<4x18x16x16xf32, #tpu.memory_space<vmem>>, vector<1x1x16x16xf32>
    %269 = vector.shape_cast %268 : vector<1x1x16x16xf32> to vector<16x16xf32>
    %cst_307 = arith.constant dense<0.000000e+00> : vector<16x16xf32>
    %270 = tpu.matmul %267, %269, %cst_307 {dimension_numbers = #tpu.dot_dimension_numbers<[1], [0], [0], [1], [0, 0, 1, 1], [], []>} : vector<16x16xf32>, vector<16x16xf32>, vector<16x16xf32> -> vector<16x16xf32>
    %271 = arith.addf %264, %270 : vector<16x16xf32>
    %c12_308 = arith.constant 12 : index
    %c0_309 = arith.constant 0 : index
    %c0_310 = arith.constant 0 : index
    %272 = vector.load %arg1[%c12_308, %c0_309, %c0_310] : memref<18x16x16xf32, #tpu.memory_space<vmem>>, vector<1x16x16xf32>
    %273 = vector.shape_cast %272 : vector<1x16x16xf32> to vector<16x16xf32>
    %cst_311 = arith.constant dense<0.000000e+00> : vector<16x16xf32>
    %274 = tpu.matmul %273, %68, %cst_311 {dimension_numbers = #tpu.dot_dimension_numbers<[1], [0], [0], [1], [0, 0, 1, 1], [], []>} : vector<16x16xf32>, vector<16x16xf32>, vector<16x16xf32> -> vector<16x16xf32>
    %c1_312 = arith.constant 1 : index
    %c12_313 = arith.constant 12 : index
    %c0_314 = arith.constant 0 : index
    %c0_315 = arith.constant 0 : index
    %275 = vector.load %arg2[%c1_312, %c12_313, %c0_314, %c0_315] : memref<4x18x16x16xf32, #tpu.memory_space<vmem>>, vector<1x1x16x16xf32>
    %276 = vector.shape_cast %275 : vector<1x1x16x16xf32> to vector<16x16xf32>
    %cst_316 = arith.constant dense<0.000000e+00> : vector<16x16xf32>
    %277 = tpu.matmul %274, %276, %cst_316 {dimension_numbers = #tpu.dot_dimension_numbers<[1], [0], [0], [1], [0, 0, 1, 1], [], []>} : vector<16x16xf32>, vector<16x16xf32>, vector<16x16xf32> -> vector<16x16xf32>
    %278 = arith.addf %271, %277 : vector<16x16xf32>
    %c13_317 = arith.constant 13 : index
    %c0_318 = arith.constant 0 : index
    %c0_319 = arith.constant 0 : index
    %279 = vector.load %arg1[%c13_317, %c0_318, %c0_319] : memref<18x16x16xf32, #tpu.memory_space<vmem>>, vector<1x16x16xf32>
    %280 = vector.shape_cast %279 : vector<1x16x16xf32> to vector<16x16xf32>
    %cst_320 = arith.constant dense<0.000000e+00> : vector<16x16xf32>
    %281 = tpu.matmul %280, %131, %cst_320 {dimension_numbers = #tpu.dot_dimension_numbers<[1], [0], [0], [1], [0, 0, 1, 1], [], []>} : vector<16x16xf32>, vector<16x16xf32>, vector<16x16xf32> -> vector<16x16xf32>
    %c1_321 = arith.constant 1 : index
    %c13_322 = arith.constant 13 : index
    %c0_323 = arith.constant 0 : index
    %c0_324 = arith.constant 0 : index
    %282 = vector.load %arg2[%c1_321, %c13_322, %c0_323, %c0_324] : memref<4x18x16x16xf32, #tpu.memory_space<vmem>>, vector<1x1x16x16xf32>
    %283 = vector.shape_cast %282 : vector<1x1x16x16xf32> to vector<16x16xf32>
    %cst_325 = arith.constant dense<0.000000e+00> : vector<16x16xf32>
    %284 = tpu.matmul %281, %283, %cst_325 {dimension_numbers = #tpu.dot_dimension_numbers<[1], [0], [0], [1], [0, 0, 1, 1], [], []>} : vector<16x16xf32>, vector<16x16xf32>, vector<16x16xf32> -> vector<16x16xf32>
    %285 = arith.addf %278, %284 : vector<16x16xf32>
    %c14_326 = arith.constant 14 : index
    %c0_327 = arith.constant 0 : index
    %c0_328 = arith.constant 0 : index
    %286 = vector.load %arg1[%c14_326, %c0_327, %c0_328] : memref<18x16x16xf32, #tpu.memory_space<vmem>>, vector<1x16x16xf32>
    %287 = vector.shape_cast %286 : vector<1x16x16xf32> to vector<16x16xf32>
    %cst_329 = arith.constant dense<0.000000e+00> : vector<16x16xf32>
    %288 = tpu.matmul %287, %173, %cst_329 {dimension_numbers = #tpu.dot_dimension_numbers<[1], [0], [0], [1], [0, 0, 1, 1], [], []>} : vector<16x16xf32>, vector<16x16xf32>, vector<16x16xf32> -> vector<16x16xf32>
    %c1_330 = arith.constant 1 : index
    %c14_331 = arith.constant 14 : index
    %c0_332 = arith.constant 0 : index
    %c0_333 = arith.constant 0 : index
    %289 = vector.load %arg2[%c1_330, %c14_331, %c0_332, %c0_333] : memref<4x18x16x16xf32, #tpu.memory_space<vmem>>, vector<1x1x16x16xf32>
    %290 = vector.shape_cast %289 : vector<1x1x16x16xf32> to vector<16x16xf32>
    %cst_334 = arith.constant dense<0.000000e+00> : vector<16x16xf32>
    %291 = tpu.matmul %288, %290, %cst_334 {dimension_numbers = #tpu.dot_dimension_numbers<[1], [0], [0], [1], [0, 0, 1, 1], [], []>} : vector<16x16xf32>, vector<16x16xf32>, vector<16x16xf32> -> vector<16x16xf32>
    %292 = arith.addf %285, %291 : vector<16x16xf32>
    %cst_335 = arith.constant 5.000000e-01 : f32
    %293 = vector.broadcast %cst_335 : f32 to vector<16x16xf32>
    %294 = arith.mulf %293, %292 : vector<16x16xf32>
    %295 = math.tanh %294 : vector<16x16xf32>
    %cst_336 = arith.constant 1.000000e+00 : f32
    %296 = vector.broadcast %cst_336 : f32 to vector<16x16xf32>
    %297 = arith.addf %295, %296 : vector<16x16xf32>
    %cst_337 = arith.constant 5.000000e-01 : f32
    %298 = vector.broadcast %cst_337 : f32 to vector<16x16xf32>
    %299 = arith.mulf %298, %297 : vector<16x16xf32>
    %c1_338 = arith.constant 1 : index
    %c2_339 = arith.constant 2 : index
    %c0_340 = arith.constant 0 : index
    %c0_341 = arith.constant 0 : index
    %300 = vector.load %arg3[%c1_338, %c2_339, %c0_340, %c0_341] : memref<4x3x16x16xf32, #tpu.memory_space<vmem>>, vector<1x1x16x16xf32>
    %301 = vector.shape_cast %300 : vector<1x1x16x16xf32> to vector<16x16xf32>
    %cst_342 = arith.constant dense<0.000000e+00> : vector<16x16xf32>
    %302 = tpu.matmul %173, %301, %cst_342 {dimension_numbers = #tpu.dot_dimension_numbers<[1], [0], [0], [1], [0, 0, 1, 1], [], []>} : vector<16x16xf32>, vector<16x16xf32>, vector<16x16xf32> -> vector<16x16xf32>
    %c1_343 = arith.constant 1 : index
    %c2_344 = arith.constant 2 : index
    %c0_345 = arith.constant 0 : index
    %c0_346 = arith.constant 0 : index
    %303 = vector.load %arg4[%c1_343, %c2_344, %c0_345, %c0_346] : memref<4x3x1x16xf32, #tpu.memory_space<vmem>>, vector<1x1x1x16xf32>
    %304 = vector.shape_cast %303 : vector<1x1x1x16xf32> to vector<1x16xf32>
    %305 = vector.broadcast %304 : vector<1x16xf32> to vector<16x16xf32>
    %306 = arith.addf %302, %305 : vector<16x16xf32>
    %c6_347 = arith.constant 6 : index
    %c0_348 = arith.constant 0 : index
    %c0_349 = arith.constant 0 : index
    %307 = vector.load %arg1[%c6_347, %c0_348, %c0_349] : memref<18x16x16xf32, #tpu.memory_space<vmem>>, vector<1x16x16xf32>
    %308 = vector.shape_cast %307 : vector<1x16x16xf32> to vector<16x16xf32>
    %cst_350 = arith.constant dense<0.000000e+00> : vector<16x16xf32>
    %309 = tpu.matmul %308, %68, %cst_350 {dimension_numbers = #tpu.dot_dimension_numbers<[1], [0], [0], [1], [0, 0, 1, 1], [], []>} : vector<16x16xf32>, vector<16x16xf32>, vector<16x16xf32> -> vector<16x16xf32>
    %c1_351 = arith.constant 1 : index
    %c6_352 = arith.constant 6 : index
    %c0_353 = arith.constant 0 : index
    %c0_354 = arith.constant 0 : index
    %310 = vector.load %arg2[%c1_351, %c6_352, %c0_353, %c0_354] : memref<4x18x16x16xf32, #tpu.memory_space<vmem>>, vector<1x1x16x16xf32>
    %311 = vector.shape_cast %310 : vector<1x1x16x16xf32> to vector<16x16xf32>
    %cst_355 = arith.constant dense<0.000000e+00> : vector<16x16xf32>
    %312 = tpu.matmul %309, %311, %cst_355 {dimension_numbers = #tpu.dot_dimension_numbers<[1], [0], [0], [1], [0, 0, 1, 1], [], []>} : vector<16x16xf32>, vector<16x16xf32>, vector<16x16xf32> -> vector<16x16xf32>
    %313 = arith.addf %306, %312 : vector<16x16xf32>
    %c7_356 = arith.constant 7 : index
    %c0_357 = arith.constant 0 : index
    %c0_358 = arith.constant 0 : index
    %314 = vector.load %arg1[%c7_356, %c0_357, %c0_358] : memref<18x16x16xf32, #tpu.memory_space<vmem>>, vector<1x16x16xf32>
    %315 = vector.shape_cast %314 : vector<1x16x16xf32> to vector<16x16xf32>
    %cst_359 = arith.constant dense<0.000000e+00> : vector<16x16xf32>
    %316 = tpu.matmul %315, %131, %cst_359 {dimension_numbers = #tpu.dot_dimension_numbers<[1], [0], [0], [1], [0, 0, 1, 1], [], []>} : vector<16x16xf32>, vector<16x16xf32>, vector<16x16xf32> -> vector<16x16xf32>
    %c1_360 = arith.constant 1 : index
    %c7_361 = arith.constant 7 : index
    %c0_362 = arith.constant 0 : index
    %c0_363 = arith.constant 0 : index
    %317 = vector.load %arg2[%c1_360, %c7_361, %c0_362, %c0_363] : memref<4x18x16x16xf32, #tpu.memory_space<vmem>>, vector<1x1x16x16xf32>
    %318 = vector.shape_cast %317 : vector<1x1x16x16xf32> to vector<16x16xf32>
    %cst_364 = arith.constant dense<0.000000e+00> : vector<16x16xf32>
    %319 = tpu.matmul %316, %318, %cst_364 {dimension_numbers = #tpu.dot_dimension_numbers<[1], [0], [0], [1], [0, 0, 1, 1], [], []>} : vector<16x16xf32>, vector<16x16xf32>, vector<16x16xf32> -> vector<16x16xf32>
    %320 = arith.addf %313, %319 : vector<16x16xf32>
    %c15_365 = arith.constant 15 : index
    %c0_366 = arith.constant 0 : index
    %c0_367 = arith.constant 0 : index
    %321 = vector.load %arg1[%c15_365, %c0_366, %c0_367] : memref<18x16x16xf32, #tpu.memory_space<vmem>>, vector<1x16x16xf32>
    %322 = vector.shape_cast %321 : vector<1x16x16xf32> to vector<16x16xf32>
    %cst_368 = arith.constant dense<0.000000e+00> : vector<16x16xf32>
    %323 = tpu.matmul %322, %68, %cst_368 {dimension_numbers = #tpu.dot_dimension_numbers<[1], [0], [0], [1], [0, 0, 1, 1], [], []>} : vector<16x16xf32>, vector<16x16xf32>, vector<16x16xf32> -> vector<16x16xf32>
    %c1_369 = arith.constant 1 : index
    %c15_370 = arith.constant 15 : index
    %c0_371 = arith.constant 0 : index
    %c0_372 = arith.constant 0 : index
    %324 = vector.load %arg2[%c1_369, %c15_370, %c0_371, %c0_372] : memref<4x18x16x16xf32, #tpu.memory_space<vmem>>, vector<1x1x16x16xf32>
    %325 = vector.shape_cast %324 : vector<1x1x16x16xf32> to vector<16x16xf32>
    %cst_373 = arith.constant dense<0.000000e+00> : vector<16x16xf32>
    %326 = tpu.matmul %323, %325, %cst_373 {dimension_numbers = #tpu.dot_dimension_numbers<[1], [0], [0], [1], [0, 0, 1, 1], [], []>} : vector<16x16xf32>, vector<16x16xf32>, vector<16x16xf32> -> vector<16x16xf32>
    %327 = arith.addf %320, %326 : vector<16x16xf32>
    %c16_374 = arith.constant 16 : index
    %c0_375 = arith.constant 0 : index
    %c0_376 = arith.constant 0 : index
    %328 = vector.load %arg1[%c16_374, %c0_375, %c0_376] : memref<18x16x16xf32, #tpu.memory_space<vmem>>, vector<1x16x16xf32>
    %329 = vector.shape_cast %328 : vector<1x16x16xf32> to vector<16x16xf32>
    %cst_377 = arith.constant dense<0.000000e+00> : vector<16x16xf32>
    %330 = tpu.matmul %329, %131, %cst_377 {dimension_numbers = #tpu.dot_dimension_numbers<[1], [0], [0], [1], [0, 0, 1, 1], [], []>} : vector<16x16xf32>, vector<16x16xf32>, vector<16x16xf32> -> vector<16x16xf32>
    %c1_378 = arith.constant 1 : index
    %c16_379 = arith.constant 16 : index
    %c0_380 = arith.constant 0 : index
    %c0_381 = arith.constant 0 : index
    %331 = vector.load %arg2[%c1_378, %c16_379, %c0_380, %c0_381] : memref<4x18x16x16xf32, #tpu.memory_space<vmem>>, vector<1x1x16x16xf32>
    %332 = vector.shape_cast %331 : vector<1x1x16x16xf32> to vector<16x16xf32>
    %cst_382 = arith.constant dense<0.000000e+00> : vector<16x16xf32>
    %333 = tpu.matmul %330, %332, %cst_382 {dimension_numbers = #tpu.dot_dimension_numbers<[1], [0], [0], [1], [0, 0, 1, 1], [], []>} : vector<16x16xf32>, vector<16x16xf32>, vector<16x16xf32> -> vector<16x16xf32>
    %334 = arith.addf %327, %333 : vector<16x16xf32>
    %cst_383 = arith.constant 5.000000e-01 : f32
    %335 = vector.broadcast %cst_383 : f32 to vector<16x16xf32>
    %336 = arith.mulf %335, %334 : vector<16x16xf32>
    %337 = math.tanh %336 : vector<16x16xf32>
    %cst_384 = arith.constant 1.000000e+00 : f32
    %338 = vector.broadcast %cst_384 : f32 to vector<16x16xf32>
    %339 = arith.addf %337, %338 : vector<16x16xf32>
    %cst_385 = arith.constant 5.000000e-01 : f32
    %340 = vector.broadcast %cst_385 : f32 to vector<16x16xf32>
    %341 = arith.mulf %340, %339 : vector<16x16xf32>
    %c2_386 = arith.constant 2 : index
    %c0_387 = arith.constant 0 : index
    %c0_388 = arith.constant 0 : index
    %c0_389 = arith.constant 0 : index
    %342 = vector.load %arg3[%c2_386, %c0_387, %c0_388, %c0_389] : memref<4x3x16x16xf32, #tpu.memory_space<vmem>>, vector<1x1x16x16xf32>
    %343 = vector.shape_cast %342 : vector<1x1x16x16xf32> to vector<16x16xf32>
    %cst_390 = arith.constant dense<0.000000e+00> : vector<16x16xf32>
    %344 = tpu.matmul %236, %343, %cst_390 {dimension_numbers = #tpu.dot_dimension_numbers<[1], [0], [0], [1], [0, 0, 1, 1], [], []>} : vector<16x16xf32>, vector<16x16xf32>, vector<16x16xf32> -> vector<16x16xf32>
    %c2_391 = arith.constant 2 : index
    %c0_392 = arith.constant 0 : index
    %c0_393 = arith.constant 0 : index
    %c0_394 = arith.constant 0 : index
    %345 = vector.load %arg4[%c2_391, %c0_392, %c0_393, %c0_394] : memref<4x3x1x16xf32, #tpu.memory_space<vmem>>, vector<1x1x1x16xf32>
    %346 = vector.shape_cast %345 : vector<1x1x1x16xf32> to vector<1x16xf32>
    %347 = vector.broadcast %346 : vector<1x16xf32> to vector<16x16xf32>
    %348 = arith.addf %344, %347 : vector<16x16xf32>
    %c0_395 = arith.constant 0 : index
    %c0_396 = arith.constant 0 : index
    %c0_397 = arith.constant 0 : index
    %349 = vector.load %arg1[%c0_395, %c0_396, %c0_397] : memref<18x16x16xf32, #tpu.memory_space<vmem>>, vector<1x16x16xf32>
    %350 = vector.shape_cast %349 : vector<1x16x16xf32> to vector<16x16xf32>
    %cst_398 = arith.constant dense<0.000000e+00> : vector<16x16xf32>
    %351 = tpu.matmul %350, %236, %cst_398 {dimension_numbers = #tpu.dot_dimension_numbers<[1], [0], [0], [1], [0, 0, 1, 1], [], []>} : vector<16x16xf32>, vector<16x16xf32>, vector<16x16xf32> -> vector<16x16xf32>
    %c2_399 = arith.constant 2 : index
    %c0_400 = arith.constant 0 : index
    %c0_401 = arith.constant 0 : index
    %c0_402 = arith.constant 0 : index
    %352 = vector.load %arg2[%c2_399, %c0_400, %c0_401, %c0_402] : memref<4x18x16x16xf32, #tpu.memory_space<vmem>>, vector<1x1x16x16xf32>
    %353 = vector.shape_cast %352 : vector<1x1x16x16xf32> to vector<16x16xf32>
    %cst_403 = arith.constant dense<0.000000e+00> : vector<16x16xf32>
    %354 = tpu.matmul %351, %353, %cst_403 {dimension_numbers = #tpu.dot_dimension_numbers<[1], [0], [0], [1], [0, 0, 1, 1], [], []>} : vector<16x16xf32>, vector<16x16xf32>, vector<16x16xf32> -> vector<16x16xf32>
    %355 = arith.addf %348, %354 : vector<16x16xf32>
    %c1_404 = arith.constant 1 : index
    %c0_405 = arith.constant 0 : index
    %c0_406 = arith.constant 0 : index
    %356 = vector.load %arg1[%c1_404, %c0_405, %c0_406] : memref<18x16x16xf32, #tpu.memory_space<vmem>>, vector<1x16x16xf32>
    %357 = vector.shape_cast %356 : vector<1x16x16xf32> to vector<16x16xf32>
    %cst_407 = arith.constant dense<0.000000e+00> : vector<16x16xf32>
    %358 = tpu.matmul %357, %299, %cst_407 {dimension_numbers = #tpu.dot_dimension_numbers<[1], [0], [0], [1], [0, 0, 1, 1], [], []>} : vector<16x16xf32>, vector<16x16xf32>, vector<16x16xf32> -> vector<16x16xf32>
    %c2_408 = arith.constant 2 : index
    %c1_409 = arith.constant 1 : index
    %c0_410 = arith.constant 0 : index
    %c0_411 = arith.constant 0 : index
    %359 = vector.load %arg2[%c2_408, %c1_409, %c0_410, %c0_411] : memref<4x18x16x16xf32, #tpu.memory_space<vmem>>, vector<1x1x16x16xf32>
    %360 = vector.shape_cast %359 : vector<1x1x16x16xf32> to vector<16x16xf32>
    %cst_412 = arith.constant dense<0.000000e+00> : vector<16x16xf32>
    %361 = tpu.matmul %358, %360, %cst_412 {dimension_numbers = #tpu.dot_dimension_numbers<[1], [0], [0], [1], [0, 0, 1, 1], [], []>} : vector<16x16xf32>, vector<16x16xf32>, vector<16x16xf32> -> vector<16x16xf32>
    %362 = arith.addf %355, %361 : vector<16x16xf32>
    %c2_413 = arith.constant 2 : index
    %c0_414 = arith.constant 0 : index
    %c0_415 = arith.constant 0 : index
    %363 = vector.load %arg1[%c2_413, %c0_414, %c0_415] : memref<18x16x16xf32, #tpu.memory_space<vmem>>, vector<1x16x16xf32>
    %364 = vector.shape_cast %363 : vector<1x16x16xf32> to vector<16x16xf32>
    %cst_416 = arith.constant dense<0.000000e+00> : vector<16x16xf32>
    %365 = tpu.matmul %364, %341, %cst_416 {dimension_numbers = #tpu.dot_dimension_numbers<[1], [0], [0], [1], [0, 0, 1, 1], [], []>} : vector<16x16xf32>, vector<16x16xf32>, vector<16x16xf32> -> vector<16x16xf32>
    %c2_417 = arith.constant 2 : index
    %c2_418 = arith.constant 2 : index
    %c0_419 = arith.constant 0 : index
    %c0_420 = arith.constant 0 : index
    %366 = vector.load %arg2[%c2_417, %c2_418, %c0_419, %c0_420] : memref<4x18x16x16xf32, #tpu.memory_space<vmem>>, vector<1x1x16x16xf32>
    %367 = vector.shape_cast %366 : vector<1x1x16x16xf32> to vector<16x16xf32>
    %cst_421 = arith.constant dense<0.000000e+00> : vector<16x16xf32>
    %368 = tpu.matmul %365, %367, %cst_421 {dimension_numbers = #tpu.dot_dimension_numbers<[1], [0], [0], [1], [0, 0, 1, 1], [], []>} : vector<16x16xf32>, vector<16x16xf32>, vector<16x16xf32> -> vector<16x16xf32>
    %369 = arith.addf %362, %368 : vector<16x16xf32>
    %c9_422 = arith.constant 9 : index
    %c0_423 = arith.constant 0 : index
    %c0_424 = arith.constant 0 : index
    %370 = vector.load %arg1[%c9_422, %c0_423, %c0_424] : memref<18x16x16xf32, #tpu.memory_space<vmem>>, vector<1x16x16xf32>
    %371 = vector.shape_cast %370 : vector<1x16x16xf32> to vector<16x16xf32>
    %cst_425 = arith.constant dense<0.000000e+00> : vector<16x16xf32>
    %372 = tpu.matmul %371, %236, %cst_425 {dimension_numbers = #tpu.dot_dimension_numbers<[1], [0], [0], [1], [0, 0, 1, 1], [], []>} : vector<16x16xf32>, vector<16x16xf32>, vector<16x16xf32> -> vector<16x16xf32>
    %c2_426 = arith.constant 2 : index
    %c9_427 = arith.constant 9 : index
    %c0_428 = arith.constant 0 : index
    %c0_429 = arith.constant 0 : index
    %373 = vector.load %arg2[%c2_426, %c9_427, %c0_428, %c0_429] : memref<4x18x16x16xf32, #tpu.memory_space<vmem>>, vector<1x1x16x16xf32>
    %374 = vector.shape_cast %373 : vector<1x1x16x16xf32> to vector<16x16xf32>
    %cst_430 = arith.constant dense<0.000000e+00> : vector<16x16xf32>
    %375 = tpu.matmul %372, %374, %cst_430 {dimension_numbers = #tpu.dot_dimension_numbers<[1], [0], [0], [1], [0, 0, 1, 1], [], []>} : vector<16x16xf32>, vector<16x16xf32>, vector<16x16xf32> -> vector<16x16xf32>
    %376 = arith.addf %369, %375 : vector<16x16xf32>
    %c10_431 = arith.constant 10 : index
    %c0_432 = arith.constant 0 : index
    %c0_433 = arith.constant 0 : index
    %377 = vector.load %arg1[%c10_431, %c0_432, %c0_433] : memref<18x16x16xf32, #tpu.memory_space<vmem>>, vector<1x16x16xf32>
    %378 = vector.shape_cast %377 : vector<1x16x16xf32> to vector<16x16xf32>
    %cst_434 = arith.constant dense<0.000000e+00> : vector<16x16xf32>
    %379 = tpu.matmul %378, %299, %cst_434 {dimension_numbers = #tpu.dot_dimension_numbers<[1], [0], [0], [1], [0, 0, 1, 1], [], []>} : vector<16x16xf32>, vector<16x16xf32>, vector<16x16xf32> -> vector<16x16xf32>
    %c2_435 = arith.constant 2 : index
    %c10_436 = arith.constant 10 : index
    %c0_437 = arith.constant 0 : index
    %c0_438 = arith.constant 0 : index
    %380 = vector.load %arg2[%c2_435, %c10_436, %c0_437, %c0_438] : memref<4x18x16x16xf32, #tpu.memory_space<vmem>>, vector<1x1x16x16xf32>
    %381 = vector.shape_cast %380 : vector<1x1x16x16xf32> to vector<16x16xf32>
    %cst_439 = arith.constant dense<0.000000e+00> : vector<16x16xf32>
    %382 = tpu.matmul %379, %381, %cst_439 {dimension_numbers = #tpu.dot_dimension_numbers<[1], [0], [0], [1], [0, 0, 1, 1], [], []>} : vector<16x16xf32>, vector<16x16xf32>, vector<16x16xf32> -> vector<16x16xf32>
    %383 = arith.addf %376, %382 : vector<16x16xf32>
    %c11_440 = arith.constant 11 : index
    %c0_441 = arith.constant 0 : index
    %c0_442 = arith.constant 0 : index
    %384 = vector.load %arg1[%c11_440, %c0_441, %c0_442] : memref<18x16x16xf32, #tpu.memory_space<vmem>>, vector<1x16x16xf32>
    %385 = vector.shape_cast %384 : vector<1x16x16xf32> to vector<16x16xf32>
    %cst_443 = arith.constant dense<0.000000e+00> : vector<16x16xf32>
    %386 = tpu.matmul %385, %341, %cst_443 {dimension_numbers = #tpu.dot_dimension_numbers<[1], [0], [0], [1], [0, 0, 1, 1], [], []>} : vector<16x16xf32>, vector<16x16xf32>, vector<16x16xf32> -> vector<16x16xf32>
    %c2_444 = arith.constant 2 : index
    %c11_445 = arith.constant 11 : index
    %c0_446 = arith.constant 0 : index
    %c0_447 = arith.constant 0 : index
    %387 = vector.load %arg2[%c2_444, %c11_445, %c0_446, %c0_447] : memref<4x18x16x16xf32, #tpu.memory_space<vmem>>, vector<1x1x16x16xf32>
    %388 = vector.shape_cast %387 : vector<1x1x16x16xf32> to vector<16x16xf32>
    %cst_448 = arith.constant dense<0.000000e+00> : vector<16x16xf32>
    %389 = tpu.matmul %386, %388, %cst_448 {dimension_numbers = #tpu.dot_dimension_numbers<[1], [0], [0], [1], [0, 0, 1, 1], [], []>} : vector<16x16xf32>, vector<16x16xf32>, vector<16x16xf32> -> vector<16x16xf32>
    %390 = arith.addf %383, %389 : vector<16x16xf32>
    %c17_449 = arith.constant 17 : index
    %c0_450 = arith.constant 0 : index
    %c0_451 = arith.constant 0 : index
    %391 = vector.load %arg1[%c17_449, %c0_450, %c0_451] : memref<18x16x16xf32, #tpu.memory_space<vmem>>, vector<1x16x16xf32>
    %392 = vector.shape_cast %391 : vector<1x16x16xf32> to vector<16x16xf32>
    %cst_452 = arith.constant dense<0.000000e+00> : vector<16x16xf32>
    %393 = tpu.matmul %392, %299, %cst_452 {dimension_numbers = #tpu.dot_dimension_numbers<[1], [0], [0], [1], [0, 0, 1, 1], [], []>} : vector<16x16xf32>, vector<16x16xf32>, vector<16x16xf32> -> vector<16x16xf32>
    %c2_453 = arith.constant 2 : index
    %c17_454 = arith.constant 17 : index
    %c0_455 = arith.constant 0 : index
    %c0_456 = arith.constant 0 : index
    %394 = vector.load %arg2[%c2_453, %c17_454, %c0_455, %c0_456] : memref<4x18x16x16xf32, #tpu.memory_space<vmem>>, vector<1x1x16x16xf32>
    %395 = vector.shape_cast %394 : vector<1x1x16x16xf32> to vector<16x16xf32>
    %cst_457 = arith.constant dense<0.000000e+00> : vector<16x16xf32>
    %396 = tpu.matmul %393, %395, %cst_457 {dimension_numbers = #tpu.dot_dimension_numbers<[1], [0], [0], [1], [0, 0, 1, 1], [], []>} : vector<16x16xf32>, vector<16x16xf32>, vector<16x16xf32> -> vector<16x16xf32>
    %397 = arith.addf %390, %396 : vector<16x16xf32>
    %cst_458 = arith.constant 5.000000e-01 : f32
    %398 = vector.broadcast %cst_458 : f32 to vector<16x16xf32>
    %399 = arith.mulf %398, %397 : vector<16x16xf32>
    %400 = math.tanh %399 : vector<16x16xf32>
    %cst_459 = arith.constant 1.000000e+00 : f32
    %401 = vector.broadcast %cst_459 : f32 to vector<16x16xf32>
    %402 = arith.addf %400, %401 : vector<16x16xf32>
    %cst_460 = arith.constant 5.000000e-01 : f32
    %403 = vector.broadcast %cst_460 : f32 to vector<16x16xf32>
    %404 = arith.mulf %403, %402 : vector<16x16xf32>
    %c2_461 = arith.constant 2 : index
    %c1_462 = arith.constant 1 : index
    %c0_463 = arith.constant 0 : index
    %c0_464 = arith.constant 0 : index
    %405 = vector.load %arg3[%c2_461, %c1_462, %c0_463, %c0_464] : memref<4x3x16x16xf32, #tpu.memory_space<vmem>>, vector<1x1x16x16xf32>
    %406 = vector.shape_cast %405 : vector<1x1x16x16xf32> to vector<16x16xf32>
    %cst_465 = arith.constant dense<0.000000e+00> : vector<16x16xf32>
    %407 = tpu.matmul %299, %406, %cst_465 {dimension_numbers = #tpu.dot_dimension_numbers<[1], [0], [0], [1], [0, 0, 1, 1], [], []>} : vector<16x16xf32>, vector<16x16xf32>, vector<16x16xf32> -> vector<16x16xf32>
    %c2_466 = arith.constant 2 : index
    %c1_467 = arith.constant 1 : index
    %c0_468 = arith.constant 0 : index
    %c0_469 = arith.constant 0 : index
    %408 = vector.load %arg4[%c2_466, %c1_467, %c0_468, %c0_469] : memref<4x3x1x16xf32, #tpu.memory_space<vmem>>, vector<1x1x1x16xf32>
    %409 = vector.shape_cast %408 : vector<1x1x1x16xf32> to vector<1x16xf32>
    %410 = vector.broadcast %409 : vector<1x16xf32> to vector<16x16xf32>
    %411 = arith.addf %407, %410 : vector<16x16xf32>
    %c3_470 = arith.constant 3 : index
    %c0_471 = arith.constant 0 : index
    %c0_472 = arith.constant 0 : index
    %412 = vector.load %arg1[%c3_470, %c0_471, %c0_472] : memref<18x16x16xf32, #tpu.memory_space<vmem>>, vector<1x16x16xf32>
    %413 = vector.shape_cast %412 : vector<1x16x16xf32> to vector<16x16xf32>
    %cst_473 = arith.constant dense<0.000000e+00> : vector<16x16xf32>
    %414 = tpu.matmul %413, %236, %cst_473 {dimension_numbers = #tpu.dot_dimension_numbers<[1], [0], [0], [1], [0, 0, 1, 1], [], []>} : vector<16x16xf32>, vector<16x16xf32>, vector<16x16xf32> -> vector<16x16xf32>
    %c2_474 = arith.constant 2 : index
    %c3_475 = arith.constant 3 : index
    %c0_476 = arith.constant 0 : index
    %c0_477 = arith.constant 0 : index
    %415 = vector.load %arg2[%c2_474, %c3_475, %c0_476, %c0_477] : memref<4x18x16x16xf32, #tpu.memory_space<vmem>>, vector<1x1x16x16xf32>
    %416 = vector.shape_cast %415 : vector<1x1x16x16xf32> to vector<16x16xf32>
    %cst_478 = arith.constant dense<0.000000e+00> : vector<16x16xf32>
    %417 = tpu.matmul %414, %416, %cst_478 {dimension_numbers = #tpu.dot_dimension_numbers<[1], [0], [0], [1], [0, 0, 1, 1], [], []>} : vector<16x16xf32>, vector<16x16xf32>, vector<16x16xf32> -> vector<16x16xf32>
    %418 = arith.addf %411, %417 : vector<16x16xf32>
    %c4_479 = arith.constant 4 : index
    %c0_480 = arith.constant 0 : index
    %c0_481 = arith.constant 0 : index
    %419 = vector.load %arg1[%c4_479, %c0_480, %c0_481] : memref<18x16x16xf32, #tpu.memory_space<vmem>>, vector<1x16x16xf32>
    %420 = vector.shape_cast %419 : vector<1x16x16xf32> to vector<16x16xf32>
    %cst_482 = arith.constant dense<0.000000e+00> : vector<16x16xf32>
    %421 = tpu.matmul %420, %299, %cst_482 {dimension_numbers = #tpu.dot_dimension_numbers<[1], [0], [0], [1], [0, 0, 1, 1], [], []>} : vector<16x16xf32>, vector<16x16xf32>, vector<16x16xf32> -> vector<16x16xf32>
    %c2_483 = arith.constant 2 : index
    %c4_484 = arith.constant 4 : index
    %c0_485 = arith.constant 0 : index
    %c0_486 = arith.constant 0 : index
    %422 = vector.load %arg2[%c2_483, %c4_484, %c0_485, %c0_486] : memref<4x18x16x16xf32, #tpu.memory_space<vmem>>, vector<1x1x16x16xf32>
    %423 = vector.shape_cast %422 : vector<1x1x16x16xf32> to vector<16x16xf32>
    %cst_487 = arith.constant dense<0.000000e+00> : vector<16x16xf32>
    %424 = tpu.matmul %421, %423, %cst_487 {dimension_numbers = #tpu.dot_dimension_numbers<[1], [0], [0], [1], [0, 0, 1, 1], [], []>} : vector<16x16xf32>, vector<16x16xf32>, vector<16x16xf32> -> vector<16x16xf32>
    %425 = arith.addf %418, %424 : vector<16x16xf32>
    %c5_488 = arith.constant 5 : index
    %c0_489 = arith.constant 0 : index
    %c0_490 = arith.constant 0 : index
    %426 = vector.load %arg1[%c5_488, %c0_489, %c0_490] : memref<18x16x16xf32, #tpu.memory_space<vmem>>, vector<1x16x16xf32>
    %427 = vector.shape_cast %426 : vector<1x16x16xf32> to vector<16x16xf32>
    %cst_491 = arith.constant dense<0.000000e+00> : vector<16x16xf32>
    %428 = tpu.matmul %427, %341, %cst_491 {dimension_numbers = #tpu.dot_dimension_numbers<[1], [0], [0], [1], [0, 0, 1, 1], [], []>} : vector<16x16xf32>, vector<16x16xf32>, vector<16x16xf32> -> vector<16x16xf32>
    %c2_492 = arith.constant 2 : index
    %c5_493 = arith.constant 5 : index
    %c0_494 = arith.constant 0 : index
    %c0_495 = arith.constant 0 : index
    %429 = vector.load %arg2[%c2_492, %c5_493, %c0_494, %c0_495] : memref<4x18x16x16xf32, #tpu.memory_space<vmem>>, vector<1x1x16x16xf32>
    %430 = vector.shape_cast %429 : vector<1x1x16x16xf32> to vector<16x16xf32>
    %cst_496 = arith.constant dense<0.000000e+00> : vector<16x16xf32>
    %431 = tpu.matmul %428, %430, %cst_496 {dimension_numbers = #tpu.dot_dimension_numbers<[1], [0], [0], [1], [0, 0, 1, 1], [], []>} : vector<16x16xf32>, vector<16x16xf32>, vector<16x16xf32> -> vector<16x16xf32>
    %432 = arith.addf %425, %431 : vector<16x16xf32>
    %c8_497 = arith.constant 8 : index
    %c0_498 = arith.constant 0 : index
    %c0_499 = arith.constant 0 : index
    %433 = vector.load %arg1[%c8_497, %c0_498, %c0_499] : memref<18x16x16xf32, #tpu.memory_space<vmem>>, vector<1x16x16xf32>
    %434 = vector.shape_cast %433 : vector<1x16x16xf32> to vector<16x16xf32>
    %cst_500 = arith.constant dense<0.000000e+00> : vector<16x16xf32>
    %435 = tpu.matmul %434, %236, %cst_500 {dimension_numbers = #tpu.dot_dimension_numbers<[1], [0], [0], [1], [0, 0, 1, 1], [], []>} : vector<16x16xf32>, vector<16x16xf32>, vector<16x16xf32> -> vector<16x16xf32>
    %c2_501 = arith.constant 2 : index
    %c8_502 = arith.constant 8 : index
    %c0_503 = arith.constant 0 : index
    %c0_504 = arith.constant 0 : index
    %436 = vector.load %arg2[%c2_501, %c8_502, %c0_503, %c0_504] : memref<4x18x16x16xf32, #tpu.memory_space<vmem>>, vector<1x1x16x16xf32>
    %437 = vector.shape_cast %436 : vector<1x1x16x16xf32> to vector<16x16xf32>
    %cst_505 = arith.constant dense<0.000000e+00> : vector<16x16xf32>
    %438 = tpu.matmul %435, %437, %cst_505 {dimension_numbers = #tpu.dot_dimension_numbers<[1], [0], [0], [1], [0, 0, 1, 1], [], []>} : vector<16x16xf32>, vector<16x16xf32>, vector<16x16xf32> -> vector<16x16xf32>
    %439 = arith.addf %432, %438 : vector<16x16xf32>
    %c12_506 = arith.constant 12 : index
    %c0_507 = arith.constant 0 : index
    %c0_508 = arith.constant 0 : index
    %440 = vector.load %arg1[%c12_506, %c0_507, %c0_508] : memref<18x16x16xf32, #tpu.memory_space<vmem>>, vector<1x16x16xf32>
    %441 = vector.shape_cast %440 : vector<1x16x16xf32> to vector<16x16xf32>
    %cst_509 = arith.constant dense<0.000000e+00> : vector<16x16xf32>
    %442 = tpu.matmul %441, %236, %cst_509 {dimension_numbers = #tpu.dot_dimension_numbers<[1], [0], [0], [1], [0, 0, 1, 1], [], []>} : vector<16x16xf32>, vector<16x16xf32>, vector<16x16xf32> -> vector<16x16xf32>
    %c2_510 = arith.constant 2 : index
    %c12_511 = arith.constant 12 : index
    %c0_512 = arith.constant 0 : index
    %c0_513 = arith.constant 0 : index
    %443 = vector.load %arg2[%c2_510, %c12_511, %c0_512, %c0_513] : memref<4x18x16x16xf32, #tpu.memory_space<vmem>>, vector<1x1x16x16xf32>
    %444 = vector.shape_cast %443 : vector<1x1x16x16xf32> to vector<16x16xf32>
    %cst_514 = arith.constant dense<0.000000e+00> : vector<16x16xf32>
    %445 = tpu.matmul %442, %444, %cst_514 {dimension_numbers = #tpu.dot_dimension_numbers<[1], [0], [0], [1], [0, 0, 1, 1], [], []>} : vector<16x16xf32>, vector<16x16xf32>, vector<16x16xf32> -> vector<16x16xf32>
    %446 = arith.addf %439, %445 : vector<16x16xf32>
    %c13_515 = arith.constant 13 : index
    %c0_516 = arith.constant 0 : index
    %c0_517 = arith.constant 0 : index
    %447 = vector.load %arg1[%c13_515, %c0_516, %c0_517] : memref<18x16x16xf32, #tpu.memory_space<vmem>>, vector<1x16x16xf32>
    %448 = vector.shape_cast %447 : vector<1x16x16xf32> to vector<16x16xf32>
    %cst_518 = arith.constant dense<0.000000e+00> : vector<16x16xf32>
    %449 = tpu.matmul %448, %299, %cst_518 {dimension_numbers = #tpu.dot_dimension_numbers<[1], [0], [0], [1], [0, 0, 1, 1], [], []>} : vector<16x16xf32>, vector<16x16xf32>, vector<16x16xf32> -> vector<16x16xf32>
    %c2_519 = arith.constant 2 : index
    %c13_520 = arith.constant 13 : index
    %c0_521 = arith.constant 0 : index
    %c0_522 = arith.constant 0 : index
    %450 = vector.load %arg2[%c2_519, %c13_520, %c0_521, %c0_522] : memref<4x18x16x16xf32, #tpu.memory_space<vmem>>, vector<1x1x16x16xf32>
    %451 = vector.shape_cast %450 : vector<1x1x16x16xf32> to vector<16x16xf32>
    %cst_523 = arith.constant dense<0.000000e+00> : vector<16x16xf32>
    %452 = tpu.matmul %449, %451, %cst_523 {dimension_numbers = #tpu.dot_dimension_numbers<[1], [0], [0], [1], [0, 0, 1, 1], [], []>} : vector<16x16xf32>, vector<16x16xf32>, vector<16x16xf32> -> vector<16x16xf32>
    %453 = arith.addf %446, %452 : vector<16x16xf32>
    %c14_524 = arith.constant 14 : index
    %c0_525 = arith.constant 0 : index
    %c0_526 = arith.constant 0 : index
    %454 = vector.load %arg1[%c14_524, %c0_525, %c0_526] : memref<18x16x16xf32, #tpu.memory_space<vmem>>, vector<1x16x16xf32>
    %455 = vector.shape_cast %454 : vector<1x16x16xf32> to vector<16x16xf32>
    %cst_527 = arith.constant dense<0.000000e+00> : vector<16x16xf32>
    %456 = tpu.matmul %455, %341, %cst_527 {dimension_numbers = #tpu.dot_dimension_numbers<[1], [0], [0], [1], [0, 0, 1, 1], [], []>} : vector<16x16xf32>, vector<16x16xf32>, vector<16x16xf32> -> vector<16x16xf32>
    %c2_528 = arith.constant 2 : index
    %c14_529 = arith.constant 14 : index
    %c0_530 = arith.constant 0 : index
    %c0_531 = arith.constant 0 : index
    %457 = vector.load %arg2[%c2_528, %c14_529, %c0_530, %c0_531] : memref<4x18x16x16xf32, #tpu.memory_space<vmem>>, vector<1x1x16x16xf32>
    %458 = vector.shape_cast %457 : vector<1x1x16x16xf32> to vector<16x16xf32>
    %cst_532 = arith.constant dense<0.000000e+00> : vector<16x16xf32>
    %459 = tpu.matmul %456, %458, %cst_532 {dimension_numbers = #tpu.dot_dimension_numbers<[1], [0], [0], [1], [0, 0, 1, 1], [], []>} : vector<16x16xf32>, vector<16x16xf32>, vector<16x16xf32> -> vector<16x16xf32>
    %460 = arith.addf %453, %459 : vector<16x16xf32>
    %cst_533 = arith.constant 5.000000e-01 : f32
    %461 = vector.broadcast %cst_533 : f32 to vector<16x16xf32>
    %462 = arith.mulf %461, %460 : vector<16x16xf32>
    %463 = math.tanh %462 : vector<16x16xf32>
    %cst_534 = arith.constant 1.000000e+00 : f32
    %464 = vector.broadcast %cst_534 : f32 to vector<16x16xf32>
    %465 = arith.addf %463, %464 : vector<16x16xf32>
    %cst_535 = arith.constant 5.000000e-01 : f32
    %466 = vector.broadcast %cst_535 : f32 to vector<16x16xf32>
    %467 = arith.mulf %466, %465 : vector<16x16xf32>
    %c2_536 = arith.constant 2 : index
    %c2_537 = arith.constant 2 : index
    %c0_538 = arith.constant 0 : index
    %c0_539 = arith.constant 0 : index
    %468 = vector.load %arg3[%c2_536, %c2_537, %c0_538, %c0_539] : memref<4x3x16x16xf32, #tpu.memory_space<vmem>>, vector<1x1x16x16xf32>
    %469 = vector.shape_cast %468 : vector<1x1x16x16xf32> to vector<16x16xf32>
    %cst_540 = arith.constant dense<0.000000e+00> : vector<16x16xf32>
    %470 = tpu.matmul %341, %469, %cst_540 {dimension_numbers = #tpu.dot_dimension_numbers<[1], [0], [0], [1], [0, 0, 1, 1], [], []>} : vector<16x16xf32>, vector<16x16xf32>, vector<16x16xf32> -> vector<16x16xf32>
    %c2_541 = arith.constant 2 : index
    %c2_542 = arith.constant 2 : index
    %c0_543 = arith.constant 0 : index
    %c0_544 = arith.constant 0 : index
    %471 = vector.load %arg4[%c2_541, %c2_542, %c0_543, %c0_544] : memref<4x3x1x16xf32, #tpu.memory_space<vmem>>, vector<1x1x1x16xf32>
    %472 = vector.shape_cast %471 : vector<1x1x1x16xf32> to vector<1x16xf32>
    %473 = vector.broadcast %472 : vector<1x16xf32> to vector<16x16xf32>
    %474 = arith.addf %470, %473 : vector<16x16xf32>
    %c6_545 = arith.constant 6 : index
    %c0_546 = arith.constant 0 : index
    %c0_547 = arith.constant 0 : index
    %475 = vector.load %arg1[%c6_545, %c0_546, %c0_547] : memref<18x16x16xf32, #tpu.memory_space<vmem>>, vector<1x16x16xf32>
    %476 = vector.shape_cast %475 : vector<1x16x16xf32> to vector<16x16xf32>
    %cst_548 = arith.constant dense<0.000000e+00> : vector<16x16xf32>
    %477 = tpu.matmul %476, %236, %cst_548 {dimension_numbers = #tpu.dot_dimension_numbers<[1], [0], [0], [1], [0, 0, 1, 1], [], []>} : vector<16x16xf32>, vector<16x16xf32>, vector<16x16xf32> -> vector<16x16xf32>
    %c2_549 = arith.constant 2 : index
    %c6_550 = arith.constant 6 : index
    %c0_551 = arith.constant 0 : index
    %c0_552 = arith.constant 0 : index
    %478 = vector.load %arg2[%c2_549, %c6_550, %c0_551, %c0_552] : memref<4x18x16x16xf32, #tpu.memory_space<vmem>>, vector<1x1x16x16xf32>
    %479 = vector.shape_cast %478 : vector<1x1x16x16xf32> to vector<16x16xf32>
    %cst_553 = arith.constant dense<0.000000e+00> : vector<16x16xf32>
    %480 = tpu.matmul %477, %479, %cst_553 {dimension_numbers = #tpu.dot_dimension_numbers<[1], [0], [0], [1], [0, 0, 1, 1], [], []>} : vector<16x16xf32>, vector<16x16xf32>, vector<16x16xf32> -> vector<16x16xf32>
    %481 = arith.addf %474, %480 : vector<16x16xf32>
    %c7_554 = arith.constant 7 : index
    %c0_555 = arith.constant 0 : index
    %c0_556 = arith.constant 0 : index
    %482 = vector.load %arg1[%c7_554, %c0_555, %c0_556] : memref<18x16x16xf32, #tpu.memory_space<vmem>>, vector<1x16x16xf32>
    %483 = vector.shape_cast %482 : vector<1x16x16xf32> to vector<16x16xf32>
    %cst_557 = arith.constant dense<0.000000e+00> : vector<16x16xf32>
    %484 = tpu.matmul %483, %299, %cst_557 {dimension_numbers = #tpu.dot_dimension_numbers<[1], [0], [0], [1], [0, 0, 1, 1], [], []>} : vector<16x16xf32>, vector<16x16xf32>, vector<16x16xf32> -> vector<16x16xf32>
    %c2_558 = arith.constant 2 : index
    %c7_559 = arith.constant 7 : index
    %c0_560 = arith.constant 0 : index
    %c0_561 = arith.constant 0 : index
    %485 = vector.load %arg2[%c2_558, %c7_559, %c0_560, %c0_561] : memref<4x18x16x16xf32, #tpu.memory_space<vmem>>, vector<1x1x16x16xf32>
    %486 = vector.shape_cast %485 : vector<1x1x16x16xf32> to vector<16x16xf32>
    %cst_562 = arith.constant dense<0.000000e+00> : vector<16x16xf32>
    %487 = tpu.matmul %484, %486, %cst_562 {dimension_numbers = #tpu.dot_dimension_numbers<[1], [0], [0], [1], [0, 0, 1, 1], [], []>} : vector<16x16xf32>, vector<16x16xf32>, vector<16x16xf32> -> vector<16x16xf32>
    %488 = arith.addf %481, %487 : vector<16x16xf32>
    %c15_563 = arith.constant 15 : index
    %c0_564 = arith.constant 0 : index
    %c0_565 = arith.constant 0 : index
    %489 = vector.load %arg1[%c15_563, %c0_564, %c0_565] : memref<18x16x16xf32, #tpu.memory_space<vmem>>, vector<1x16x16xf32>
    %490 = vector.shape_cast %489 : vector<1x16x16xf32> to vector<16x16xf32>
    %cst_566 = arith.constant dense<0.000000e+00> : vector<16x16xf32>
    %491 = tpu.matmul %490, %236, %cst_566 {dimension_numbers = #tpu.dot_dimension_numbers<[1], [0], [0], [1], [0, 0, 1, 1], [], []>} : vector<16x16xf32>, vector<16x16xf32>, vector<16x16xf32> -> vector<16x16xf32>
    %c2_567 = arith.constant 2 : index
    %c15_568 = arith.constant 15 : index
    %c0_569 = arith.constant 0 : index
    %c0_570 = arith.constant 0 : index
    %492 = vector.load %arg2[%c2_567, %c15_568, %c0_569, %c0_570] : memref<4x18x16x16xf32, #tpu.memory_space<vmem>>, vector<1x1x16x16xf32>
    %493 = vector.shape_cast %492 : vector<1x1x16x16xf32> to vector<16x16xf32>
    %cst_571 = arith.constant dense<0.000000e+00> : vector<16x16xf32>
    %494 = tpu.matmul %491, %493, %cst_571 {dimension_numbers = #tpu.dot_dimension_numbers<[1], [0], [0], [1], [0, 0, 1, 1], [], []>} : vector<16x16xf32>, vector<16x16xf32>, vector<16x16xf32> -> vector<16x16xf32>
    %495 = arith.addf %488, %494 : vector<16x16xf32>
    %c16_572 = arith.constant 16 : index
    %c0_573 = arith.constant 0 : index
    %c0_574 = arith.constant 0 : index
    %496 = vector.load %arg1[%c16_572, %c0_573, %c0_574] : memref<18x16x16xf32, #tpu.memory_space<vmem>>, vector<1x16x16xf32>
    %497 = vector.shape_cast %496 : vector<1x16x16xf32> to vector<16x16xf32>
    %cst_575 = arith.constant dense<0.000000e+00> : vector<16x16xf32>
    %498 = tpu.matmul %497, %299, %cst_575 {dimension_numbers = #tpu.dot_dimension_numbers<[1], [0], [0], [1], [0, 0, 1, 1], [], []>} : vector<16x16xf32>, vector<16x16xf32>, vector<16x16xf32> -> vector<16x16xf32>
    %c2_576 = arith.constant 2 : index
    %c16_577 = arith.constant 16 : index
    %c0_578 = arith.constant 0 : index
    %c0_579 = arith.constant 0 : index
    %499 = vector.load %arg2[%c2_576, %c16_577, %c0_578, %c0_579] : memref<4x18x16x16xf32, #tpu.memory_space<vmem>>, vector<1x1x16x16xf32>
    %500 = vector.shape_cast %499 : vector<1x1x16x16xf32> to vector<16x16xf32>
    %cst_580 = arith.constant dense<0.000000e+00> : vector<16x16xf32>
    %501 = tpu.matmul %498, %500, %cst_580 {dimension_numbers = #tpu.dot_dimension_numbers<[1], [0], [0], [1], [0, 0, 1, 1], [], []>} : vector<16x16xf32>, vector<16x16xf32>, vector<16x16xf32> -> vector<16x16xf32>
    %502 = arith.addf %495, %501 : vector<16x16xf32>
    %cst_581 = arith.constant 5.000000e-01 : f32
    %503 = vector.broadcast %cst_581 : f32 to vector<16x16xf32>
    %504 = arith.mulf %503, %502 : vector<16x16xf32>
    %505 = math.tanh %504 : vector<16x16xf32>
    %cst_582 = arith.constant 1.000000e+00 : f32
    %506 = vector.broadcast %cst_582 : f32 to vector<16x16xf32>
    %507 = arith.addf %505, %506 : vector<16x16xf32>
    %cst_583 = arith.constant 5.000000e-01 : f32
    %508 = vector.broadcast %cst_583 : f32 to vector<16x16xf32>
    %509 = arith.mulf %508, %507 : vector<16x16xf32>
    %c3_584 = arith.constant 3 : index
    %c0_585 = arith.constant 0 : index
    %c0_586 = arith.constant 0 : index
    %c0_587 = arith.constant 0 : index
    %510 = vector.load %arg3[%c3_584, %c0_585, %c0_586, %c0_587] : memref<4x3x16x16xf32, #tpu.memory_space<vmem>>, vector<1x1x16x16xf32>
    %511 = vector.shape_cast %510 : vector<1x1x16x16xf32> to vector<16x16xf32>
    %cst_588 = arith.constant dense<0.000000e+00> : vector<16x16xf32>
    %512 = tpu.matmul %404, %511, %cst_588 {dimension_numbers = #tpu.dot_dimension_numbers<[1], [0], [0], [1], [0, 0, 1, 1], [], []>} : vector<16x16xf32>, vector<16x16xf32>, vector<16x16xf32> -> vector<16x16xf32>
    %c3_589 = arith.constant 3 : index
    %c0_590 = arith.constant 0 : index
    %c0_591 = arith.constant 0 : index
    %c0_592 = arith.constant 0 : index
    %513 = vector.load %arg4[%c3_589, %c0_590, %c0_591, %c0_592] : memref<4x3x1x16xf32, #tpu.memory_space<vmem>>, vector<1x1x1x16xf32>
    %514 = vector.shape_cast %513 : vector<1x1x1x16xf32> to vector<1x16xf32>
    %515 = vector.broadcast %514 : vector<1x16xf32> to vector<16x16xf32>
    %516 = arith.addf %512, %515 : vector<16x16xf32>
    %c0_593 = arith.constant 0 : index
    %c0_594 = arith.constant 0 : index
    %c0_595 = arith.constant 0 : index
    %517 = vector.load %arg1[%c0_593, %c0_594, %c0_595] : memref<18x16x16xf32, #tpu.memory_space<vmem>>, vector<1x16x16xf32>
    %518 = vector.shape_cast %517 : vector<1x16x16xf32> to vector<16x16xf32>
    %cst_596 = arith.constant dense<0.000000e+00> : vector<16x16xf32>
    %519 = tpu.matmul %518, %404, %cst_596 {dimension_numbers = #tpu.dot_dimension_numbers<[1], [0], [0], [1], [0, 0, 1, 1], [], []>} : vector<16x16xf32>, vector<16x16xf32>, vector<16x16xf32> -> vector<16x16xf32>
    %c3_597 = arith.constant 3 : index
    %c0_598 = arith.constant 0 : index
    %c0_599 = arith.constant 0 : index
    %c0_600 = arith.constant 0 : index
    %520 = vector.load %arg2[%c3_597, %c0_598, %c0_599, %c0_600] : memref<4x18x16x16xf32, #tpu.memory_space<vmem>>, vector<1x1x16x16xf32>
    %521 = vector.shape_cast %520 : vector<1x1x16x16xf32> to vector<16x16xf32>
    %cst_601 = arith.constant dense<0.000000e+00> : vector<16x16xf32>
    %522 = tpu.matmul %519, %521, %cst_601 {dimension_numbers = #tpu.dot_dimension_numbers<[1], [0], [0], [1], [0, 0, 1, 1], [], []>} : vector<16x16xf32>, vector<16x16xf32>, vector<16x16xf32> -> vector<16x16xf32>
    %523 = arith.addf %516, %522 : vector<16x16xf32>
    %c1_602 = arith.constant 1 : index
    %c0_603 = arith.constant 0 : index
    %c0_604 = arith.constant 0 : index
    %524 = vector.load %arg1[%c1_602, %c0_603, %c0_604] : memref<18x16x16xf32, #tpu.memory_space<vmem>>, vector<1x16x16xf32>
    %525 = vector.shape_cast %524 : vector<1x16x16xf32> to vector<16x16xf32>
    %cst_605 = arith.constant dense<0.000000e+00> : vector<16x16xf32>
    %526 = tpu.matmul %525, %467, %cst_605 {dimension_numbers = #tpu.dot_dimension_numbers<[1], [0], [0], [1], [0, 0, 1, 1], [], []>} : vector<16x16xf32>, vector<16x16xf32>, vector<16x16xf32> -> vector<16x16xf32>
    %c3_606 = arith.constant 3 : index
    %c1_607 = arith.constant 1 : index
    %c0_608 = arith.constant 0 : index
    %c0_609 = arith.constant 0 : index
    %527 = vector.load %arg2[%c3_606, %c1_607, %c0_608, %c0_609] : memref<4x18x16x16xf32, #tpu.memory_space<vmem>>, vector<1x1x16x16xf32>
    %528 = vector.shape_cast %527 : vector<1x1x16x16xf32> to vector<16x16xf32>
    %cst_610 = arith.constant dense<0.000000e+00> : vector<16x16xf32>
    %529 = tpu.matmul %526, %528, %cst_610 {dimension_numbers = #tpu.dot_dimension_numbers<[1], [0], [0], [1], [0, 0, 1, 1], [], []>} : vector<16x16xf32>, vector<16x16xf32>, vector<16x16xf32> -> vector<16x16xf32>
    %530 = arith.addf %523, %529 : vector<16x16xf32>
    %c2_611 = arith.constant 2 : index
    %c0_612 = arith.constant 0 : index
    %c0_613 = arith.constant 0 : index
    %531 = vector.load %arg1[%c2_611, %c0_612, %c0_613] : memref<18x16x16xf32, #tpu.memory_space<vmem>>, vector<1x16x16xf32>
    %532 = vector.shape_cast %531 : vector<1x16x16xf32> to vector<16x16xf32>
    %cst_614 = arith.constant dense<0.000000e+00> : vector<16x16xf32>
    %533 = tpu.matmul %532, %509, %cst_614 {dimension_numbers = #tpu.dot_dimension_numbers<[1], [0], [0], [1], [0, 0, 1, 1], [], []>} : vector<16x16xf32>, vector<16x16xf32>, vector<16x16xf32> -> vector<16x16xf32>
    %c3_615 = arith.constant 3 : index
    %c2_616 = arith.constant 2 : index
    %c0_617 = arith.constant 0 : index
    %c0_618 = arith.constant 0 : index
    %534 = vector.load %arg2[%c3_615, %c2_616, %c0_617, %c0_618] : memref<4x18x16x16xf32, #tpu.memory_space<vmem>>, vector<1x1x16x16xf32>
    %535 = vector.shape_cast %534 : vector<1x1x16x16xf32> to vector<16x16xf32>
    %cst_619 = arith.constant dense<0.000000e+00> : vector<16x16xf32>
    %536 = tpu.matmul %533, %535, %cst_619 {dimension_numbers = #tpu.dot_dimension_numbers<[1], [0], [0], [1], [0, 0, 1, 1], [], []>} : vector<16x16xf32>, vector<16x16xf32>, vector<16x16xf32> -> vector<16x16xf32>
    %537 = arith.addf %530, %536 : vector<16x16xf32>
    %c9_620 = arith.constant 9 : index
    %c0_621 = arith.constant 0 : index
    %c0_622 = arith.constant 0 : index
    %538 = vector.load %arg1[%c9_620, %c0_621, %c0_622] : memref<18x16x16xf32, #tpu.memory_space<vmem>>, vector<1x16x16xf32>
    %539 = vector.shape_cast %538 : vector<1x16x16xf32> to vector<16x16xf32>
    %cst_623 = arith.constant dense<0.000000e+00> : vector<16x16xf32>
    %540 = tpu.matmul %539, %404, %cst_623 {dimension_numbers = #tpu.dot_dimension_numbers<[1], [0], [0], [1], [0, 0, 1, 1], [], []>} : vector<16x16xf32>, vector<16x16xf32>, vector<16x16xf32> -> vector<16x16xf32>
    %c3_624 = arith.constant 3 : index
    %c9_625 = arith.constant 9 : index
    %c0_626 = arith.constant 0 : index
    %c0_627 = arith.constant 0 : index
    %541 = vector.load %arg2[%c3_624, %c9_625, %c0_626, %c0_627] : memref<4x18x16x16xf32, #tpu.memory_space<vmem>>, vector<1x1x16x16xf32>
    %542 = vector.shape_cast %541 : vector<1x1x16x16xf32> to vector<16x16xf32>
    %cst_628 = arith.constant dense<0.000000e+00> : vector<16x16xf32>
    %543 = tpu.matmul %540, %542, %cst_628 {dimension_numbers = #tpu.dot_dimension_numbers<[1], [0], [0], [1], [0, 0, 1, 1], [], []>} : vector<16x16xf32>, vector<16x16xf32>, vector<16x16xf32> -> vector<16x16xf32>
    %544 = arith.addf %537, %543 : vector<16x16xf32>
    %c10_629 = arith.constant 10 : index
    %c0_630 = arith.constant 0 : index
    %c0_631 = arith.constant 0 : index
    %545 = vector.load %arg1[%c10_629, %c0_630, %c0_631] : memref<18x16x16xf32, #tpu.memory_space<vmem>>, vector<1x16x16xf32>
    %546 = vector.shape_cast %545 : vector<1x16x16xf32> to vector<16x16xf32>
    %cst_632 = arith.constant dense<0.000000e+00> : vector<16x16xf32>
    %547 = tpu.matmul %546, %467, %cst_632 {dimension_numbers = #tpu.dot_dimension_numbers<[1], [0], [0], [1], [0, 0, 1, 1], [], []>} : vector<16x16xf32>, vector<16x16xf32>, vector<16x16xf32> -> vector<16x16xf32>
    %c3_633 = arith.constant 3 : index
    %c10_634 = arith.constant 10 : index
    %c0_635 = arith.constant 0 : index
    %c0_636 = arith.constant 0 : index
    %548 = vector.load %arg2[%c3_633, %c10_634, %c0_635, %c0_636] : memref<4x18x16x16xf32, #tpu.memory_space<vmem>>, vector<1x1x16x16xf32>
    %549 = vector.shape_cast %548 : vector<1x1x16x16xf32> to vector<16x16xf32>
    %cst_637 = arith.constant dense<0.000000e+00> : vector<16x16xf32>
    %550 = tpu.matmul %547, %549, %cst_637 {dimension_numbers = #tpu.dot_dimension_numbers<[1], [0], [0], [1], [0, 0, 1, 1], [], []>} : vector<16x16xf32>, vector<16x16xf32>, vector<16x16xf32> -> vector<16x16xf32>
    %551 = arith.addf %544, %550 : vector<16x16xf32>
    %c11_638 = arith.constant 11 : index
    %c0_639 = arith.constant 0 : index
    %c0_640 = arith.constant 0 : index
    %552 = vector.load %arg1[%c11_638, %c0_639, %c0_640] : memref<18x16x16xf32, #tpu.memory_space<vmem>>, vector<1x16x16xf32>
    %553 = vector.shape_cast %552 : vector<1x16x16xf32> to vector<16x16xf32>
    %cst_641 = arith.constant dense<0.000000e+00> : vector<16x16xf32>
    %554 = tpu.matmul %553, %509, %cst_641 {dimension_numbers = #tpu.dot_dimension_numbers<[1], [0], [0], [1], [0, 0, 1, 1], [], []>} : vector<16x16xf32>, vector<16x16xf32>, vector<16x16xf32> -> vector<16x16xf32>
    %c3_642 = arith.constant 3 : index
    %c11_643 = arith.constant 11 : index
    %c0_644 = arith.constant 0 : index
    %c0_645 = arith.constant 0 : index
    %555 = vector.load %arg2[%c3_642, %c11_643, %c0_644, %c0_645] : memref<4x18x16x16xf32, #tpu.memory_space<vmem>>, vector<1x1x16x16xf32>
    %556 = vector.shape_cast %555 : vector<1x1x16x16xf32> to vector<16x16xf32>
    %cst_646 = arith.constant dense<0.000000e+00> : vector<16x16xf32>
    %557 = tpu.matmul %554, %556, %cst_646 {dimension_numbers = #tpu.dot_dimension_numbers<[1], [0], [0], [1], [0, 0, 1, 1], [], []>} : vector<16x16xf32>, vector<16x16xf32>, vector<16x16xf32> -> vector<16x16xf32>
    %558 = arith.addf %551, %557 : vector<16x16xf32>
    %c17_647 = arith.constant 17 : index
    %c0_648 = arith.constant 0 : index
    %c0_649 = arith.constant 0 : index
    %559 = vector.load %arg1[%c17_647, %c0_648, %c0_649] : memref<18x16x16xf32, #tpu.memory_space<vmem>>, vector<1x16x16xf32>
    %560 = vector.shape_cast %559 : vector<1x16x16xf32> to vector<16x16xf32>
    %cst_650 = arith.constant dense<0.000000e+00> : vector<16x16xf32>
    %561 = tpu.matmul %560, %467, %cst_650 {dimension_numbers = #tpu.dot_dimension_numbers<[1], [0], [0], [1], [0, 0, 1, 1], [], []>} : vector<16x16xf32>, vector<16x16xf32>, vector<16x16xf32> -> vector<16x16xf32>
    %c3_651 = arith.constant 3 : index
    %c17_652 = arith.constant 17 : index
    %c0_653 = arith.constant 0 : index
    %c0_654 = arith.constant 0 : index
    %562 = vector.load %arg2[%c3_651, %c17_652, %c0_653, %c0_654] : memref<4x18x16x16xf32, #tpu.memory_space<vmem>>, vector<1x1x16x16xf32>
    %563 = vector.shape_cast %562 : vector<1x1x16x16xf32> to vector<16x16xf32>
    %cst_655 = arith.constant dense<0.000000e+00> : vector<16x16xf32>
    %564 = tpu.matmul %561, %563, %cst_655 {dimension_numbers = #tpu.dot_dimension_numbers<[1], [0], [0], [1], [0, 0, 1, 1], [], []>} : vector<16x16xf32>, vector<16x16xf32>, vector<16x16xf32> -> vector<16x16xf32>
    %565 = arith.addf %558, %564 : vector<16x16xf32>
    %cst_656 = arith.constant 5.000000e-01 : f32
    %566 = vector.broadcast %cst_656 : f32 to vector<16x16xf32>
    %567 = arith.mulf %566, %565 : vector<16x16xf32>
    %568 = math.tanh %567 : vector<16x16xf32>
    %cst_657 = arith.constant 1.000000e+00 : f32
    %569 = vector.broadcast %cst_657 : f32 to vector<16x16xf32>
    %570 = arith.addf %568, %569 : vector<16x16xf32>
    %cst_658 = arith.constant 5.000000e-01 : f32
    %571 = vector.broadcast %cst_658 : f32 to vector<16x16xf32>
    %572 = arith.mulf %571, %570 : vector<16x16xf32>
    %c3_659 = arith.constant 3 : index
    %c1_660 = arith.constant 1 : index
    %c0_661 = arith.constant 0 : index
    %c0_662 = arith.constant 0 : index
    %573 = vector.load %arg3[%c3_659, %c1_660, %c0_661, %c0_662] : memref<4x3x16x16xf32, #tpu.memory_space<vmem>>, vector<1x1x16x16xf32>
    %574 = vector.shape_cast %573 : vector<1x1x16x16xf32> to vector<16x16xf32>
    %cst_663 = arith.constant dense<0.000000e+00> : vector<16x16xf32>
    %575 = tpu.matmul %467, %574, %cst_663 {dimension_numbers = #tpu.dot_dimension_numbers<[1], [0], [0], [1], [0, 0, 1, 1], [], []>} : vector<16x16xf32>, vector<16x16xf32>, vector<16x16xf32> -> vector<16x16xf32>
    %c3_664 = arith.constant 3 : index
    %c1_665 = arith.constant 1 : index
    %c0_666 = arith.constant 0 : index
    %c0_667 = arith.constant 0 : index
    %576 = vector.load %arg4[%c3_664, %c1_665, %c0_666, %c0_667] : memref<4x3x1x16xf32, #tpu.memory_space<vmem>>, vector<1x1x1x16xf32>
    %577 = vector.shape_cast %576 : vector<1x1x1x16xf32> to vector<1x16xf32>
    %578 = vector.broadcast %577 : vector<1x16xf32> to vector<16x16xf32>
    %579 = arith.addf %575, %578 : vector<16x16xf32>
    %c3_668 = arith.constant 3 : index
    %c0_669 = arith.constant 0 : index
    %c0_670 = arith.constant 0 : index
    %580 = vector.load %arg1[%c3_668, %c0_669, %c0_670] : memref<18x16x16xf32, #tpu.memory_space<vmem>>, vector<1x16x16xf32>
    %581 = vector.shape_cast %580 : vector<1x16x16xf32> to vector<16x16xf32>
    %cst_671 = arith.constant dense<0.000000e+00> : vector<16x16xf32>
    %582 = tpu.matmul %581, %404, %cst_671 {dimension_numbers = #tpu.dot_dimension_numbers<[1], [0], [0], [1], [0, 0, 1, 1], [], []>} : vector<16x16xf32>, vector<16x16xf32>, vector<16x16xf32> -> vector<16x16xf32>
    %c3_672 = arith.constant 3 : index
    %c3_673 = arith.constant 3 : index
    %c0_674 = arith.constant 0 : index
    %c0_675 = arith.constant 0 : index
    %583 = vector.load %arg2[%c3_672, %c3_673, %c0_674, %c0_675] : memref<4x18x16x16xf32, #tpu.memory_space<vmem>>, vector<1x1x16x16xf32>
    %584 = vector.shape_cast %583 : vector<1x1x16x16xf32> to vector<16x16xf32>
    %cst_676 = arith.constant dense<0.000000e+00> : vector<16x16xf32>
    %585 = tpu.matmul %582, %584, %cst_676 {dimension_numbers = #tpu.dot_dimension_numbers<[1], [0], [0], [1], [0, 0, 1, 1], [], []>} : vector<16x16xf32>, vector<16x16xf32>, vector<16x16xf32> -> vector<16x16xf32>
    %586 = arith.addf %579, %585 : vector<16x16xf32>
    %c4_677 = arith.constant 4 : index
    %c0_678 = arith.constant 0 : index
    %c0_679 = arith.constant 0 : index
    %587 = vector.load %arg1[%c4_677, %c0_678, %c0_679] : memref<18x16x16xf32, #tpu.memory_space<vmem>>, vector<1x16x16xf32>
    %588 = vector.shape_cast %587 : vector<1x16x16xf32> to vector<16x16xf32>
    %cst_680 = arith.constant dense<0.000000e+00> : vector<16x16xf32>
    %589 = tpu.matmul %588, %467, %cst_680 {dimension_numbers = #tpu.dot_dimension_numbers<[1], [0], [0], [1], [0, 0, 1, 1], [], []>} : vector<16x16xf32>, vector<16x16xf32>, vector<16x16xf32> -> vector<16x16xf32>
    %c3_681 = arith.constant 3 : index
    %c4_682 = arith.constant 4 : index
    %c0_683 = arith.constant 0 : index
    %c0_684 = arith.constant 0 : index
    %590 = vector.load %arg2[%c3_681, %c4_682, %c0_683, %c0_684] : memref<4x18x16x16xf32, #tpu.memory_space<vmem>>, vector<1x1x16x16xf32>
    %591 = vector.shape_cast %590 : vector<1x1x16x16xf32> to vector<16x16xf32>
    %cst_685 = arith.constant dense<0.000000e+00> : vector<16x16xf32>
    %592 = tpu.matmul %589, %591, %cst_685 {dimension_numbers = #tpu.dot_dimension_numbers<[1], [0], [0], [1], [0, 0, 1, 1], [], []>} : vector<16x16xf32>, vector<16x16xf32>, vector<16x16xf32> -> vector<16x16xf32>
    %593 = arith.addf %586, %592 : vector<16x16xf32>
    %c5_686 = arith.constant 5 : index
    %c0_687 = arith.constant 0 : index
    %c0_688 = arith.constant 0 : index
    %594 = vector.load %arg1[%c5_686, %c0_687, %c0_688] : memref<18x16x16xf32, #tpu.memory_space<vmem>>, vector<1x16x16xf32>
    %595 = vector.shape_cast %594 : vector<1x16x16xf32> to vector<16x16xf32>
    %cst_689 = arith.constant dense<0.000000e+00> : vector<16x16xf32>
    %596 = tpu.matmul %595, %509, %cst_689 {dimension_numbers = #tpu.dot_dimension_numbers<[1], [0], [0], [1], [0, 0, 1, 1], [], []>} : vector<16x16xf32>, vector<16x16xf32>, vector<16x16xf32> -> vector<16x16xf32>
    %c3_690 = arith.constant 3 : index
    %c5_691 = arith.constant 5 : index
    %c0_692 = arith.constant 0 : index
    %c0_693 = arith.constant 0 : index
    %597 = vector.load %arg2[%c3_690, %c5_691, %c0_692, %c0_693] : memref<4x18x16x16xf32, #tpu.memory_space<vmem>>, vector<1x1x16x16xf32>
    %598 = vector.shape_cast %597 : vector<1x1x16x16xf32> to vector<16x16xf32>
    %cst_694 = arith.constant dense<0.000000e+00> : vector<16x16xf32>
    %599 = tpu.matmul %596, %598, %cst_694 {dimension_numbers = #tpu.dot_dimension_numbers<[1], [0], [0], [1], [0, 0, 1, 1], [], []>} : vector<16x16xf32>, vector<16x16xf32>, vector<16x16xf32> -> vector<16x16xf32>
    %600 = arith.addf %593, %599 : vector<16x16xf32>
    %c8_695 = arith.constant 8 : index
    %c0_696 = arith.constant 0 : index
    %c0_697 = arith.constant 0 : index
    %601 = vector.load %arg1[%c8_695, %c0_696, %c0_697] : memref<18x16x16xf32, #tpu.memory_space<vmem>>, vector<1x16x16xf32>
    %602 = vector.shape_cast %601 : vector<1x16x16xf32> to vector<16x16xf32>
    %cst_698 = arith.constant dense<0.000000e+00> : vector<16x16xf32>
    %603 = tpu.matmul %602, %404, %cst_698 {dimension_numbers = #tpu.dot_dimension_numbers<[1], [0], [0], [1], [0, 0, 1, 1], [], []>} : vector<16x16xf32>, vector<16x16xf32>, vector<16x16xf32> -> vector<16x16xf32>
    %c3_699 = arith.constant 3 : index
    %c8_700 = arith.constant 8 : index
    %c0_701 = arith.constant 0 : index
    %c0_702 = arith.constant 0 : index
    %604 = vector.load %arg2[%c3_699, %c8_700, %c0_701, %c0_702] : memref<4x18x16x16xf32, #tpu.memory_space<vmem>>, vector<1x1x16x16xf32>
    %605 = vector.shape_cast %604 : vector<1x1x16x16xf32> to vector<16x16xf32>
    %cst_703 = arith.constant dense<0.000000e+00> : vector<16x16xf32>
    %606 = tpu.matmul %603, %605, %cst_703 {dimension_numbers = #tpu.dot_dimension_numbers<[1], [0], [0], [1], [0, 0, 1, 1], [], []>} : vector<16x16xf32>, vector<16x16xf32>, vector<16x16xf32> -> vector<16x16xf32>
    %607 = arith.addf %600, %606 : vector<16x16xf32>
    %c12_704 = arith.constant 12 : index
    %c0_705 = arith.constant 0 : index
    %c0_706 = arith.constant 0 : index
    %608 = vector.load %arg1[%c12_704, %c0_705, %c0_706] : memref<18x16x16xf32, #tpu.memory_space<vmem>>, vector<1x16x16xf32>
    %609 = vector.shape_cast %608 : vector<1x16x16xf32> to vector<16x16xf32>
    %cst_707 = arith.constant dense<0.000000e+00> : vector<16x16xf32>
    %610 = tpu.matmul %609, %404, %cst_707 {dimension_numbers = #tpu.dot_dimension_numbers<[1], [0], [0], [1], [0, 0, 1, 1], [], []>} : vector<16x16xf32>, vector<16x16xf32>, vector<16x16xf32> -> vector<16x16xf32>
    %c3_708 = arith.constant 3 : index
    %c12_709 = arith.constant 12 : index
    %c0_710 = arith.constant 0 : index
    %c0_711 = arith.constant 0 : index
    %611 = vector.load %arg2[%c3_708, %c12_709, %c0_710, %c0_711] : memref<4x18x16x16xf32, #tpu.memory_space<vmem>>, vector<1x1x16x16xf32>
    %612 = vector.shape_cast %611 : vector<1x1x16x16xf32> to vector<16x16xf32>
    %cst_712 = arith.constant dense<0.000000e+00> : vector<16x16xf32>
    %613 = tpu.matmul %610, %612, %cst_712 {dimension_numbers = #tpu.dot_dimension_numbers<[1], [0], [0], [1], [0, 0, 1, 1], [], []>} : vector<16x16xf32>, vector<16x16xf32>, vector<16x16xf32> -> vector<16x16xf32>
    %614 = arith.addf %607, %613 : vector<16x16xf32>
    %c13_713 = arith.constant 13 : index
    %c0_714 = arith.constant 0 : index
    %c0_715 = arith.constant 0 : index
    %615 = vector.load %arg1[%c13_713, %c0_714, %c0_715] : memref<18x16x16xf32, #tpu.memory_space<vmem>>, vector<1x16x16xf32>
    %616 = vector.shape_cast %615 : vector<1x16x16xf32> to vector<16x16xf32>
    %cst_716 = arith.constant dense<0.000000e+00> : vector<16x16xf32>
    %617 = tpu.matmul %616, %467, %cst_716 {dimension_numbers = #tpu.dot_dimension_numbers<[1], [0], [0], [1], [0, 0, 1, 1], [], []>} : vector<16x16xf32>, vector<16x16xf32>, vector<16x16xf32> -> vector<16x16xf32>
    %c3_717 = arith.constant 3 : index
    %c13_718 = arith.constant 13 : index
    %c0_719 = arith.constant 0 : index
    %c0_720 = arith.constant 0 : index
    %618 = vector.load %arg2[%c3_717, %c13_718, %c0_719, %c0_720] : memref<4x18x16x16xf32, #tpu.memory_space<vmem>>, vector<1x1x16x16xf32>
    %619 = vector.shape_cast %618 : vector<1x1x16x16xf32> to vector<16x16xf32>
    %cst_721 = arith.constant dense<0.000000e+00> : vector<16x16xf32>
    %620 = tpu.matmul %617, %619, %cst_721 {dimension_numbers = #tpu.dot_dimension_numbers<[1], [0], [0], [1], [0, 0, 1, 1], [], []>} : vector<16x16xf32>, vector<16x16xf32>, vector<16x16xf32> -> vector<16x16xf32>
    %621 = arith.addf %614, %620 : vector<16x16xf32>
    %c14_722 = arith.constant 14 : index
    %c0_723 = arith.constant 0 : index
    %c0_724 = arith.constant 0 : index
    %622 = vector.load %arg1[%c14_722, %c0_723, %c0_724] : memref<18x16x16xf32, #tpu.memory_space<vmem>>, vector<1x16x16xf32>
    %623 = vector.shape_cast %622 : vector<1x16x16xf32> to vector<16x16xf32>
    %cst_725 = arith.constant dense<0.000000e+00> : vector<16x16xf32>
    %624 = tpu.matmul %623, %509, %cst_725 {dimension_numbers = #tpu.dot_dimension_numbers<[1], [0], [0], [1], [0, 0, 1, 1], [], []>} : vector<16x16xf32>, vector<16x16xf32>, vector<16x16xf32> -> vector<16x16xf32>
    %c3_726 = arith.constant 3 : index
    %c14_727 = arith.constant 14 : index
    %c0_728 = arith.constant 0 : index
    %c0_729 = arith.constant 0 : index
    %625 = vector.load %arg2[%c3_726, %c14_727, %c0_728, %c0_729] : memref<4x18x16x16xf32, #tpu.memory_space<vmem>>, vector<1x1x16x16xf32>
    %626 = vector.shape_cast %625 : vector<1x1x16x16xf32> to vector<16x16xf32>
    %cst_730 = arith.constant dense<0.000000e+00> : vector<16x16xf32>
    %627 = tpu.matmul %624, %626, %cst_730 {dimension_numbers = #tpu.dot_dimension_numbers<[1], [0], [0], [1], [0, 0, 1, 1], [], []>} : vector<16x16xf32>, vector<16x16xf32>, vector<16x16xf32> -> vector<16x16xf32>
    %628 = arith.addf %621, %627 : vector<16x16xf32>
    %cst_731 = arith.constant 5.000000e-01 : f32
    %629 = vector.broadcast %cst_731 : f32 to vector<16x16xf32>
    %630 = arith.mulf %629, %628 : vector<16x16xf32>
    %631 = math.tanh %630 : vector<16x16xf32>
    %cst_732 = arith.constant 1.000000e+00 : f32
    %632 = vector.broadcast %cst_732 : f32 to vector<16x16xf32>
    %633 = arith.addf %631, %632 : vector<16x16xf32>
    %cst_733 = arith.constant 5.000000e-01 : f32
    %634 = vector.broadcast %cst_733 : f32 to vector<16x16xf32>
    %635 = arith.mulf %634, %633 : vector<16x16xf32>
    %c0_734 = arith.constant 0 : index
    %c0_735 = arith.constant 0 : index
    %c0_736 = arith.constant 0 : index
    %636 = vector.load %arg5[%c0_734, %c0_735, %c0_736] : memref<2x16x16xf32, #tpu.memory_space<vmem>>, vector<1x16x16xf32>
    %637 = vector.shape_cast %636 : vector<1x16x16xf32> to vector<16x16xf32>
    %638 = vector.shape_cast %572 : vector<16x16xf32> to vector<1x16x16xf32>
    tpu.vector_store %arg5[%c0_734, %c0_735, %c0_736], %638 {strides = array<i32>} : memref<2x16x16xf32, #tpu.memory_space<vmem>>, vector<1x16x16xf32>,
    %c1_737 = arith.constant 1 : index
    %c0_738 = arith.constant 0 : index
    %c0_739 = arith.constant 0 : index
    %639 = vector.load %arg5[%c1_737, %c0_738, %c0_739] : memref<2x16x16xf32, #tpu.memory_space<vmem>>, vector<1x16x16xf32>
    %640 = vector.shape_cast %639 : vector<1x16x16xf32> to vector<16x16xf32>
    %641 = vector.shape_cast %635 : vector<16x16xf32> to vector<1x16x16xf32>
    tpu.vector_store %arg5[%c1_737, %c0_738, %c0_739], %641 {strides = array<i32>} : memref<2x16x16xf32, #tpu.memory_space<vmem>>, vector<1x16x16xf32>,
    return
  }
}

</mosaic_0001>

<bundles_post_ra>
// kernel: sage4_forward.1
= control target key start
LH: loop header
LB: loop body
LE: loop exit
PB: predicated region body
PF: predicated region fallthrough
CT: control target
= control target key end

     0   :  { %vm37_vm0 = vcmask 130048   ;;  %s16753_s0 = inlined_call_operand.vmem [shape: f32[3,16,16], index: 0, kind: input, shape index: {}]   ;;  %s16754_s1 = inlined_call_operand.vmem [shape: f32[18,16,16], index: 1, kind: input, shape index: {}]   ;;  %s16755_s3 = inlined_call_operand.vmem [shape: f32[4,3,16,16], index: 3, kind: input, shape index: {}]   ;;  %s16756_s2 = inlined_call_operand.vmem [shape: f32[4,18,16,16], index: 2, kind: input, shape index: {}]   ;;  %s16757_s4 = inlined_call_operand.vmem [shape: f32[4,3,1,16], index: 4, kind: input, shape index: {}]   ;;  %s16758_s5 = inlined_call_operand.vmem [shape: f32[2,16,16], index: 5, kind: output, shape index: {}]  }
   0x1   :  { %v20_v0 = vld [vmem:[%s16753_s0] sm:$0xff]  ;;  %v21_v1 = vld [vmem:[%s16753_s0 + $0x8] sm:$0xff]  ;;  %v12244_v4 = vld [vmem:[%s16753_s0 + $0x10] sm:$0xff] }
   0x2   :  { %v15235_v2 = vld [vmem:[%s16754_s1] sm:$0xff]  ;;  %v15237_v3 = vpack.c.bf16 %v21_v1, %v20_v0  ;;  %v15247_v5 = vld [vmem:[%s16753_s0 + $0x18] sm:$0xff]  ;;  %13345 = vmatprep.mubr.msk.f32.mxu0 %vm37_vm0, %v20_v0  ;;  %v15262_v8 = vld [vmem:[%s16753_s0 + $0x28] sm:$0xff] }
   0x3   :  { %13352 = vmatprep.mubr.msk.f32.mxu1 %vm37_vm0, %v15235_v2  ;;  %v15251_v6 = vpack.c.bf16 %v15247_v5, %v12244_v4  ;;  %v15256_v7 = vld [vmem:[%s16753_s0 + $0x20] sm:$0xff]  ;;  %v15268_v9 = vld [vmem:[%s16754_s1 + $0x8] sm:$0xff]  ;;  %v15274_v10 = vld [vmem:[%s16754_s1 + $0x10] sm:$0xff] }
   0x4   :  { %14375 = vmatprep.subr.bf16.mxu1 %v15237_v3  ;;  %v15278_v11 = vpack.c.bf16 %v15262_v8, %v15256_v7  ;;  %v28_v12 = vld [vmem:[%s16755_s3] sm:$0xff]  ;;  %v29_v13 = vld [vmem:[%s16755_s3 + $0x8] sm:$0xff]  ;;  %v15300_v16 = vld [vmem:[%s16754_s1 + $0x18] sm:$0xff] }
   0x5   :  { %14377 = vmatpush3.bf16.msra.mxu1 %v15237_v3  ;;  %v202_v14 = vld [vmem:[%s16756_s2] sm:$0xff]  ;;  %v203_v15 = vld [vmem:[%s16756_s2 + $0x8] sm:$0xff]  ;;  %v14370_v17 = vpack.c.bf16 %v29_v13, %v28_v12  ;;  %v15322_v21 = vld [vmem:[%s16754_s1 + $0x90] sm:$0xff] }
   0x6   :  { %14383 = vmatprep.subr.bf16.mxu1 %v15251_v6  ;;  %v15306_v18 = vld [vmem:[%s16754_s1 + $0x20] sm:$0xff]  ;;  %v14378_v19 = vpack.c.bf16 %v203_v15, %v202_v14  ;;  %v15316_v20 = vld [vmem:[%s16754_s1 + $0x28] sm:$0xff]  ;;  %v15333_v22 = vld [vmem:[%s16754_s1 + $0x98] sm:$0xff] }
   0x7   :  { %14371 = vmatprep.subr.bf16.mxu0 %v14370_v17  ;;  %v15339_v23 = vld [vmem:[%s16754_s1 + $0xa0] sm:$0xff]  ;;  %v15349_v24 = vld [vmem:[%s16754_s1 + $0xa8] sm:$0xff]  ;;  %v15355_v25 = vld [vmem:[%s16754_s1 + $0xb0] sm:$0xff] }
   0x8   :  { %13353 = vmatmul.mubr.msk.f32.vlgmr.msra.gmra.mrb[0].mxu1 %vm37_vm0, %v15268_v9  ;;  %14373 = vmatpush3.bf16.msra.mxu0 %v14370_v17  ;;  %v15365_v26 = vld [vmem:[%s16754_s1 + $0xb8] sm:$0xff]  ;;  %v15371_v27 = vld [vmem:[%s16754_s1 + $0x110] sm:$0xff]  ;;  %v12267_v38 = vld [vmem:[%s16756_s2 + $0x20] sm:$0xff] }
   0x9   :  { %14385 = vmatpush3.bf16.msra.mxu1 %v15251_v6  ;;  %13366 = vmatprep.mubr.msk.f32.mxu1 %vm37_vm0, %v15274_v10  ;;  %v15381_v28 = vld [vmem:[%s16754_s1 + $0x118] sm:$0xff]  ;;  %v12259_v29 = vld [vmem:[%s16756_s2 + $0x10] sm:$0xff]  ;;  %v12268_v39 = vld [vmem:[%s16756_s2 + $0x28] sm:$0xff] }
   0xa   :  { %14391 = vmatprep.subr.bf16.mxu1 %v15278_v11  ;;  %14379 = vmatprep.subr.bf16.mxu0 %v14378_v19  ;;  %v12260_v30 = vld [vmem:[%s16756_s2 + $0x18] sm:$0xff]  ;;  %v12303_v32 = vld [vmem:[%s16755_s3 + $0x10] sm:$0xff]  ;;  %v14394_v42 = vpack.c.bf16 %v12268_v39, %v12267_v38  ;;  %v12283_v52 = vld [vmem:[%s16756_s2 + $0xa0] sm:$0xff] }
   0xb   :  { %13346 = vmatmul.mubr.msk.f32.vlgmr.msra.gmra.mrb[0].mxu0 %vm37_vm0, %v21_v1  ;;  %v14386_v31 = vpack.c.bf16 %v12260_v30, %v12259_v29  ;;  %v12304_v33 = vld [vmem:[%s16755_s3 + $0x18] sm:$0xff]  ;;  %v12313_v34 = vld [vmem:[%s16756_s2 + $0x30] sm:$0xff]  ;;  %v12284_v53 = vld [vmem:[%s16756_s2 + $0xa8] sm:$0xff] }
   0xc   :  { %13367 = vmatmul.mubr.msk.f32.vlgmr.msra.gmra.mrb[2].mxu1 %vm37_vm0, %v15300_v16  ;;  %14381 = vmatpush3.bf16.msra.mxu0 %v14378_v19  ;;  %v14430_v35 = vpack.c.bf16 %v12304_v33, %v12303_v32  ;;  %v12314_v36 = vld [vmem:[%s16756_s2 + $0x38] sm:$0xff]  ;;  %v12275_v45 = vld [vmem:[%s16756_s2 + $0x90] sm:$0xff]  ;;  %v14410_v55 = vpack.c.bf16 %v12284_v53, %v12283_v52  ;;  %v15468_v13 = vld [vmem:[%s16754_s1 + $0x40] sm:$0xff] }
   0xd   :  { %14393 = vmatpush3.bf16.msra.mxu1 %v15278_v11  ;;  %13380 = vmatprep.mubr.msk.f32.mxu1 %vm37_vm0, %v15306_v18  ;;  %v14438_v37 = vpack.c.bf16 %v12314_v36, %v12313_v34  ;;  %v12276_v46 = vld [vmem:[%s16756_s2 + $0x98] sm:$0xff]  ;;  %v12291_v59 = vld [vmem:[%s16756_s2 + $0xb0] sm:$0xff]  ;;  %v15478_v14 = vld [vmem:[%s16754_s1 + $0x48] sm:$0xff] }
   0xe   :  { %14399 = vmatprep.subr.bf16.mxu1 %v15237_v3  ;;  %14387 = vmatprep.subr.bf16.mxu0 %v14386_v31  ;;  %v14402_v49 = vpack.c.bf16 %v12276_v46, %v12275_v45  ;;  %v12292_v60 = vld [vmem:[%s16756_s2 + $0xb8] sm:$0xff]  ;;  %v12299_v0 = vld [vmem:[%s16756_s2 + $0x110] sm:$0xff]  ;;  %v15500_v19 = vld [vmem:[%s16754_s1 + $0x80] sm:$0xff] }
   0xf   :  { %v14418_v62 = vpack.c.bf16 %v12292_v60, %v12291_v59  ;;  %v12300_v1 = vld [vmem:[%s16756_s2 + $0x118] sm:$0xff]  ;;  %v15484_v15 = vld [vmem:[%s16754_s1 + $0x50] sm:$0xff]  ;;  %v15510_v29 = vld [vmem:[%s16754_s1 + $0x88] sm:$0xff] }
  0x10   :  { %13381 = vmatmul.mubr.msk.f32.vlgmr.msra.gmra.mrb[4].mxu1 %vm37_vm0, %v15316_v20  ;;  %v15462_v12 = vld [vmem:[%s16754_s1 + $0x38] sm:$0xff]  ;;  %v15516_v30 = vld [vmem:[%s16754_s1 + $0xc0] sm:$0xff]  ;;  %v15532_v32 = vld [vmem:[%s16754_s1 + $0xd0] sm:$0xff] }
  0x11   :  { %14401 = vmatpush3.bf16.msra.mxu1 %v15237_v3  ;;  %13394 = vmatprep.mubr.msk.f32.mxu1 %vm37_vm0, %v15322_v21  ;;  %v15494_v17 = vld [vmem:[%s16754_s1 + $0x58] sm:$0xff]  ;;  %v15548_v34 = vld [vmem:[%s16754_s1 + $0xe0] sm:$0xff]  ;;  %v12366_v39 = vld [vmem:[%s16755_s3 + $0x28] sm:$0xff] }
  0x12   :  { %14407 = vmatprep.subr.bf16.mxu1 %v15251_v6  ;;  %v15542_v33 = vld [vmem:[%s16754_s1 + $0xd8] sm:$0xff]  ;;  %v12321_v36 = vld [vmem:[%s16756_s2 + $0x40] sm:$0xff] }
  0x13   :  { %v12365_v38 = vld [vmem:[%s16755_s3 + $0x20] sm:$0xff] }
  0x14   :  { %13395 = vmatmul.mubr.msk.f32.vlgmr.msra.gmra.mrb[6].mxu1 %vm37_vm0, %v15333_v22 }
  0x15   :  { %14409 = vmatpush3.bf16.msra.mxu1 %v15251_v6  ;;  %13408 = vmatprep.mubr.msk.f32.mxu1 %vm37_vm0, %v15339_v23 }
  0x16   :  { %14415 = vmatprep.subr.bf16.mxu1 %v15278_v11 }
  0x18   :  { %13409 = vmatmul.mubr.msk.f32.vlgmr.msra.gmra.mrb[8].mxu1 %vm37_vm0, %v15349_v24 }
  0x19   :  { %14417 = vmatpush3.bf16.msra.mxu1 %v15278_v11  ;;  %13422 = vmatprep.mubr.msk.f32.mxu1 %vm37_vm0, %v15355_v25 }
  0x1a   :  { %14423 = vmatprep.subr.bf16.mxu1 %v15251_v6 }
  0x1c   :  { %13423 = vmatmul.mubr.msk.f32.vlgmr.msra.gmra.mrb[10].mxu1 %vm37_vm0, %v15365_v26 }
  0x1d   :  { %14425 = vmatpush3.bf16.msra.mxu1 %v15251_v6  ;;  %13436 = vmatprep.mubr.msk.f32.mxu1 %vm37_vm0, %v15371_v27 }
  0x1e   :  { %14431 = vmatprep.subr.bf16.mxu1 %v14430_v35 }
  0x20   :  { %13437 = vmatmul.mubr.msk.f32.vlgmr.msra.gmra.mrb[12].mxu1 %vm37_vm0, %v15381_v28 }
  0x21   :  { %13450 = vmatprep.mubr.msk.f32.mxu1 %vm37_vm0, %v12244_v4  ;;  %14433 = vmatpush3.bf16.msra.mxu1 %v14430_v35  ;;  %v14426_v4 = vpack.c.bf16 %v12300_v1, %v12299_v0  ;;  %v15558_v35 = vld [vmem:[%s16754_s1 + $0xe8] sm:$0xff] }
  0x22   :  { %14439 = vmatprep.subr.bf16.mxu1 %v14438_v37 }
  0x24   :  { %13451 = vmatmul.mubr.msk.f32.vlgmr.msra.gmra.mrb[14].mxu1 %vm37_vm0, %v15247_v5  ;;  %v15453_v5 = vld [vmem:[%s16754_s1 + $0x30] sm:$0xff] }
  0x25   :  { %14441 = vmatpush3.bf16.msra.mxu1 %v14438_v37 }
  0xdb   :  { %v13354_v40 = vpop.f32.mrb[0].mxu1 }
  0xdc   :  { %v193_v41 = vpop.f32.mrb[1].mxu1 }
  0xdd   :  { %13359 = vmatprep.mubr.msk.f32.mxu0 %vm37_vm0, %v193_v41  ;;  %v12376_v41 = vld [vmem:[%s16756_s2 + $0x68] sm:$0xff] }
  0xde   :  { %13360 = vmatmul.mubr.msk.f32.vlgmr.msra.gmra.mrb[0].mxu0 %vm37_vm0, %v13354_v40  ;;  %v14490_v40 = vpack.c.bf16 %v12366_v39, %v12365_v38 }
  0xdf   :  { %14389 = vmatpush3.bf16.msra.mxu0 %v14386_v31  ;;  %v13368_v43 = vpop.f32.mrb[2].mxu1  ;;  %v15526_v31 = vld [vmem:[%s16754_s1 + $0xc8] sm:$0xff] }
  0xe0   :  { %v362_v44 = vpop.f32.mrb[3].mxu1  ;;  %14395 = vmatprep.subr.bf16.mxu0 %v14394_v42 }
  0xe1   :  { %13373 = vmatprep.mubr.msk.f32.mxu0 %vm37_vm0, %v362_v44 }
  0xe3   :  { %v13382_v47 = vpop.f32.mrb[4].mxu1 }
  0xe4   :  { %v532_v48 = vpop.f32.mrb[5].mxu1 }
  0xe6   :  { %13374 = vmatmul.mubr.msk.f32.vlgmr.msra.gmra.mrb[0].mxu0 %vm37_vm0, %v13368_v43  ;;  %v12248_v43 = vld [vmem:[%s16757_s4] ss:$0 sm:$0xff] }
  0xe7   :  { %14397 = vmatpush3.bf16.msra.mxu0 %v14394_v42  ;;  %13387 = vmatprep.mubr.msk.f32.mxu0 %vm37_vm0, %v532_v48  ;;  %v13396_v50 = vpop.f32.mrb[6].mxu1  ;;  %v12329_v48 = vld [vmem:[%s16756_s2 + $0x50] sm:$0xff] }
  0xe8   :  { %14403 = vmatprep.subr.bf16.mxu0 %v14402_v49  ;;  %v702_v51 = vpop.f32.mrb[7].mxu1 }
  0xeb   :  { %v13410_v54 = vpop.f32.mrb[8].mxu1 }
  0xec   :  { %v872_v56 = vpop.f32.mrb[9].mxu1 }
  0xee   :  { %13388 = vmatmul.mubr.msk.f32.vlgmr.msra.gmra.mrb[0].mxu0 %vm37_vm0, %v13382_v47 }
  0xef   :  { %14405 = vmatpush3.bf16.msra.mxu0 %v14402_v49  ;;  %13401 = vmatprep.mubr.msk.f32.mxu0 %vm37_vm0, %v702_v51  ;;  %v13424_v57 = vpop.f32.mrb[10].mxu1  ;;  %v12330_v49 = vld [vmem:[%s16756_s2 + $0x58] sm:$0xff] }
  0xf0   :  { %14411 = vmatprep.subr.bf16.mxu0 %v14410_v55  ;;  %v1042_v58 = vpop.f32.mrb[11].mxu1  ;;  %v14454_v53 = vpack.c.bf16 %v12330_v49, %v12329_v48  ;;  %v12361_v49 = vld [vmem:[%s16756_s2 + $0xe0] sm:$0xff] }
  0xf3   :  { %v13438_v61 = vpop.f32.mrb[12].mxu1 }
  0xf4   :  { %v1212_v63 = vpop.f32.mrb[13].mxu1 }
  0xf6   :  { %13402 = vmatmul.mubr.msk.f32.vlgmr.msra.gmra.mrb[0].mxu0 %vm37_vm0, %v13396_v50 }
  0xf7   :  { %14413 = vmatpush3.bf16.msra.mxu0 %v14410_v55  ;;  %13415 = vmatprep.mubr.msk.f32.mxu0 %vm37_vm0, %v872_v56  ;;  %v12337_v56 = vld [vmem:[%s16756_s2 + $0x80] sm:$0xff] }
  0xf8   :  { %14419 = vmatprep.subr.bf16.mxu0 %v14418_v62 }
  0xfe   :  { %13416 = vmatmul.mubr.msk.f32.vlgmr.msra.gmra.mrb[0].mxu0 %vm37_vm0, %v13410_v54 }
  0xff   :  { %14421 = vmatpush3.bf16.msra.mxu0 %v14418_v62  ;;  %13429 = vmatprep.mubr.msk.f32.mxu0 %vm37_vm0, %v1042_v58 }
 0x100   :  { %14427 = vmatprep.subr.bf16.mxu0 %v14426_v4 }
 0x106   :  { %13430 = vmatmul.mubr.msk.f32.vlgmr.msra.gmra.mrb[0].mxu0 %vm37_vm0, %v13424_v57  ;;  %v12338_v57 = vld [vmem:[%s16756_s2 + $0x88] sm:$0xff] }
 0x107   :  { %14429 = vmatpush3.bf16.msra.mxu0 %v14426_v4  ;;  %13443 = vmatprep.mubr.msk.f32.mxu0 %vm37_vm0, %v1212_v63  ;;  %v14462_v60 = vpack.c.bf16 %v12338_v57, %v12337_v56  ;;  %v12403_v56 = vld [vmem:[%s16755_s3 + $0x30] sm:$0xff]  ;;  %v12404_v57 = vld [vmem:[%s16755_s3 + $0x38] sm:$0xff] }
 0x108   :  { %14435 = vmatprep.subr.bf16.mxu0 %v15237_v3 }
 0x10e   :  { %13444 = vmatmul.mubr.msk.f32.vlgmr.msra.gmra.mrb[0].mxu0 %vm37_vm0, %v13438_v61 }
 0x10f   :  { %14437 = vmatpush3.bf16.msra.mxu0 %v15237_v3  ;;  %13457 = vmatprep.mubr.msk.f32.mxu0 %vm37_vm0, %v15453_v5 }
 0x110   :  { %14443 = vmatprep.subr.bf16.mxu0 %v15251_v6 }
 0x112   :  { %13458 = vmatmul.mubr.msk.f32.vlgmr.msra.gmra.mrb[2].mxu0 %vm37_vm0, %v15462_v12 }
 0x113   :  { %14445 = vmatpush3.bf16.msra.mxu0 %v15251_v6  ;;  %13471 = vmatprep.mubr.msk.f32.mxu0 %vm37_vm0, %v15468_v13 }
 0x114   :  { %14451 = vmatprep.subr.bf16.mxu0 %v15278_v11 }
 0x116   :  { %13472 = vmatmul.mubr.msk.f32.vlgmr.msra.gmra.mrb[4].mxu0 %vm37_vm0, %v15478_v14 }
 0x117   :  { %14453 = vmatpush3.bf16.msra.mxu0 %v15278_v11  ;;  %13485 = vmatprep.mubr.msk.f32.mxu0 %vm37_vm0, %v15484_v15 }
 0x118   :  { %14459 = vmatprep.subr.bf16.mxu0 %v15237_v3 }
 0x11a   :  { %13486 = vmatmul.mubr.msk.f32.vlgmr.msra.gmra.mrb[6].mxu0 %vm37_vm0, %v15494_v17 }
 0x11b   :  { %14461 = vmatpush3.bf16.msra.mxu0 %v15237_v3  ;;  %13499 = vmatprep.mubr.msk.f32.mxu0 %vm37_vm0, %v15500_v19 }
 0x11c   :  { %14467 = vmatprep.subr.bf16.mxu0 %v15237_v3 }
 0x11e   :  { %13500 = vmatmul.mubr.msk.f32.vlgmr.msra.gmra.mrb[8].mxu0 %vm37_vm0, %v15510_v29 }
 0x11f   :  { %14469 = vmatpush3.bf16.msra.mxu0 %v15237_v3  ;;  %13513 = vmatprep.mubr.msk.f32.mxu0 %vm37_vm0, %v15516_v30 }
 0x120   :  { %14475 = vmatprep.subr.bf16.mxu0 %v15251_v6 }
 0x122   :  { %13514 = vmatmul.mubr.msk.f32.vlgmr.msra.gmra.mrb[10].mxu0 %vm37_vm0, %v15526_v31 }
 0x123   :  { %14477 = vmatpush3.bf16.msra.mxu0 %v15251_v6  ;;  %13527 = vmatprep.mubr.msk.f32.mxu0 %vm37_vm0, %v15532_v32 }
 0x124   :  { %14483 = vmatprep.subr.bf16.mxu0 %v15278_v11 }
 0x126   :  { %13528 = vmatmul.mubr.msk.f32.vlgmr.msra.gmra.mrb[12].mxu0 %vm37_vm0, %v15542_v33 }
 0x127   :  { %14485 = vmatpush3.bf16.msra.mxu0 %v15278_v11  ;;  %13541 = vmatprep.mubr.msk.f32.mxu0 %vm37_vm0, %v15548_v34  ;;  %v12322_v11 = vld [vmem:[%s16756_s2 + $0x48] sm:$0xff] }
 0x128   :  { %v14446_v37 = vpack.c.bf16 %v12322_v11, %v12321_v36  ;;  %14491 = vmatprep.subr.bf16.mxu0 %v14490_v40  ;;  %v12345_v11 = vld [vmem:[%s16756_s2 + $0xc0] sm:$0xff] }
 0x12a   :  { %13542 = vmatmul.mubr.msk.f32.vlgmr.msra.gmra.mrb[14].mxu0 %vm37_vm0, %v15558_v35  ;;  %14447 = vmatprep.subr.bf16.mxu1 %v14446_v37 }
 0x12b   :  { %13555 = vmatprep.mubr.msk.f32.mxu0 %vm37_vm0, %v15256_v7  ;;  %v12375_v7 = vld [vmem:[%s16756_s2 + $0x60] sm:$0xff]  ;;  %14493 = vmatpush3.bf16.msra.mxu0 %v14490_v40 }
 0x12c   :  { %v14498_v42 = vpack.c.bf16 %v12376_v41, %v12375_v7 }
 0x12e   :  { %14499 = vmatprep.subr.bf16.mxu0 %v14498_v42  ;;  %13556 = vmatmul.mubr.msk.f32.vlgmr.msra.gmra.mrb[16].mxu0 %vm37_vm0, %v15262_v8 }
 0x12f   :  { %14501 = vmatpush3.bf16.msra.mxu0 %v14498_v42 }
 0x1e1   :  { %v13445_v44 = vpop.f32.mrb[0].mxu0 }
 0x1e2   :  { %v14958_v45 = vadd.f32 %v13445_v44, %v12248_v43  ;;  %v1296_v46 = vpop.f32.mrb[1].mxu0  ;;  %v12353_v44 = vld [vmem:[%s16756_s2 + $0xd0] sm:$0xff] }
 0x1e3   :  { %v14959_v47 = vadd.f32 %v12248_v43, %v1296_v46 }
 0x1e4   :  { %v1308_v50 = vmul.f32 0.5, %v14958_v45  ;;  %v12354_v45 = vld [vmem:[%s16756_s2 + $0xd8] sm:$0xff] }
 0x1e5   :  { %v1307_v51 = vmul.f32 0.5, %v14959_v47  ;;  %v13459_v8 = vpop.f32.mrb[2].mxu0  ;;  %v14478_v47 = vpack.c.bf16 %v12354_v45, %v12353_v44  ;;  %v12399_v45 = vld [vmem:[%s16756_s2 + $0x100] sm:$0xff] }
 0x1e6   :  { %15116 = vtanh.f32 %v1308_v50  ;;  %v1482_v52 = vpop.f32.mrb[3].mxu0  ;;  %v12362_v50 = vld [vmem:[%s16756_s2 + $0xe8] sm:$0xff] }
 0x1e7   :  { %15118 = vtanh.f32 %v1307_v51  ;;  %13464 = vmatprep.mubr.msk.f32.mxu1 %vm37_vm0, %v1482_v52  ;;  %v14486_v51 = vpack.c.bf16 %v12362_v50, %v12361_v49  ;;  %v15648_v52 = vld [vmem:[%s16754_s1 + $0x68] sm:$0xff] }
 0x1e8   :  { %13465 = vmatmul.mubr.msk.f32.vlgmr.msra.gmra.mrb[14].mxu1 %vm37_vm0, %v13459_v8  ;;  %v15639_v8 = vld [vmem:[%s16754_s1 + $0x60] sm:$0xff] }
 0x1e9   :  { %14449 = vmatpush3.bf16.msra.mxu1 %v14446_v37  ;;  %v13473_v54 = vpop.f32.mrb[4].mxu0  ;;  %v12346_v37 = vld [vmem:[%s16756_s2 + $0xc8] sm:$0xff] }
 0x1ea   :  { %v1652_v55 = vpop.f32.mrb[5].mxu0  ;;  %14455 = vmatprep.subr.bf16.mxu1 %v14454_v53  ;;  %v14470_v40 = vpack.c.bf16 %v12346_v37, %v12345_v11  ;;  %v12392_v37 = vld [vmem:[%s16756_s2 + $0xf8] sm:$0xff] }
 0x1eb   :  { %13478 = vmatprep.mubr.msk.f32.mxu1 %vm37_vm0, %v1652_v55  ;;  %v15670_v55 = vld [vmem:[%s16754_s1 + $0xf0] sm:$0xff] }
 0x1ed   :  { %v13487_v58 = vpop.f32.mrb[6].mxu0 }
 0x1ee   :  { %v1822_v59 = vpop.f32.mrb[7].mxu0 }
 0x1f0   :  { %v15117_v61 = vpop.eup %15116  ;;  %13479 = vmatmul.mubr.msk.f32.vlgmr.msra.gmra.mrb[14].mxu1 %vm37_vm0, %v13473_v54  ;;  %v15664_v54 = vld [vmem:[%s16754_s1 + $0x78] sm:$0xff] }
 0x1f1   :  { %v15119_v62 = vpop.eup %15118  ;;  %v1312_v63 = vadd.f32 1.0, %v15117_v61  ;;  %14457 = vmatpush3.bf16.msra.mxu1 %v14454_v53  ;;  %13492 = vmatprep.mubr.msk.f32.mxu1 %vm37_vm0, %v1822_v59  ;;  %v13501_v0 = vpop.f32.mrb[8].mxu0  ;;  %v15654_v53 = vld [vmem:[%s16754_s1 + $0x70] sm:$0xff]  ;;  %v15692_v59 = vld [vmem:[%s16754_s1 + $0x100] sm:$0xff]  ;;  %v12384_v61 = vld [vmem:[%s16756_s2 + $0x78] sm:$0xff] }
 0x1f2   :  { %v1311_v1 = vadd.f32 1.0, %v15119_v62  ;;  %14463 = vmatprep.subr.bf16.mxu1 %v14462_v60  ;;  %v1992_v4 = vpop.f32.mrb[9].mxu0 }
 0x1f3   :  { %v15604_v36 = vmul.f32 0.5, %v1312_v63  ;;  %v12306_v63 = vld [vmem:[%s16757_s4 + $0x1] ss:$0 sm:$0xff] }
 0x1f4   :  { %v1313_v38 = vmul.f32 0.5, %v1311_v1 }
 0x1f5   :  { %v13515_v39 = vpop.f32.mrb[10].mxu0 }
 0x1f6   :  { %v15613_v7 = vpack.c.bf16 %v15604_v36, %v1313_v38  ;;  %v2162_v41 = vpop.f32.mrb[11].mxu0 }
 0x1f8   :  { %13493 = vmatmul.mubr.msk.f32.vlgmr.msra.gmra.mrb[14].mxu1 %vm37_vm0, %v13487_v58  ;;  %v15686_v58 = vld [vmem:[%s16754_s1 + $0xf8] sm:$0xff] }
 0x1f9   :  { %14465 = vmatpush3.bf16.msra.mxu1 %v14462_v60  ;;  %13506 = vmatprep.mubr.msk.f32.mxu1 %vm37_vm0, %v1992_v4  ;;  %v13529_v42 = vpop.f32.mrb[12].mxu0  ;;  %v14526_v60 = vpack.c.bf16 %v12404_v57, %v12403_v56 }
 0x1fa   :  { %14471 = vmatprep.subr.bf16.mxu1 %v14470_v40  ;;  %v2332_v43 = vpop.f32.mrb[13].mxu0 }
 0x1fd   :  { %v13543_v46 = vpop.f32.mrb[14].mxu0 }
 0x1fe   :  { %v2502_v48 = vpop.f32.mrb[15].mxu0 }
 0x200   :  { %13507 = vmatmul.mubr.msk.f32.vlgmr.msra.gmra.mrb[14].mxu1 %vm37_vm0, %v13501_v0 }
 0x201   :  { %14473 = vmatpush3.bf16.msra.mxu1 %v14470_v40  ;;  %13520 = vmatprep.mubr.msk.f32.mxu1 %vm37_vm0, %v2162_v41 }
 0x202   :  { %14479 = vmatprep.subr.bf16.mxu1 %v14478_v47 }
 0x208   :  { %13521 = vmatmul.mubr.msk.f32.vlgmr.msra.gmra.mrb[14].mxu1 %vm37_vm0, %v13515_v39 }
 0x209   :  { %14481 = vmatpush3.bf16.msra.mxu1 %v14478_v47  ;;  %13534 = vmatprep.mubr.msk.f32.mxu1 %vm37_vm0, %v2332_v43 }
 0x20a   :  { %14487 = vmatprep.subr.bf16.mxu1 %v14486_v51 }
 0x210   :  { %13535 = vmatmul.mubr.msk.f32.vlgmr.msra.gmra.mrb[14].mxu1 %vm37_vm0, %v13529_v42 }
 0x211   :  { %14489 = vmatpush3.bf16.msra.mxu1 %v14486_v51  ;;  %13548 = vmatprep.mubr.msk.f32.mxu1 %vm37_vm0, %v2502_v48 }
 0x212   :  { %14495 = vmatprep.subr.bf16.mxu1 %v15237_v3 }
 0x218   :  { %13549 = vmatmul.mubr.msk.f32.vlgmr.msra.gmra.mrb[14].mxu1 %vm37_vm0, %v13543_v46  ;;  %v12400_v46 = vld [vmem:[%s16756_s2 + $0x108] sm:$0xff] }
 0x219   :  { %14497 = vmatpush3.bf16.msra.mxu1 %v15237_v3  ;;  %13562 = vmatprep.mubr.msk.f32.mxu1 %vm37_vm0, %v15639_v8  ;;  %v14522_v49 = vpack.c.bf16 %v12400_v46, %v12399_v45 }
 0x21a   :  { %14503 = vmatprep.subr.bf16.mxu1 %v15251_v6 }
 0x21c   :  { %13563 = vmatmul.mubr.msk.f32.vlgmr.msra.gmra.mrb[16].mxu1 %vm37_vm0, %v15648_v52 }
 0x21d   :  { %14505 = vmatpush3.bf16.msra.mxu1 %v15251_v6  ;;  %13576 = vmatprep.mubr.msk.f32.mxu1 %vm37_vm0, %v15654_v53 }
 0x21e   :  { %14511 = vmatprep.subr.bf16.mxu1 %v15237_v3 }
 0x220   :  { %13577 = vmatmul.mubr.msk.f32.vlgmr.msra.gmra.mrb[18].mxu1 %vm37_vm0, %v15664_v54 }
 0x221   :  { %14513 = vmatpush3.bf16.msra.mxu1 %v15237_v3  ;;  %13590 = vmatprep.mubr.msk.f32.mxu1 %vm37_vm0, %v15670_v55  ;;  %v15702_v3 = vld [vmem:[%s16754_s1 + $0x108] sm:$0xff] }
 0x222   :  { %14519 = vmatprep.subr.bf16.mxu1 %v15251_v6 }
 0x224   :  { %13591 = vmatmul.mubr.msk.f32.vlgmr.msra.gmra.mrb[20].mxu1 %vm37_vm0, %v15686_v58 }
 0x225   :  { %14521 = vmatpush3.bf16.msra.mxu1 %v15251_v6  ;;  %13604 = vmatprep.mubr.msk.f32.mxu1 %vm37_vm0, %v15692_v59  ;;  %v12383_v6 = vld [vmem:[%s16756_s2 + $0x70] sm:$0xff] }
 0x226   :  { %14527 = vmatprep.subr.bf16.mxu1 %v14526_v60  ;;  %v14506_v62 = vpack.c.bf16 %v12384_v61, %v12383_v6 }
 0x228   :  { %13605 = vmatmul.mubr.msk.f32.vlgmr.msra.gmra.mrb[22].mxu1 %vm37_vm0, %v15702_v3  ;;  %14507 = vmatprep.subr.bf16.mxu0 %v14506_v62 }
 0x229   :  { %14529 = vmatpush3.bf16.msra.mxu1 %v14526_v60  ;;  %13618 = vmatprep.mubr.msk.f32.mxu1 %vm37_vm0, %v1313_v38 }
 0x22c   :  { %13619 = vmatmul.mubr.msk.f32.vlgmr.msra.gmra.mrb[24].mxu1 %vm37_vm0, %v15604_v36  ;;  %v12391_v36 = vld [vmem:[%s16756_s2 + $0xf0] sm:$0xff] }
 0x22d   :  { %v14514_v41 = vpack.c.bf16 %v12392_v37, %v12391_v36 }
 0x2eb   :  { %v13550_v0 = vpop.f32.mrb[14].mxu1 }
 0x2ec   :  { %v14960_v1 = vadd.f32 %v13550_v0, %v12306_v63  ;;  %v2586_v4 = vpop.f32.mrb[15].mxu1  ;;  %v12412_v0 = vld [vmem:[%s16756_s2 + $0x128] sm:$0xff] }
 0x2ed   :  { %v14961_v11 = vadd.f32 %v12306_v63, %v2586_v4 }
 0x2ee   :  { %v2598_v39 = vmul.f32 0.5, %v14960_v1 }
 0x2ef   :  { %v13564_v38 = vpop.f32.mrb[16].mxu1  ;;  %v2597_v42 = vmul.f32 0.5, %v14961_v11 }
 0x2f0   :  { %v2772_v40 = vpop.f32.mrb[17].mxu1  ;;  %15120 = vtanh.f32 %v2598_v39  ;;  %v12424_v39 = vld [vmem:[%s16756_s2 + $0x148] sm:$0xff] }
 0x2f1   :  { %13569 = vmatprep.mubr.msk.f32.mxu0 %vm37_vm0, %v2772_v40  ;;  %15122 = vtanh.f32 %v2597_v42 }
 0x2f2   :  { %13570 = vmatmul.mubr.msk.f32.vlgmr.msra.gmra.mrb[16].mxu0 %vm37_vm0, %v13564_v38  ;;  %v12423_v38 = vld [vmem:[%s16756_s2 + $0x140] sm:$0xff] }
 0x2f3   :  { %14509 = vmatpush3.bf16.msra.mxu0 %v14506_v62  ;;  %v13578_v43 = vpop.f32.mrb[18].mxu1 }
 0x2f4   :  { %v2942_v44 = vpop.f32.mrb[19].mxu1  ;;  %14515 = vmatprep.subr.bf16.mxu0 %v14514_v41 }
 0x2f5   :  { %13583 = vmatprep.mubr.msk.f32.mxu0 %vm37_vm0, %v2942_v44  ;;  %v14550_v44 = vpack.c.bf16 %v12424_v39, %v12423_v38  ;;  %v12448_v38 = vld [vmem:[%s16756_s2 + $0x238] sm:$0xff] }
 0x2f7   :  { %v13592_v47 = vpop.f32.mrb[20].mxu1 }
 0x2f8   :  { %v3112_v48 = vpop.f32.mrb[21].mxu1 }
 0x2fa   :  { %13584 = vmatmul.mubr.msk.f32.vlgmr.msra.gmra.mrb[16].mxu0 %vm37_vm0, %v13578_v43  ;;  %v15121_v56 = vpop.eup %15120 }
 0x2fb   :  { %14517 = vmatpush3.bf16.msra.mxu0 %v14514_v41  ;;  %13597 = vmatprep.mubr.msk.f32.mxu0 %vm37_vm0, %v3112_v48  ;;  %v13606_v50 = vpop.f32.mrb[22].mxu1  ;;  %v15123_v57 = vpop.eup %15122  ;;  %v2602_v60 = vadd.f32 1.0, %v15121_v56 }
 0x2fc   :  { %14523 = vmatprep.subr.bf16.mxu0 %v14522_v49  ;;  %v3282_v51 = vpop.f32.mrb[23].mxu1  ;;  %v2601_v6 = vadd.f32 1.0, %v15123_v57 }
 0x2fd   :  { %v15738_v61 = vmul.f32 0.5, %v2602_v60  ;;  %v12435_v60 = vld [vmem:[%s16756_s2 + $0x1c0] sm:$0xff] }
 0x2fe   :  { %v15740_v62 = vmul.f32 0.5, %v2601_v6  ;;  %v12436_v6 = vld [vmem:[%s16756_s2 + $0x1c8] sm:$0xff] }
 0x300   :  { %v15744_v63 = vpack.c.bf16 %v15738_v61, %v15740_v62 }
 0x302   :  { %13598 = vmatmul.mubr.msk.f32.vlgmr.msra.gmra.mrb[16].mxu0 %vm37_vm0, %v13592_v47 }
 0x303   :  { %14525 = vmatpush3.bf16.msra.mxu0 %v14522_v49  ;;  %13611 = vmatprep.mubr.msk.f32.mxu0 %vm37_vm0, %v3282_v51 }
 0x304   :  { %14531 = vmatprep.subr.bf16.mxu0 %v15613_v7 }
 0x30a   :  { %13612 = vmatmul.mubr.msk.f32.vlgmr.msra.gmra.mrb[16].mxu0 %vm37_vm0, %v13606_v50 }
 0x30b   :  { %14533 = vmatpush3.bf16.msra.mxu0 %v15613_v7  ;;  %13625 = vmatprep.mubr.msk.f32.mxu0 %vm37_vm0, %v15235_v2  ;;  %v12411_v2 = vld [vmem:[%s16756_s2 + $0x120] sm:$0xff] }
 0x30c   :  { %14539 = vmatprep.subr.bf16.mxu0 %v15744_v63  ;;  %v14534_v1 = vpack.c.bf16 %v12412_v0, %v12411_v2  ;;  %v14566_v2 = vpack.c.bf16 %v12436_v6, %v12435_v60  ;;  %v12483_v60 = vld [vmem:[%s16756_s2 + $0x1e0] sm:$0xff]  ;;  %v12484_v6 = vld [vmem:[%s16756_s2 + $0x1e8] sm:$0xff] }
 0x30e   :  { %13626 = vmatmul.mubr.msk.f32.vlgmr.msra.gmra.mrb[18].mxu0 %vm37_vm0, %v15268_v9  ;;  %v12417_v9 = vld [vmem:[%s16756_s2 + $0x130] sm:$0xff]  ;;  %14535 = vmatprep.subr.bf16.mxu1 %v14534_v1 }
 0x30f   :  { %14541 = vmatpush3.bf16.msra.mxu0 %v15744_v63  ;;  %13639 = vmatprep.mubr.msk.f32.mxu0 %vm37_vm0, %v15274_v10  ;;  %v12418_v10 = vld [vmem:[%s16756_s2 + $0x138] sm:$0xff] }
 0x310   :  { %14537 = vmatpush3.bf16.msra.mxu1 %v14534_v1  ;;  %v12441_v1 = vld [vmem:[%s16756_s2 + $0x1d0] sm:$0xff] }
 0x312   :  { %13640 = vmatmul.mubr.msk.f32.vlgmr.msra.gmra.mrb[20].mxu0 %vm37_vm0, %v15300_v16  ;;  %v14542_v16 = vpack.c.bf16 %v12418_v10, %v12417_v9  ;;  %v12442_v10 = vld [vmem:[%s16756_s2 + $0x1d8] sm:$0xff] }
 0x313   :  { %13653 = vmatprep.mubr.msk.f32.mxu0 %vm37_vm0, %v15306_v18  ;;  %v12368_v18 = vld [vmem:[%s16757_s4 + $0x2] ss:$0 sm:$0xff] }
 0x314   :  { %14543 = vmatprep.subr.bf16.mxu1 %v14542_v16 }
 0x3dd   :  { %v13613_v4 = vpop.f32.mrb[16].mxu0 }
 0x3de   :  { %v14962_v11 = vadd.f32 %v13613_v4, %v12368_v18  ;;  %v3366_v36 = vpop.f32.mrb[17].mxu0  ;;  %v14574_v4 = vpack.c.bf16 %v12442_v10, %v12441_v1 }
 0x3df   :  { %v14963_v37 = vadd.f32 %v12368_v18, %v3366_v36 }
 0x3e0   :  { %v3378_v40 = vmul.f32 0.5, %v14962_v11 }
 0x3e1   :  { %v3377_v41 = vmul.f32 0.5, %v14963_v37  ;;  %v13627_v42 = vpop.f32.mrb[18].mxu0  ;;  %v12447_v37 = vld [vmem:[%s16756_s2 + $0x230] sm:$0xff] }
 0x3e2   :  { %15124 = vtanh.f32 %v3378_v40  ;;  %v3543_v43 = vpop.f32.mrb[19].mxu0  ;;  %v14582_v40 = vpack.c.bf16 %v12448_v38, %v12447_v37  ;;  %v12495_v37 = vld [vmem:[%s16756_s2 + $0x200] sm:$0xff]  ;;  %v12496_v38 = vld [vmem:[%s16756_s2 + $0x208] sm:$0xff] }
 0x3e3   :  { %15126 = vtanh.f32 %v3377_v41  ;;  %13632 = vmatprep.mubr.msk.f32.mxu1 %vm37_vm0, %v3543_v43  ;;  %v12472_v43 = vld [vmem:[%s16756_s2 + $0x178] sm:$0xff] }
 0x3e4   :  { %13633 = vmatmul.mubr.msk.f32.vlgmr.msra.gmra.mrb[24].mxu1 %vm37_vm0, %v13627_v42  ;;  %v12471_v42 = vld [vmem:[%s16756_s2 + $0x170] sm:$0xff] }
 0x3e5   :  { %14545 = vmatpush3.bf16.msra.mxu1 %v14542_v16  ;;  %v13641_v45 = vpop.f32.mrb[20].mxu0 }
 0x3e6   :  { %v3704_v46 = vpop.f32.mrb[21].mxu0  ;;  %14551 = vmatprep.subr.bf16.mxu1 %v14550_v44 }
 0x3e7   :  { %13646 = vmatprep.mubr.msk.f32.mxu1 %vm37_vm0, %v3704_v46 }
 0x3ec   :  { %v15125_v47 = vpop.eup %15124  ;;  %13647 = vmatmul.mubr.msk.f32.vlgmr.msra.gmra.mrb[24].mxu1 %vm37_vm0, %v13641_v45 }
 0x3ed   :  { %v15127_v48 = vpop.eup %15126  ;;  %v3382_v49 = vadd.f32 1.0, %v15125_v47  ;;  %14553 = vmatpush3.bf16.msra.mxu1 %v14550_v44 }
 0x3ee   :  { %v3381_v50 = vadd.f32 1.0, %v15127_v48  ;;  %v14610_v48 = vpack.c.bf16 %v12472_v43, %v12471_v42 }
 0x3ef   :  { %v15785_v51 = vmul.f32 0.5, %v3382_v49 }
 0x3f0   :  { %v15787_v56 = vmul.f32 0.5, %v3381_v50 }
 0x3f2   :  { %v15791_v57 = vpack.c.bf16 %v15785_v51, %v15787_v56 }
 0x3f4   :  { %14547 = vmatprep.subr.bf16.mxu0 %v15791_v57 }
 0x3f5   :  { %14549 = vmatpush3.bf16.msra.mxu0 %v15791_v57 }
 0x3f6   :  { %14555 = vmatprep.subr.bf16.mxu0 %v15613_v7 }
 0x3f8   :  { %13654 = vmatmul.mubr.msk.f32.vlgmr.msra.gmra.mrb[22].mxu0 %vm37_vm0, %v15316_v20  ;;  %v12451_v20 = vld [vmem:[%s16755_s3 + $0x40] sm:$0xff] }
 0x3f9   :  { %14557 = vmatpush3.bf16.msra.mxu0 %v15613_v7  ;;  %13667 = vmatprep.mubr.msk.f32.mxu0 %vm37_vm0, %v15322_v21  ;;  %v12452_v21 = vld [vmem:[%s16755_s3 + $0x48] sm:$0xff] }
 0x3fa   :  { %14563 = vmatprep.subr.bf16.mxu0 %v15744_v63 }
 0x3fc   :  { %13668 = vmatmul.mubr.msk.f32.vlgmr.msra.gmra.mrb[24].mxu0 %vm37_vm0, %v15333_v22  ;;  %v14586_v22 = vpack.c.bf16 %v12452_v21, %v12451_v20 }
 0x3fd   :  { %14565 = vmatpush3.bf16.msra.mxu0 %v15744_v63  ;;  %13681 = vmatprep.mubr.msk.f32.mxu0 %vm37_vm0, %v15339_v23  ;;  %v12429_v23 = vld [vmem:[%s16756_s2 + $0x1b0] sm:$0xff] }
 0x3fe   :  { %14571 = vmatprep.subr.bf16.mxu0 %v15791_v57 }
 0x400   :  { %13682 = vmatmul.mubr.msk.f32.vlgmr.msra.gmra.mrb[26].mxu0 %vm37_vm0, %v15349_v24  ;;  %v12430_v24 = vld [vmem:[%s16756_s2 + $0x1b8] sm:$0xff] }
 0x401   :  { %14573 = vmatpush3.bf16.msra.mxu0 %v15791_v57  ;;  %13695 = vmatprep.mubr.msk.f32.mxu0 %vm37_vm0, %v15355_v25  ;;  %v14558_v25 = vpack.c.bf16 %v12430_v24, %v12429_v23 }
 0x402   :  { %14579 = vmatprep.subr.bf16.mxu0 %v15744_v63 }
 0x403   :  { %14559 = vmatprep.subr.bf16.mxu1 %v14558_v25 }
 0x404   :  { %13696 = vmatmul.mubr.msk.f32.vlgmr.msra.gmra.mrb[28].mxu0 %vm37_vm0, %v15365_v26  ;;  %v12459_v26 = vld [vmem:[%s16756_s2 + $0x150] sm:$0xff] }
 0x405   :  { %14581 = vmatpush3.bf16.msra.mxu0 %v15744_v63  ;;  %13709 = vmatprep.mubr.msk.f32.mxu0 %vm37_vm0, %v15371_v27  ;;  %v12460_v27 = vld [vmem:[%s16756_s2 + $0x158] sm:$0xff] }
 0x406   :  { %14587 = vmatprep.subr.bf16.mxu0 %v14586_v22 }
 0x408   :  { %13710 = vmatmul.mubr.msk.f32.vlgmr.msra.gmra.mrb[30].mxu0 %vm37_vm0, %v15381_v28  ;;  %v14594_v28 = vpack.c.bf16 %v12460_v27, %v12459_v26 }
 0x409   :  { %14589 = vmatpush3.bf16.msra.mxu0 %v14586_v22  ;;  %13723 = vmatprep.mubr.msk.f32.mxu0 %vm37_vm0, %v15740_v62 }
 0x40a   :  { %14595 = vmatprep.subr.bf16.mxu0 %v14594_v28 }
 0x40c   :  { %13724 = vmatmul.mubr.msk.f32.vlgmr.msra.gmra.mrb[32].mxu0 %vm37_vm0, %v15738_v61 }
 0x40d   :  { %14597 = vmatpush3.bf16.msra.mxu0 %v14594_v28 }
 0x4cb   :  { %v13655_v61 = vpop.f32.mrb[22].mxu0 }
 0x4cc   :  { %v3865_v62 = vpop.f32.mrb[23].mxu0 }
 0x4cd   :  { %13660 = vmatprep.mubr.msk.f32.mxu1 %vm37_vm0, %v3865_v62 }
 0x4ce   :  { %13661 = vmatmul.mubr.msk.f32.vlgmr.msra.gmra.mrb[24].mxu1 %vm37_vm0, %v13655_v61 }
 0x4cf   :  { %14561 = vmatpush3.bf16.msra.mxu1 %v14558_v25  ;;  %v13669_v0 = vpop.f32.mrb[24].mxu0 }
 0x4d0   :  { %v4026_v9 = vpop.f32.mrb[25].mxu0  ;;  %14567 = vmatprep.subr.bf16.mxu1 %v14566_v2 }
 0x4d1   :  { %13674 = vmatprep.mubr.msk.f32.mxu1 %vm37_vm0, %v4026_v9 }
 0x4d3   :  { %v13683_v16 = vpop.f32.mrb[26].mxu0 }
 0x4d4   :  { %v4187_v18 = vpop.f32.mrb[27].mxu0 }
 0x4d6   :  { %13675 = vmatmul.mubr.msk.f32.vlgmr.msra.gmra.mrb[24].mxu1 %vm37_vm0, %v13669_v0  ;;  %v14626_v0 = vpack.c.bf16 %v12484_v6, %v12483_v60 }
 0x4d7   :  { %14569 = vmatpush3.bf16.msra.mxu1 %v14566_v2  ;;  %13688 = vmatprep.mubr.msk.f32.mxu1 %vm37_vm0, %v4187_v18  ;;  %v13697_v11 = vpop.f32.mrb[28].mxu0  ;;  %v12490_v18 = vld [vmem:[%s16756_s2 + $0x1f8] sm:$0xff] }
 0x4d8   :  { %14575 = vmatprep.subr.bf16.mxu1 %v14574_v4  ;;  %v4348_v36 = vpop.f32.mrb[29].mxu0 }
 0x4db   :  { %v13711_v39 = vpop.f32.mrb[30].mxu0 }
 0x4dc   :  { %v4509_v41 = vpop.f32.mrb[31].mxu0 }
 0x4de   :  { %13689 = vmatmul.mubr.msk.f32.vlgmr.msra.gmra.mrb[24].mxu1 %vm37_vm0, %v13683_v16  ;;  %v12489_v16 = vld [vmem:[%s16756_s2 + $0x1f0] sm:$0xff] }
 0x4df   :  { %14577 = vmatpush3.bf16.msra.mxu1 %v14574_v4  ;;  %13702 = vmatprep.mubr.msk.f32.mxu1 %vm37_vm0, %v4348_v36 }
 0x4e0   :  { %14583 = vmatprep.subr.bf16.mxu1 %v14582_v40 }
 0x4e6   :  { %13703 = vmatmul.mubr.msk.f32.vlgmr.msra.gmra.mrb[24].mxu1 %vm37_vm0, %v13697_v11  ;;  %v14634_v11 = vpack.c.bf16 %v12490_v18, %v12489_v16 }
 0x4e7   :  { %14585 = vmatpush3.bf16.msra.mxu1 %v14582_v40  ;;  %13716 = vmatprep.mubr.msk.f32.mxu1 %vm37_vm0, %v4509_v41  ;;  %v12529_v40 = vld [vmem:[%s16755_s3 + $0x60] sm:$0xff]  ;;  %v12519_v41 = vld [vmem:[%s16756_s2 + $0x210] sm:$0xff] }
 0x4e8   :  { %14591 = vmatprep.subr.bf16.mxu1 %v15613_v7 }
 0x4ee   :  { %13717 = vmatmul.mubr.msk.f32.vlgmr.msra.gmra.mrb[24].mxu1 %vm37_vm0, %v13711_v39  ;;  %v14642_v39 = vpack.c.bf16 %v12496_v38, %v12495_v37 }
 0x4ef   :  { %14593 = vmatpush3.bf16.msra.mxu1 %v15613_v7  ;;  %13730 = vmatprep.mubr.msk.f32.mxu1 %vm37_vm0, %v15453_v5  ;;  %v12499_v5 = vld [vmem:[%s16755_s3 + $0x50] sm:$0xff] }
 0x4f0   :  { %14599 = vmatprep.subr.bf16.mxu1 %v15744_v63 }
 0x4f2   :  { %13731 = vmatmul.mubr.msk.f32.vlgmr.msra.gmra.mrb[26].mxu1 %vm37_vm0, %v15462_v12  ;;  %v12500_v12 = vld [vmem:[%s16755_s3 + $0x58] sm:$0xff] }
 0x4f3   :  { %14601 = vmatpush3.bf16.msra.mxu1 %v15744_v63  ;;  %13744 = vmatprep.mubr.msk.f32.mxu1 %vm37_vm0, %v15468_v13  ;;  %v14646_v13 = vpack.c.bf16 %v12500_v12, %v12499_v5  ;;  %v12520_v5 = vld [vmem:[%s16756_s2 + $0x218] sm:$0xff] }
 0x4f4   :  { %14607 = vmatprep.subr.bf16.mxu1 %v15791_v57 }
 0x4f6   :  { %13745 = vmatmul.mubr.msk.f32.vlgmr.msra.gmra.mrb[28].mxu1 %vm37_vm0, %v15478_v14  ;;  %v12465_v14 = vld [vmem:[%s16756_s2 + $0x160] sm:$0xff] }
 0x4f7   :  { %14609 = vmatpush3.bf16.msra.mxu1 %v15791_v57  ;;  %13758 = vmatprep.mubr.msk.f32.mxu1 %vm37_vm0, %v15484_v15  ;;  %v12466_v15 = vld [vmem:[%s16756_s2 + $0x168] sm:$0xff] }
 0x4f8   :  { %14615 = vmatprep.subr.bf16.mxu1 %v15613_v7 }
 0x4fa   :  { %13759 = vmatmul.mubr.msk.f32.vlgmr.msra.gmra.mrb[30].mxu1 %vm37_vm0, %v15494_v17  ;;  %v14602_v17 = vpack.c.bf16 %v12466_v15, %v12465_v14  ;;  %v14670_v15 = vpack.c.bf16 %v12520_v5, %v12519_v41  ;;  %v16185_v5 = vld [vmem:[%s16754_s1 + $0xb8] sm:$0xff] }
 0x4fb   :  { %14617 = vmatpush3.bf16.msra.mxu1 %v15613_v7  ;;  %13772 = vmatprep.mubr.msk.f32.mxu1 %vm37_vm0, %v15500_v19  ;;  %v12507_v19 = vld [vmem:[%s16756_s2 + $0x180] sm:$0xff] }
 0x4fc   :  { %14623 = vmatprep.subr.bf16.mxu1 %v15613_v7  ;;  %14603 = vmatprep.subr.bf16.mxu0 %v14602_v17 }
 0x4fe   :  { %13773 = vmatmul.mubr.msk.f32.vlgmr.msra.gmra.mrb[32].mxu1 %vm37_vm0, %v15510_v29  ;;  %v12508_v29 = vld [vmem:[%s16756_s2 + $0x188] sm:$0xff] }
 0x4ff   :  { %14625 = vmatpush3.bf16.msra.mxu1 %v15613_v7  ;;  %13786 = vmatprep.mubr.msk.f32.mxu1 %vm37_vm0, %v15516_v30  ;;  %v14654_v30 = vpack.c.bf16 %v12508_v29, %v12507_v19 }
 0x500   :  { %14631 = vmatprep.subr.bf16.mxu1 %v15744_v63 }
 0x502   :  { %13787 = vmatmul.mubr.msk.f32.vlgmr.msra.gmra.mrb[34].mxu1 %vm37_vm0, %v15526_v31  ;;  %v12406_v31 = vld [vmem:[%s16757_s4 + $0x3] ss:$0 sm:$0xff] }
 0x503   :  { %14633 = vmatpush3.bf16.msra.mxu1 %v15744_v63  ;;  %13800 = vmatprep.mubr.msk.f32.mxu1 %vm37_vm0, %v15532_v32 }
 0x504   :  { %14639 = vmatprep.subr.bf16.mxu1 %v15791_v57 }
 0x506   :  { %13801 = vmatmul.mubr.msk.f32.vlgmr.msra.gmra.mrb[36].mxu1 %vm37_vm0, %v15542_v33 }
 0x507   :  { %14641 = vmatpush3.bf16.msra.mxu1 %v15791_v57  ;;  %13814 = vmatprep.mubr.msk.f32.mxu1 %vm37_vm0, %v15548_v34 }
 0x508   :  { %14647 = vmatprep.subr.bf16.mxu1 %v14646_v13 }
 0x50a   :  { %13815 = vmatmul.mubr.msk.f32.vlgmr.msra.gmra.mrb[38].mxu1 %vm37_vm0, %v15558_v35 }
 0x50b   :  { %14649 = vmatpush3.bf16.msra.mxu1 %v14646_v13  ;;  %13828 = vmatprep.mubr.msk.f32.mxu1 %vm37_vm0, %v15787_v56  ;;  %v12478_v56 = vld [vmem:[%s16756_s2 + $0x1a8] sm:$0xff] }
 0x50c   :  { %14655 = vmatprep.subr.bf16.mxu1 %v14654_v30 }
 0x50e   :  { %13829 = vmatmul.mubr.msk.f32.vlgmr.msra.gmra.mrb[40].mxu1 %vm37_vm0, %v15785_v51  ;;  %v12477_v51 = vld [vmem:[%s16756_s2 + $0x1a0] sm:$0xff] }
 0x50f   :  { %14657 = vmatpush3.bf16.msra.mxu1 %v14654_v30  ;;  %v14618_v21 = vpack.c.bf16 %v12478_v56, %v12477_v51  ;;  %v12525_v30 = vld [vmem:[%s16756_s2 + $0x220] sm:$0xff]  ;;  %v16066_v51 = vld [vmem:[%s16754_s1 + $0x8] sm:$0xff]  ;;  %v16074_v56 = vld [vmem:[%s16754_s1 + $0x10] sm:$0xff] }
 0x5c1   :  { %v13718_v32 = vpop.f32.mrb[24].mxu1 }
 0x5c2   :  { %v14964_v33 = vadd.f32 %v13718_v32, %v12406_v31  ;;  %v4593_v34 = vpop.f32.mrb[25].mxu1 }
 0x5c3   :  { %v14965_v35 = vadd.f32 %v12406_v31, %v4593_v34  ;;  %v12526_v31 = vld [vmem:[%s16756_s2 + $0x228] sm:$0xff] }
 0x5c4   :  { %v4605_v44 = vmul.f32 0.5, %v14964_v33  ;;  %v14678_v34 = vpack.c.bf16 %v12526_v31, %v12525_v30  ;;  %v12561_v31 = vld [vmem:[%s16756_s2 + $0x2e0] sm:$0xff] }
 0x5c5   :  { %v4604_v45 = vmul.f32 0.5, %v14965_v35  ;;  %v13732_v46 = vpop.f32.mrb[26].mxu1 }
 0x5c6   :  { %15128 = vtanh.f32 %v4605_v44  ;;  %v4770_v47 = vpop.f32.mrb[27].mxu1 }
 0x5c7   :  { %15130 = vtanh.f32 %v4604_v45  ;;  %13737 = vmatprep.mubr.msk.f32.mxu0 %vm37_vm0, %v4770_v47 }
 0x5c8   :  { %13738 = vmatmul.mubr.msk.f32.vlgmr.msra.gmra.mrb[32].mxu0 %vm37_vm0, %v13732_v46 }
 0x5c9   :  { %14605 = vmatpush3.bf16.msra.mxu0 %v14602_v17  ;;  %v13746_v49 = vpop.f32.mrb[28].mxu1 }
 0x5ca   :  { %v4931_v50 = vpop.f32.mrb[29].mxu1  ;;  %14611 = vmatprep.subr.bf16.mxu0 %v14610_v48 }
 0x5cb   :  { %13751 = vmatprep.mubr.msk.f32.mxu0 %vm37_vm0, %v4931_v50  ;;  %v16058_v50 = vld [vmem:[%s16754_s1] sm:$0xff] }
 0x5cd   :  { %v13760_v57 = vpop.f32.mrb[30].mxu1 }
 0x5ce   :  { %v5092_v20 = vpop.f32.mrb[31].mxu1 }
 0x5d0   :  { %v15129_v22 = vpop.eup %15128  ;;  %13752 = vmatmul.mubr.msk.f32.vlgmr.msra.gmra.mrb[32].mxu0 %vm37_vm0, %v13746_v49 }
 0x5d1   :  { %v15131_v23 = vpop.eup %15130  ;;  %v4609_v24 = vadd.f32 1.0, %v15129_v22  ;;  %14613 = vmatpush3.bf16.msra.mxu0 %v14610_v48  ;;  %13765 = vmatprep.mubr.msk.f32.mxu0 %vm37_vm0, %v5092_v20  ;;  %v13774_v25 = vpop.f32.mrb[32].mxu1  ;;  %v16088_v20 = vld [vmem:[%s16754_s1 + $0x20] sm:$0xff]  ;;  %v12538_v22 = vld [vmem:[%s16756_s2 + $0x248] sm:$0xff] }
 0x5d2   :  { %v4608_v26 = vadd.f32 1.0, %v15131_v23  ;;  %14619 = vmatprep.subr.bf16.mxu0 %v14618_v21  ;;  %v5253_v27 = vpop.f32.mrb[33].mxu1  ;;  %v12543_v23 = vld [vmem:[%s16756_s2 + $0x250] sm:$0xff] }
 0x5d3   :  { %v4611_v28 = vmul.f32 0.5, %v4609_v24 }
 0x5d4   :  { %v4610_v61 = vmul.f32 0.5, %v4608_v26 }
 0x5d5   :  { %v13788_v62 = vpop.f32.mrb[34].mxu1 }
 0x5d6   :  { %v15961_v2 = vpack.c.bf16 %v4611_v28, %v4610_v61  ;;  %v5414_v9 = vpop.f32.mrb[35].mxu1 }
 0x5d8   :  { %13766 = vmatmul.mubr.msk.f32.vlgmr.msra.gmra.mrb[32].mxu0 %vm37_vm0, %v13760_v57  ;;  %v16081_v57 = vld [vmem:[%s16754_s1 + $0x18] sm:$0xff] }
 0x5d9   :  { %14621 = vmatpush3.bf16.msra.mxu0 %v14618_v21  ;;  %13779 = vmatprep.mubr.msk.f32.mxu0 %vm37_vm0, %v5253_v27  ;;  %v13802_v1 = vpop.f32.mrb[36].mxu1  ;;  %v12537_v21 = vld [vmem:[%s16756_s2 + $0x240] sm:$0xff] }
 0x5da   :  { %14627 = vmatprep.subr.bf16.mxu0 %v14626_v0  ;;  %v5575_v10 = vpop.f32.mrb[37].mxu1  ;;  %v14690_v24 = vpack.c.bf16 %v12538_v22, %v12537_v21  ;;  %v12502_v27 = vld [vmem:[%s16757_s4 + $0x5] ss:$0 sm:$0xff] }
 0x5dd   :  { %v13816_v4 = vpop.f32.mrb[38].mxu1 }
 0x5de   :  { %v5736_v36 = vpop.f32.mrb[39].mxu1 }
 0x5e0   :  { %13780 = vmatmul.mubr.msk.f32.vlgmr.msra.gmra.mrb[32].mxu0 %vm37_vm0, %v13774_v25  ;;  %v12544_v25 = vld [vmem:[%s16756_s2 + $0x258] sm:$0xff] }
 0x5e1   :  { %14629 = vmatpush3.bf16.msra.mxu0 %v14626_v0  ;;  %13793 = vmatprep.mubr.msk.f32.mxu0 %vm37_vm0, %v5414_v9  ;;  %v14698_v26 = vpack.c.bf16 %v12544_v25, %v12543_v23  ;;  %v12550_v0 = vld [vmem:[%s16756_s2 + $0x268] sm:$0xff]  ;;  %v12573_v23 = vld [vmem:[%s16756_s2 + $0x350] sm:$0xff] }
 0x5e2   :  { %14635 = vmatprep.subr.bf16.mxu0 %v14634_v11 }
 0x5e8   :  { %13794 = vmatmul.mubr.msk.f32.vlgmr.msra.gmra.mrb[32].mxu0 %vm37_vm0, %v13788_v62  ;;  %v12549_v62 = vld [vmem:[%s16756_s2 + $0x260] sm:$0xff] }
 0x5e9   :  { %14637 = vmatpush3.bf16.msra.mxu0 %v14634_v11  ;;  %13807 = vmatprep.mubr.msk.f32.mxu0 %vm37_vm0, %v5575_v10  ;;  %v14706_v18 = vpack.c.bf16 %v12550_v0, %v12549_v62  ;;  %v16285_v62 = vld [vmem:[%s16754_s1 + $0x50] sm:$0xff]  ;;  %v16293_v0 = vld [vmem:[%s16754_s1 + $0x58] sm:$0xff] }
 0x5ea   :  { %14643 = vmatprep.subr.bf16.mxu0 %v14642_v39 }
 0x5f0   :  { %13808 = vmatmul.mubr.msk.f32.vlgmr.msra.gmra.mrb[32].mxu0 %vm37_vm0, %v13802_v1 }
 0x5f1   :  { %14645 = vmatpush3.bf16.msra.mxu0 %v14642_v39  ;;  %13821 = vmatprep.mubr.msk.f32.mxu0 %vm37_vm0, %v5736_v36 }
 0x5f2   :  { %14651 = vmatprep.subr.bf16.mxu0 %v15613_v7 }
 0x5f8   :  { %13822 = vmatmul.mubr.msk.f32.vlgmr.msra.gmra.mrb[32].mxu0 %vm37_vm0, %v13816_v4 }
 0x5f9   :  { %14653 = vmatpush3.bf16.msra.mxu0 %v15613_v7  ;;  %13835 = vmatprep.mubr.msk.f32.mxu0 %vm37_vm0, %v15639_v8  ;;  %v12530_v8 = vld [vmem:[%s16755_s3 + $0x68] sm:$0xff] }
 0x5fa   :  { %14659 = vmatprep.subr.bf16.mxu0 %v15744_v63 }
 0x5fc   :  { %13836 = vmatmul.mubr.msk.f32.vlgmr.msra.gmra.mrb[34].mxu0 %vm37_vm0, %v15648_v52  ;;  %v14682_v52 = vpack.c.bf16 %v12530_v8, %v12529_v40 }
 0x5fd   :  { %14661 = vmatpush3.bf16.msra.mxu0 %v15744_v63  ;;  %13849 = vmatprep.mubr.msk.f32.mxu0 %vm37_vm0, %v15654_v53  ;;  %v12514_v53 = vld [vmem:[%s16756_s2 + $0x198] sm:$0xff] }
 0x5fe   :  { %14667 = vmatprep.subr.bf16.mxu0 %v15613_v7 }
 0x600   :  { %13850 = vmatmul.mubr.msk.f32.vlgmr.msra.gmra.mrb[36].mxu0 %vm37_vm0, %v15664_v54 }
 0x601   :  { %14669 = vmatpush3.bf16.msra.mxu0 %v15613_v7  ;;  %13863 = vmatprep.mubr.msk.f32.mxu0 %vm37_vm0, %v15670_v55  ;;  %v12513_v7 = vld [vmem:[%s16756_s2 + $0x190] sm:$0xff]  ;;  %v12454_v55 = vld [vmem:[%s16757_s4 + $0x4] ss:$0 sm:$0xff] }
 0x602   :  { %14675 = vmatprep.subr.bf16.mxu0 %v15744_v63  ;;  %v14662_v54 = vpack.c.bf16 %v12514_v53, %v12513_v7  ;;  %v16131_v7 = vld [vmem:[%s16754_s1 + $0x28] sm:$0xff]  ;;  %v16139_v53 = vld [vmem:[%s16754_s1 + $0x90] sm:$0xff] }
 0x604   :  { %13864 = vmatmul.mubr.msk.f32.vlgmr.msra.gmra.mrb[38].mxu0 %vm37_vm0, %v15686_v58  ;;  %14663 = vmatprep.subr.bf16.mxu1 %v14662_v54 }
 0x605   :  { %14677 = vmatpush3.bf16.msra.mxu0 %v15744_v63  ;;  %13877 = vmatprep.mubr.msk.f32.mxu0 %vm37_vm0, %v15692_v59 }
 0x606   :  { %14683 = vmatprep.subr.bf16.mxu0 %v14682_v52 }
 0x608   :  { %13878 = vmatmul.mubr.msk.f32.vlgmr.msra.gmra.mrb[40].mxu0 %vm37_vm0, %v15702_v3 }
 0x609   :  { %14685 = vmatpush3.bf16.msra.mxu0 %v14682_v52  ;;  %13891 = vmatprep.mubr.msk.f32.mxu0 %vm37_vm0, %v4610_v61 }
 0x60a   :  { %14691 = vmatprep.subr.bf16.mxu0 %v14690_v24 }
 0x60c   :  { %13892 = vmatmul.mubr.msk.f32.vlgmr.msra.gmra.mrb[42].mxu0 %vm37_vm0, %v4611_v28 }
 0x60d   :  { %14693 = vmatpush3.bf16.msra.mxu0 %v14690_v24  ;;  %v12574_v24 = vld [vmem:[%s16756_s2 + $0x358] sm:$0xff] }
 0x60e   :  { %14699 = vmatprep.subr.bf16.mxu0 %v14698_v26 }
 0x6cb   :  { %v13823_v58 = vpop.f32.mrb[32].mxu0 }
 0x6cc   :  { %v14966_v59 = vadd.f32 %v13823_v58, %v12454_v55  ;;  %v5820_v3 = vpop.f32.mrb[33].mxu0  ;;  %v12577_v58 = vld [vmem:[%s16755_s3 + $0x70] sm:$0xff] }
 0x6cd   :  { %v14967_v63 = vadd.f32 %v12454_v55, %v5820_v3  ;;  %v16155_v55 = vld [vmem:[%s16754_s1 + $0xa0] sm:$0xff]  ;;  %v16169_v3 = vld [vmem:[%s16754_s1 + $0xa8] sm:$0xff] }
 0x6ce   :  { %v5832_v13 = vmul.f32 0.5, %v14966_v59  ;;  %v12578_v59 = vld [vmem:[%s16755_s3 + $0x78] sm:$0xff] }
 0x6cf   :  { %v13837_v12 = vpop.f32.mrb[34].mxu0  ;;  %v5831_v17 = vmul.f32 0.5, %v14967_v63  ;;  %v16177_v63 = vld [vmem:[%s16754_s1 + $0xb0] sm:$0xff]  ;;  %v14742_v41 = vpack.c.bf16 %v12578_v59, %v12577_v58  ;;  %v12592_v58 = vld [vmem:[%s16756_s2 + $0x288] sm:$0xff] }
 0x6d0   :  { %v5997_v14 = vpop.f32.mrb[35].mxu0  ;;  %15132 = vtanh.f32 %v5832_v13  ;;  %v16200_v13 = vld [vmem:[%s16754_s1 + $0x118] sm:$0xff] }
 0x6d1   :  { %13842 = vmatprep.mubr.msk.f32.mxu1 %vm37_vm0, %v5997_v14  ;;  %15134 = vtanh.f32 %v5831_v17  ;;  %v12555_v14 = vld [vmem:[%s16756_s2 + $0x2d0] sm:$0xff] }
 0x6d2   :  { %13843 = vmatmul.mubr.msk.f32.vlgmr.msra.gmra.mrb[40].mxu1 %vm37_vm0, %v13837_v12  ;;  %v16193_v12 = vld [vmem:[%s16754_s1 + $0x110] sm:$0xff] }
 0x6d3   :  { %14665 = vmatpush3.bf16.msra.mxu1 %v14662_v54  ;;  %v13851_v19 = vpop.f32.mrb[36].mxu0  ;;  %v16147_v54 = vld [vmem:[%s16754_s1 + $0x98] sm:$0xff] }
 0x6d4   :  { %v6158_v29 = vpop.f32.mrb[37].mxu0  ;;  %14671 = vmatprep.subr.bf16.mxu1 %v14670_v15 }
 0x6d5   :  { %13856 = vmatprep.mubr.msk.f32.mxu1 %vm37_vm0, %v6158_v29  ;;  %v12586_v29 = vld [vmem:[%s16756_s2 + $0x278] sm:$0xff] }
 0x6d7   :  { %v13865_v32 = vpop.f32.mrb[38].mxu0 }
 0x6d8   :  { %v6319_v33 = vpop.f32.mrb[39].mxu0 }
 0x6da   :  { %13857 = vmatmul.mubr.msk.f32.vlgmr.msra.gmra.mrb[40].mxu1 %vm37_vm0, %v13851_v19  ;;  %v15133_v43 = vpop.eup %15132  ;;  %v12585_v19 = vld [vmem:[%s16756_s2 + $0x270] sm:$0xff] }
 0x6db   :  { %14673 = vmatpush3.bf16.msra.mxu1 %v14670_v15  ;;  %13870 = vmatprep.mubr.msk.f32.mxu1 %vm37_vm0, %v6319_v33  ;;  %v13879_v35 = vpop.f32.mrb[40].mxu0  ;;  %v15135_v44 = vpop.eup %15134  ;;  %v5836_v45 = vadd.f32 1.0, %v15133_v43  ;;  %v12556_v15 = vld [vmem:[%s16756_s2 + $0x2d8] sm:$0xff]  ;;  %v14750_v30 = vpack.c.bf16 %v12586_v29, %v12585_v19 }
 0x6dc   :  { %14679 = vmatprep.subr.bf16.mxu1 %v14678_v34  ;;  %v6480_v42 = vpop.f32.mrb[41].mxu0  ;;  %v5835_v46 = vadd.f32 1.0, %v15135_v44  ;;  %v14714_v17 = vpack.c.bf16 %v12556_v15, %v12555_v14  ;;  %v12567_v44 = vld [vmem:[%s16756_s2 + $0x2f0] sm:$0xff] }
 0x6dd   :  { %v16045_v47 = vmul.f32 0.5, %v5836_v45  ;;  %v12568_v45 = vld [vmem:[%s16756_s2 + $0x2f8] sm:$0xff] }
 0x6de   :  { %v16047_v48 = vmul.f32 0.5, %v5835_v46 }
 0x6e0   :  { %v16051_v49 = vpack.c.bf16 %v16045_v47, %v16047_v48 }
 0x6e2   :  { %13871 = vmatmul.mubr.msk.f32.vlgmr.msra.gmra.mrb[40].mxu1 %vm37_vm0, %v13865_v32  ;;  %v12562_v32 = vld [vmem:[%s16756_s2 + $0x2e8] sm:$0xff] }
 0x6e3   :  { %14681 = vmatpush3.bf16.msra.mxu1 %v14678_v34  ;;  %13884 = vmatprep.mubr.msk.f32.mxu1 %vm37_vm0, %v6480_v42 }
 0x6e4   :  { %14687 = vmatprep.subr.bf16.mxu1 %v15961_v2 }
 0x6ea   :  { %13885 = vmatmul.mubr.msk.f32.vlgmr.msra.gmra.mrb[40].mxu1 %vm37_vm0, %v13879_v35  ;;  %v14722_v35 = vpack.c.bf16 %v12562_v32, %v12561_v31  ;;  %v12598_v31 = vld [vmem:[%s16756_s2 + $0x298] sm:$0xff] }
 0x6eb   :  { %14689 = vmatpush3.bf16.msra.mxu1 %v15961_v2  ;;  %13898 = vmatprep.mubr.msk.f32.mxu1 %vm37_vm0, %v16058_v50 }
 0x6ec   :  { %14695 = vmatprep.subr.bf16.mxu1 %v16051_v49 }
 0x6ee   :  { %13899 = vmatmul.mubr.msk.f32.vlgmr.msra.gmra.mrb[42].mxu1 %vm37_vm0, %v16066_v51 }
 0x6ef   :  { %14697 = vmatpush3.bf16.msra.mxu1 %v16051_v49  ;;  %13912 = vmatprep.mubr.msk.f32.mxu1 %vm37_vm0, %v16074_v56 }
 0x6f2   :  { %13913 = vmatmul.mubr.msk.f32.vlgmr.msra.gmra.mrb[44].mxu1 %vm37_vm0, %v16081_v57 }
 0x6f3   :  { %13926 = vmatprep.mubr.msk.f32.mxu1 %vm37_vm0, %v16088_v20 }
 0x7bd   :  { %v13886_v28 = vpop.f32.mrb[40].mxu1 }
 0x7be   :  { %v14968_v60 = vadd.f32 %v13886_v28, %v12502_v27  ;;  %v6564_v6 = vpop.f32.mrb[41].mxu1  ;;  %v16253_v28 = vld [vmem:[%s16754_s1 + $0x30] sm:$0xff] }
 0x7bf   :  { %v14969_v61 = vadd.f32 %v12502_v27, %v6564_v6  ;;  %v16269_v6 = vld [vmem:[%s16754_s1 + $0x40] sm:$0xff] }
 0x7c0   :  { %v6576_v9 = vmul.f32 0.5, %v14968_v60  ;;  %v16261_v60 = vld [vmem:[%s16754_s1 + $0x38] sm:$0xff] }
 0x7c1   :  { %v6575_v1 = vmul.f32 0.5, %v14969_v61  ;;  %v13900_v10 = vpop.f32.mrb[42].mxu1  ;;  %v16277_v61 = vld [vmem:[%s16754_s1 + $0x48] sm:$0xff] }
 0x7c2   :  { %15136 = vtanh.f32 %v6576_v9  ;;  %v6741_v16 = vpop.f32.mrb[43].mxu1  ;;  %v16301_v9 = vld [vmem:[%s16754_s1 + $0x80] sm:$0xff] }
 0x7c3   :  { %15138 = vtanh.f32 %v6575_v1  ;;  %13905 = vmatprep.mubr.msk.f32.mxu0 %vm37_vm0, %v6741_v16  ;;  %v16309_v1 = vld [vmem:[%s16754_s1 + $0x88] sm:$0xff]  ;;  %v12625_v16 = vld [vmem:[%s16755_s3 + $0x80] sm:$0xff] }
 0x7c4   :  { %13906 = vmatmul.mubr.msk.f32.vlgmr.msra.gmra.mrb[42].mxu0 %vm37_vm0, %v13900_v10  ;;  %v16317_v10 = vld [vmem:[%s16754_s1 + $0xc0] sm:$0xff] }
 0x7c5   :  { %14701 = vmatpush3.bf16.msra.mxu0 %v14698_v26  ;;  %v13914_v4 = vpop.f32.mrb[44].mxu1  ;;  %v14738_v26 = vpack.c.bf16 %v12574_v24, %v12573_v23 }
 0x7c6   :  { %v6902_v11 = vpop.f32.mrb[45].mxu1  ;;  %14707 = vmatprep.subr.bf16.mxu0 %v14706_v18 }
 0x7c7   :  { %13919 = vmatprep.mubr.msk.f32.mxu0 %vm37_vm0, %v6902_v11  ;;  %v16339_v11 = vld [vmem:[%s16754_s1 + $0xd0] sm:$0xff] }
 0x7cc   :  { %v15137_v36 = vpop.eup %15136  ;;  %13920 = vmatmul.mubr.msk.f32.vlgmr.msra.gmra.mrb[42].mxu0 %vm37_vm0, %v13914_v4  ;;  %v16331_v4 = vld [vmem:[%s16754_s1 + $0xc8] sm:$0xff] }
 0x7cd   :  { %v15139_v37 = vpop.eup %15138  ;;  %v6580_v38 = vadd.f32 1.0, %v15137_v36  ;;  %14709 = vmatpush3.bf16.msra.mxu0 %v14706_v18  ;;  %v12626_v18 = vld [vmem:[%s16755_s3 + $0x88] sm:$0xff] }
 0x7ce   :  { %v6579_v39 = vadd.f32 1.0, %v15139_v37  ;;  %14715 = vmatprep.subr.bf16.mxu0 %v14714_v17  ;;  %v14802_v36 = vpack.c.bf16 %v12626_v18, %v12625_v16  ;;  %v16347_v37 = vld [vmem:[%s16754_s1 + $0xd8] sm:$0xff]  ;;  %v12609_v18 = vld [vmem:[%s16756_s2 + $0x300] sm:$0xff] }
 0x7cf   :  { %v16117_v40 = vmul.f32 0.5, %v6580_v38  ;;  %v16355_v38 = vld [vmem:[%s16754_s1 + $0xe0] sm:$0xff] }
 0x7d0   :  { %v16119_v8 = vmul.f32 0.5, %v6579_v39  ;;  %v16362_v39 = vld [vmem:[%s16754_s1 + $0xe8] sm:$0xff] }
 0x7d2   :  { %v16123_v52 = vpack.c.bf16 %v16117_v40, %v16119_v8 }
 0x7d4   :  { %14703 = vmatprep.subr.bf16.mxu1 %v16123_v52 }
 0x7d5   :  { %14705 = vmatpush3.bf16.msra.mxu1 %v16123_v52 }
 0x7d6   :  { %14711 = vmatprep.subr.bf16.mxu1 %v15961_v2 }
 0x7d8   :  { %13927 = vmatmul.mubr.msk.f32.vlgmr.msra.gmra.mrb[46].mxu1 %vm37_vm0, %v16131_v7 }
 0x7d9   :  { %14713 = vmatpush3.bf16.msra.mxu1 %v15961_v2  ;;  %13940 = vmatprep.mubr.msk.f32.mxu1 %vm37_vm0, %v16139_v53 }
 0x7da   :  { %14719 = vmatprep.subr.bf16.mxu1 %v16051_v49 }
 0x7dc   :  { %13941 = vmatmul.mubr.msk.f32.vlgmr.msra.gmra.mrb[48].mxu1 %vm37_vm0, %v16147_v54 }
 0x7dd   :  { %14721 = vmatpush3.bf16.msra.mxu1 %v16051_v49  ;;  %13954 = vmatprep.mubr.msk.f32.mxu1 %vm37_vm0, %v16155_v55 }
 0x7de   :  { %14727 = vmatprep.subr.bf16.mxu1 %v16123_v52 }
 0x7e0   :  { %13955 = vmatmul.mubr.msk.f32.vlgmr.msra.gmra.mrb[50].mxu1 %vm37_vm0, %v16169_v3 }
 0x7e1   :  { %14729 = vmatpush3.bf16.msra.mxu1 %v16123_v52  ;;  %13968 = vmatprep.mubr.msk.f32.mxu1 %vm37_vm0, %v16177_v63 }
 0x7e2   :  { %14735 = vmatprep.subr.bf16.mxu1 %v16051_v49 }
 0x7e4   :  { %13969 = vmatmul.mubr.msk.f32.vlgmr.msra.gmra.mrb[52].mxu1 %vm37_vm0, %v16185_v5 }
 0x7e5   :  { %14737 = vmatpush3.bf16.msra.mxu1 %v16051_v49  ;;  %13982 = vmatprep.mubr.msk.f32.mxu1 %vm37_vm0, %v16193_v12 }
 0x7e6   :  { %14743 = vmatprep.subr.bf16.mxu1 %v14742_v41 }
 0x7e8   :  { %13983 = vmatmul.mubr.msk.f32.vlgmr.msra.gmra.mrb[54].mxu1 %vm37_vm0, %v16200_v13 }
 0x7e9   :  { %14745 = vmatpush3.bf16.msra.mxu1 %v14742_v41  ;;  %13996 = vmatprep.mubr.msk.f32.mxu1 %vm37_vm0, %v16047_v48  ;;  %v14730_v48 = vpack.c.bf16 %v12568_v45, %v12567_v44  ;;  %v12633_v41 = vld [vmem:[%s16756_s2 + $0x2a0] sm:$0xff] }
 0x7ea   :  { %14751 = vmatprep.subr.bf16.mxu1 %v14750_v30  ;;  %v12603_v45 = vld [vmem:[%s16756_s2 + $0x2c0] sm:$0xff] }
 0x7ec   :  { %13997 = vmatmul.mubr.msk.f32.vlgmr.msra.gmra.mrb[56].mxu1 %vm37_vm0, %v16045_v47 }
 0x7ed   :  { %14753 = vmatpush3.bf16.msra.mxu1 %v14750_v30  ;;  %v12597_v30 = vld [vmem:[%s16756_s2 + $0x290] sm:$0xff] }
 0x8ab   :  { %v13928_v33 = vpop.f32.mrb[46].mxu1 }
 0x8ac   :  { %v7063_v34 = vpop.f32.mrb[47].mxu1 }
 0x8ad   :  { %13933 = vmatprep.mubr.msk.f32.mxu0 %vm37_vm0, %v7063_v34 }
 0x8ae   :  { %13934 = vmatmul.mubr.msk.f32.vlgmr.msra.gmra.mrb[42].mxu0 %vm37_vm0, %v13928_v33 }
 0x8af   :  { %14717 = vmatpush3.bf16.msra.mxu0 %v14714_v17  ;;  %v13942_v42 = vpop.f32.mrb[48].mxu1 }
 0x8b0   :  { %v7224_v43 = vpop.f32.mrb[49].mxu1  ;;  %14723 = vmatprep.subr.bf16.mxu0 %v14722_v35 }
 0x8b1   :  { %13947 = vmatprep.mubr.msk.f32.mxu0 %vm37_vm0, %v7224_v43 }
 0x8b3   :  { %v13956_v46 = vpop.f32.mrb[50].mxu1 }
 0x8b4   :  { %v7385_v47 = vpop.f32.mrb[51].mxu1 }
 0x8b6   :  { %13948 = vmatmul.mubr.msk.f32.vlgmr.msra.gmra.mrb[42].mxu0 %vm37_vm0, %v13942_v42  ;;  %v14766_v42 = vpack.c.bf16 %v12598_v31, %v12597_v30  ;;  %v12621_v31 = vld [vmem:[%s16756_s2 + $0x320] sm:$0xff] }
 0x8b7   :  { %14725 = vmatpush3.bf16.msra.mxu0 %v14722_v35  ;;  %13961 = vmatprep.mubr.msk.f32.mxu0 %vm37_vm0, %v7385_v47  ;;  %v13970_v21 = vpop.f32.mrb[52].mxu1 }
 0x8b8   :  { %14731 = vmatprep.subr.bf16.mxu0 %v14730_v48  ;;  %v7546_v22 = vpop.f32.mrb[53].mxu1 }
 0x8bb   :  { %v13984_v25 = vpop.f32.mrb[54].mxu1 }
 0x8bc   :  { %v7707_v27 = vpop.f32.mrb[55].mxu1 }
 0x8be   :  { %13962 = vmatmul.mubr.msk.f32.vlgmr.msra.gmra.mrb[42].mxu0 %vm37_vm0, %v13956_v46  ;;  %v12604_v46 = vld [vmem:[%s16756_s2 + $0x2c8] sm:$0xff] }
 0x8bf   :  { %14733 = vmatpush3.bf16.msra.mxu0 %v14730_v48  ;;  %13975 = vmatprep.mubr.msk.f32.mxu0 %vm37_vm0, %v7546_v22 }
 0x8c0   :  { %14739 = vmatprep.subr.bf16.mxu0 %v14738_v26 }
 0x8c6   :  { %13976 = vmatmul.mubr.msk.f32.vlgmr.msra.gmra.mrb[42].mxu0 %vm37_vm0, %v13970_v21  ;;  %v14774_v21 = vpack.c.bf16 %v12604_v46, %v12603_v45  ;;  %v15191_v45 = vld [vmem:[%s16754_s1 + $0x78] sm:$0xff]  ;;  %v15192_v46 = vld [vmem:[%s16754_s1 + $0xf0] sm:$0xff] }
 0x8c7   :  { %14741 = vmatpush3.bf16.msra.mxu0 %v14738_v26  ;;  %13989 = vmatprep.mubr.msk.f32.mxu0 %vm37_vm0, %v7707_v27 }
 0x8c8   :  { %14747 = vmatprep.subr.bf16.mxu0 %v15961_v2 }
 0x8ce   :  { %13990 = vmatmul.mubr.msk.f32.vlgmr.msra.gmra.mrb[42].mxu0 %vm37_vm0, %v13984_v25 }
 0x8cf   :  { %14749 = vmatpush3.bf16.msra.mxu0 %v15961_v2  ;;  %14003 = vmatprep.mubr.msk.f32.mxu0 %vm37_vm0, %v16253_v28 }
 0x8d0   :  { %14755 = vmatprep.subr.bf16.mxu0 %v16051_v49 }
 0x8d2   :  { %14004 = vmatmul.mubr.msk.f32.vlgmr.msra.gmra.mrb[44].mxu0 %vm37_vm0, %v16261_v60 }
 0x8d3   :  { %14757 = vmatpush3.bf16.msra.mxu0 %v16051_v49  ;;  %14017 = vmatprep.mubr.msk.f32.mxu0 %vm37_vm0, %v16269_v6 }
 0x8d4   :  { %14763 = vmatprep.subr.bf16.mxu0 %v16123_v52 }
 0x8d6   :  { %14018 = vmatmul.mubr.msk.f32.vlgmr.msra.gmra.mrb[46].mxu0 %vm37_vm0, %v16277_v61 }
 0x8d7   :  { %14765 = vmatpush3.bf16.msra.mxu0 %v16123_v52  ;;  %14031 = vmatprep.mubr.msk.f32.mxu0 %vm37_vm0, %v16285_v62 }
 0x8d8   :  { %14771 = vmatprep.subr.bf16.mxu0 %v15961_v2 }
 0x8da   :  { %14032 = vmatmul.mubr.msk.f32.vlgmr.msra.gmra.mrb[48].mxu0 %vm37_vm0, %v16293_v0 }
 0x8db   :  { %14773 = vmatpush3.bf16.msra.mxu0 %v15961_v2  ;;  %14045 = vmatprep.mubr.msk.f32.mxu0 %vm37_vm0, %v16301_v9 }
 0x8dc   :  { %14779 = vmatprep.subr.bf16.mxu0 %v15961_v2 }
 0x8de   :  { %14046 = vmatmul.mubr.msk.f32.vlgmr.msra.gmra.mrb[50].mxu0 %vm37_vm0, %v16309_v1 }
 0x8df   :  { %14781 = vmatpush3.bf16.msra.mxu0 %v15961_v2  ;;  %14059 = vmatprep.mubr.msk.f32.mxu0 %vm37_vm0, %v16317_v10 }
 0x8e0   :  { %14787 = vmatprep.subr.bf16.mxu0 %v16051_v49 }
 0x8e2   :  { %14060 = vmatmul.mubr.msk.f32.vlgmr.msra.gmra.mrb[52].mxu0 %vm37_vm0, %v16331_v4 }
 0x8e3   :  { %14789 = vmatpush3.bf16.msra.mxu0 %v16051_v49  ;;  %14073 = vmatprep.mubr.msk.f32.mxu0 %vm37_vm0, %v16339_v11 }
 0x8e4   :  { %14795 = vmatprep.subr.bf16.mxu0 %v16123_v52 }
 0x8e6   :  { %14074 = vmatmul.mubr.msk.f32.vlgmr.msra.gmra.mrb[54].mxu0 %vm37_vm0, %v16347_v37 }
 0x8e7   :  { %14797 = vmatpush3.bf16.msra.mxu0 %v16123_v52  ;;  %14087 = vmatprep.mubr.msk.f32.mxu0 %vm37_vm0, %v16355_v38  ;;  %v12591_v52 = vld [vmem:[%s16756_s2 + $0x280] sm:$0xff] }
 0x8e8   :  { %14803 = vmatprep.subr.bf16.mxu0 %v14802_v36  ;;  %v14758_v59 = vpack.c.bf16 %v12592_v58, %v12591_v52 }
 0x8ea   :  { %14088 = vmatmul.mubr.msk.f32.vlgmr.msra.gmra.mrb[56].mxu0 %vm37_vm0, %v16362_v39  ;;  %14759 = vmatprep.subr.bf16.mxu1 %v14758_v59 }
 0x8eb   :  { %14805 = vmatpush3.bf16.msra.mxu0 %v14802_v36  ;;  %14101 = vmatprep.mubr.msk.f32.mxu0 %vm37_vm0, %v16119_v8  ;;  %v12634_v8 = vld [vmem:[%s16756_s2 + $0x2a8] sm:$0xff] }
 0x8ec   :  { %v14810_v14 = vpack.c.bf16 %v12634_v8, %v12633_v41  ;;  %v12610_v36 = vld [vmem:[%s16756_s2 + $0x308] sm:$0xff] }
 0x8ed   :  { %v14782_v41 = vpack.c.bf16 %v12610_v36, %v12609_v18  ;;  %v12646_v36 = vld [vmem:[%s16756_s2 + $0x338] sm:$0xff] }
 0x8ee   :  { %14102 = vmatmul.mubr.msk.f32.vlgmr.msra.gmra.mrb[58].mxu0 %vm37_vm0, %v16117_v40  ;;  %14811 = vmatprep.subr.bf16.mxu0 %v14810_v14  ;;  %v12532_v40 = vld [vmem:[%s16757_s4 + $0x6] ss:$0 sm:$0xff] }
 0x8ef   :  { %14813 = vmatpush3.bf16.msra.mxu0 %v14810_v14 }
 0x9a1   :  { %v13991_v15 = vpop.f32.mrb[42].mxu0 }
 0x9a2   :  { %v14970_v17 = vadd.f32 %v13991_v15, %v12532_v40  ;;  %v7791_v19 = vpop.f32.mrb[43].mxu0  ;;  %v12615_v15 = vld [vmem:[%s16756_s2 + $0x310] sm:$0xff] }
 0x9a3   :  { %v14971_v29 = vadd.f32 %v12532_v40, %v7791_v19 }
 0x9a4   :  { %v7803_v32 = vmul.f32 0.5, %v14970_v17  ;;  %v12616_v17 = vld [vmem:[%s16756_s2 + $0x318] sm:$0xff] }
 0x9a5   :  { %v7802_v33 = vmul.f32 0.5, %v14971_v29  ;;  %v14005_v34 = vpop.f32.mrb[44].mxu0  ;;  %v14790_v29 = vpack.c.bf16 %v12616_v17, %v12615_v15  ;;  %v12651_v17 = vld [vmem:[%s16756_s2 + $0x340] sm:$0xff] }
 0x9a6   :  { %15140 = vtanh.f32 %v7803_v32  ;;  %v7968_v35 = vpop.f32.mrb[45].mxu0  ;;  %v12622_v32 = vld [vmem:[%s16756_s2 + $0x328] sm:$0xff] }
 0x9a7   :  { %15142 = vtanh.f32 %v7802_v33  ;;  %14010 = vmatprep.mubr.msk.f32.mxu1 %vm37_vm0, %v7968_v35  ;;  %v14798_v33 = vpack.c.bf16 %v12622_v32, %v12621_v31  ;;  %v15189_v35 = vld [vmem:[%s16754_s1 + $0x68] sm:$0xff] }
 0x9a8   :  { %14011 = vmatmul.mubr.msk.f32.vlgmr.msra.gmra.mrb[56].mxu1 %vm37_vm0, %v14005_v34  ;;  %v15188_v34 = vld [vmem:[%s16754_s1 + $0x60] sm:$0xff] }
 0x9a9   :  { %14761 = vmatpush3.bf16.msra.mxu1 %v14758_v59  ;;  %v14019_v43 = vpop.f32.mrb[46].mxu0 }
 0x9aa   :  { %v8129_v44 = vpop.f32.mrb[47].mxu0  ;;  %14767 = vmatprep.subr.bf16.mxu1 %v14766_v42 }
 0x9ab   :  { %14024 = vmatprep.mubr.msk.f32.mxu1 %vm37_vm0, %v8129_v44  ;;  %v12656_v44 = vld [vmem:[%s16755_s3 + $0x98] sm:$0xff] }
 0x9ad   :  { %v14033_v47 = vpop.f32.mrb[48].mxu0 }
 0x9ae   :  { %v8290_v48 = vpop.f32.mrb[49].mxu0 }
 0x9b0   :  { %v15141_v22 = vpop.eup %15140  ;;  %14025 = vmatmul.mubr.msk.f32.vlgmr.msra.gmra.mrb[56].mxu1 %vm37_vm0, %v14019_v43  ;;  %v12655_v43 = vld [vmem:[%s16755_s3 + $0x90] sm:$0xff] }
 0x9b1   :  { %v15143_v23 = vpop.eup %15142  ;;  %v7807_v24 = vadd.f32 1.0, %v15141_v22  ;;  %14769 = vmatpush3.bf16.msra.mxu1 %v14766_v42  ;;  %14038 = vmatprep.mubr.msk.f32.mxu1 %vm37_vm0, %v8290_v48  ;;  %v14047_v25 = vpop.f32.mrb[50].mxu0  ;;  %v15190_v42 = vld [vmem:[%s16754_s1 + $0x70] sm:$0xff]  ;;  %v15193_v48 = vld [vmem:[%s16754_s1 + $0xf8] sm:$0xff] }
 0x9b2   :  { %v7806_v26 = vadd.f32 1.0, %v15143_v23  ;;  %14775 = vmatprep.subr.bf16.mxu1 %v14774_v21  ;;  %v8451_v27 = vpop.f32.mrb[51].mxu0  ;;  %v12640_v22 = vld [vmem:[%s16756_s2 + $0x2b8] sm:$0xff] }
 0x9b3   :  { %v16402_v16 = vmul.f32 0.5, %v7807_v24  ;;  %v12580_v24 = vld [vmem:[%s16757_s4 + $0x7] ss:$0 sm:$0xff] }
 0x9b4   :  { %v7808_v52 = vmul.f32 0.5, %v7806_v26 }
 0x9b5   :  { %v14061_v58 = vpop.f32.mrb[52].mxu0 }
 0x9b6   :  { %v16411_v59 = vpack.c.bf16 %v16402_v16, %v7808_v52  ;;  %v8612_v8 = vpop.f32.mrb[53].mxu0 }
 0x9b8   :  { %14039 = vmatmul.mubr.msk.f32.vlgmr.msra.gmra.mrb[56].mxu1 %vm37_vm0, %v14033_v47  ;;  %v14838_v47 = vpack.c.bf16 %v12656_v44, %v12655_v43 }
 0x9b9   :  { %14777 = vmatpush3.bf16.msra.mxu1 %v14774_v21  ;;  %14052 = vmatprep.mubr.msk.f32.mxu1 %vm37_vm0, %v8451_v27  ;;  %v14075_v14 = vpop.f32.mrb[54].mxu0  ;;  %v15195_v21 = vld [vmem:[%s16754_s1 + $0x108] sm:$0xff] }
 0x9ba   :  { %14783 = vmatprep.subr.bf16.mxu1 %v14782_v41  ;;  %v8773_v40 = vpop.f32.mrb[55].mxu0 }
 0x9bd   :  { %v14089_v19 = vpop.f32.mrb[56].mxu0 }
 0x9be   :  { %v8934_v30 = vpop.f32.mrb[57].mxu0 }
 0x9c0   :  { %14053 = vmatmul.mubr.msk.f32.vlgmr.msra.gmra.mrb[56].mxu1 %vm37_vm0, %v14047_v25 }
 0x9c1   :  { %14785 = vmatpush3.bf16.msra.mxu1 %v14782_v41  ;;  %14066 = vmatprep.mubr.msk.f32.mxu1 %vm37_vm0, %v8612_v8 }
 0x9c2   :  { %14791 = vmatprep.subr.bf16.mxu1 %v14790_v29 }
 0x9c8   :  { %14067 = vmatmul.mubr.msk.f32.vlgmr.msra.gmra.mrb[56].mxu1 %vm37_vm0, %v14061_v58 }
 0x9c9   :  { %14793 = vmatpush3.bf16.msra.mxu1 %v14790_v29  ;;  %14080 = vmatprep.mubr.msk.f32.mxu1 %vm37_vm0, %v8773_v40 }
 0x9ca   :  { %14799 = vmatprep.subr.bf16.mxu1 %v14798_v33 }
 0x9d0   :  { %14081 = vmatmul.mubr.msk.f32.vlgmr.msra.gmra.mrb[56].mxu1 %vm37_vm0, %v14075_v14 }
 0x9d1   :  { %14801 = vmatpush3.bf16.msra.mxu1 %v14798_v33  ;;  %14094 = vmatprep.mubr.msk.f32.mxu1 %vm37_vm0, %v8934_v30 }
 0x9d2   :  { %14807 = vmatprep.subr.bf16.mxu1 %v15961_v2 }
 0x9d8   :  { %14095 = vmatmul.mubr.msk.f32.vlgmr.msra.gmra.mrb[56].mxu1 %vm37_vm0, %v14089_v19  ;;  %v12652_v19 = vld [vmem:[%s16756_s2 + $0x348] sm:$0xff] }
 0x9d9   :  { %14809 = vmatpush3.bf16.msra.mxu1 %v15961_v2  ;;  %14108 = vmatprep.mubr.msk.f32.mxu1 %vm37_vm0, %v15188_v34  ;;  %v14834_v31 = vpack.c.bf16 %v12652_v19, %v12651_v17  ;;  %v12687_v19 = vld [vmem:[%s16756_s2 + $0x400] sm:$0xff] }
 0x9da   :  { %14815 = vmatprep.subr.bf16.mxu1 %v16051_v49 }
 0x9dc   :  { %14109 = vmatmul.mubr.msk.f32.vlgmr.msra.gmra.mrb[58].mxu1 %vm37_vm0, %v15189_v35 }
 0x9dd   :  { %14817 = vmatpush3.bf16.msra.mxu1 %v16051_v49  ;;  %14122 = vmatprep.mubr.msk.f32.mxu1 %vm37_vm0, %v15190_v42 }
 0x9de   :  { %14823 = vmatprep.subr.bf16.mxu1 %v15961_v2 }
 0x9e0   :  { %14123 = vmatmul.mubr.msk.f32.vlgmr.msra.gmra.mrb[60].mxu1 %vm37_vm0, %v15191_v45 }
 0x9e1   :  { %14825 = vmatpush3.bf16.msra.mxu1 %v15961_v2  ;;  %14136 = vmatprep.mubr.msk.f32.mxu1 %vm37_vm0, %v15192_v46  ;;  %v15194_v2 = vld [vmem:[%s16754_s1 + $0x100] sm:$0xff] }
 0x9e2   :  { %14831 = vmatprep.subr.bf16.mxu1 %v16051_v49 }
 0x9e4   :  { %14137 = vmatmul.mubr.msk.f32.vlgmr.msra.gmra.mrb[62].mxu1 %vm37_vm0, %v15193_v48 }
 0x9e5   :  { %14833 = vmatpush3.bf16.msra.mxu1 %v16051_v49  ;;  %14150 = vmatprep.mubr.msk.f32.mxu1 %vm37_vm0, %v15194_v2  ;;  %v12639_v49 = vld [vmem:[%s16756_s2 + $0x2b0] sm:$0xff] }
 0x9e6   :  { %14839 = vmatprep.subr.bf16.mxu1 %v14838_v47  ;;  %v14818_v23 = vpack.c.bf16 %v12640_v22, %v12639_v49 }
 0x9e8   :  { %14151 = vmatmul.mubr.msk.f32.vlgmr.msra.gmra.mrb[64].mxu1 %vm37_vm0, %v15195_v21  ;;  %14819 = vmatprep.subr.bf16.mxu0 %v14818_v23 }
 0x9e9   :  { %14841 = vmatpush3.bf16.msra.mxu1 %v14838_v47  ;;  %14164 = vmatprep.mubr.msk.f32.mxu1 %vm37_vm0, %v7808_v52  ;;  %v12664_v47 = vld [vmem:[%s16756_s2 + $0x368] sm:$0xff] }
 0x9ec   :  { %14165 = vmatmul.mubr.msk.f32.vlgmr.msra.gmra.mrb[66].mxu1 %vm37_vm0, %v16402_v16  ;;  %v12645_v16 = vld [vmem:[%s16756_s2 + $0x330] sm:$0xff] }
 0x9ed   :  { %v14826_v8 = vpack.c.bf16 %v12646_v36, %v12645_v16 }
 0xaab   :  { %v14096_v25 = vpop.f32.mrb[56].mxu1 }
 0xaac   :  { %v14972_v26 = vadd.f32 %v14096_v25, %v12580_v24  ;;  %v9018_v27 = vpop.f32.mrb[57].mxu1 }
 0xaad   :  { %v14973_v18 = vadd.f32 %v12580_v24, %v9018_v27  ;;  %v12676_v24 = vld [vmem:[%s16756_s2 + $0x388] sm:$0xff] }
 0xaae   :  { %v9030_v58 = vmul.f32 0.5, %v14972_v26 }
 0xaaf   :  { %v14110_v52 = vpop.f32.mrb[58].mxu1  ;;  %v9029_v14 = vmul.f32 0.5, %v14973_v18 }
 0xab0   :  { %v9195_v41 = vpop.f32.mrb[59].mxu1  ;;  %15144 = vtanh.f32 %v9030_v58 }
 0xab1   :  { %14115 = vmatprep.mubr.msk.f32.mxu0 %vm37_vm0, %v9195_v41  ;;  %15146 = vtanh.f32 %v9029_v14 }
 0xab2   :  { %14116 = vmatmul.mubr.msk.f32.vlgmr.msra.gmra.mrb[58].mxu0 %vm37_vm0, %v14110_v52 }
 0xab3   :  { %14821 = vmatpush3.bf16.msra.mxu0 %v14818_v23  ;;  %v14124_v40 = vpop.f32.mrb[60].mxu1  ;;  %v12675_v23 = vld [vmem:[%s16756_s2 + $0x380] sm:$0xff] }
 0xab4   :  { %v9356_v15 = vpop.f32.mrb[61].mxu1  ;;  %14827 = vmatprep.subr.bf16.mxu0 %v14826_v8  ;;  %v14862_v16 = vpack.c.bf16 %v12676_v24, %v12675_v23 }
 0xab5   :  { %14129 = vmatprep.mubr.msk.f32.mxu0 %vm37_vm0, %v9356_v15 }
 0xab7   :  { %v14138_v29 = vpop.f32.mrb[62].mxu1 }
 0xab8   :  { %v9517_v30 = vpop.f32.mrb[63].mxu1 }
 0xaba   :  { %14130 = vmatmul.mubr.msk.f32.vlgmr.msra.gmra.mrb[58].mxu0 %vm37_vm0, %v14124_v40  ;;  %v15145_v34 = vpop.eup %15144 }
 0xabb   :  { %14829 = vmatpush3.bf16.msra.mxu0 %v14826_v8  ;;  %14143 = vmatprep.mubr.msk.f32.mxu0 %vm37_vm0, %v9517_v30  ;;  %v14152_v32 = vpop.f32.mrb[64].mxu1  ;;  %v15147_v35 = vpop.eup %15146  ;;  %v9034_v42 = vadd.f32 1.0, %v15145_v34 }
 0xabc   :  { %14835 = vmatprep.subr.bf16.mxu0 %v14834_v31  ;;  %v9678_v33 = vpop.f32.mrb[65].mxu1  ;;  %v9033_v43 = vadd.f32 1.0, %v15147_v35  ;;  %v12693_v35 = vld [vmem:[%s16756_s2 + $0x410] sm:$0xff] }
 0xabd   :  { %v16512_v44 = vmul.f32 0.5, %v9034_v42  ;;  %v12694_v42 = vld [vmem:[%s16756_s2 + $0x418] sm:$0xff] }
 0xabe   :  { %v16514_v45 = vmul.f32 0.5, %v9033_v43 }
 0xac0   :  { %v16518_v46 = vpack.c.bf16 %v16512_v44, %v16514_v45 }
 0xac2   :  { %14144 = vmatmul.mubr.msk.f32.vlgmr.msra.gmra.mrb[58].mxu0 %vm37_vm0, %v14138_v29  ;;  %v12688_v29 = vld [vmem:[%s16756_s2 + $0x408] sm:$0xff] }
 0xac3   :  { %14837 = vmatpush3.bf16.msra.mxu0 %v14834_v31  ;;  %14157 = vmatprep.mubr.msk.f32.mxu0 %vm37_vm0, %v9678_v33 }
 0xac4   :  { %14843 = vmatprep.subr.bf16.mxu0 %v16411_v59 }
 0xaca   :  { %14158 = vmatmul.mubr.msk.f32.vlgmr.msra.gmra.mrb[58].mxu0 %vm37_vm0, %v14152_v32  ;;  %v14878_v32 = vpack.c.bf16 %v12688_v29, %v12687_v19  ;;  %v12706_v19 = vld [vmem:[%s16757_s4 + $0xa] ss:$0 sm:$0xff] }
 0xacb   :  { %14845 = vmatpush3.bf16.msra.mxu0 %v16411_v59  ;;  %14171 = vmatprep.mubr.msk.f32.mxu0 %vm37_vm0, %v16058_v50  ;;  %v12663_v50 = vld [vmem:[%s16756_s2 + $0x360] sm:$0xff] }
 0xacc   :  { %14851 = vmatprep.subr.bf16.mxu0 %v16518_v46  ;;  %v14846_v48 = vpack.c.bf16 %v12664_v47, %v12663_v50 }
 0xace   :  { %14172 = vmatmul.mubr.msk.f32.vlgmr.msra.gmra.mrb[60].mxu0 %vm37_vm0, %v16066_v51  ;;  %v12669_v51 = vld [vmem:[%s16756_s2 + $0x370] sm:$0xff]  ;;  %14847 = vmatprep.subr.bf16.mxu1 %v14846_v48 }
 0xacf   :  { %14853 = vmatpush3.bf16.msra.mxu0 %v16518_v46  ;;  %14185 = vmatprep.mubr.msk.f32.mxu0 %vm37_vm0, %v16074_v56  ;;  %v12670_v56 = vld [vmem:[%s16756_s2 + $0x378] sm:$0xff] }
 0xad0   :  { %14849 = vmatpush3.bf16.msra.mxu1 %v14846_v48  ;;  %v12700_v48 = vld [vmem:[%s16756_s2 + $0x478] sm:$0xff] }
 0xad2   :  { %14186 = vmatmul.mubr.msk.f32.vlgmr.msra.gmra.mrb[62].mxu0 %vm37_vm0, %v16081_v57  ;;  %v14854_v57 = vpack.c.bf16 %v12670_v56, %v12669_v51  ;;  %v12699_v51 = vld [vmem:[%s16756_s2 + $0x470] sm:$0xff] }
 0xad3   :  { %14199 = vmatprep.mubr.msk.f32.mxu0 %vm37_vm0, %v16088_v20  ;;  %v12628_v20 = vld [vmem:[%s16757_s4 + $0x8] ss:$0 sm:$0xff] }
 0xad4   :  { %14855 = vmatprep.subr.bf16.mxu1 %v14854_v57 }
 0xb9d   :  { %v14159_v2 = vpop.f32.mrb[58].mxu0 }
 0xb9e   :  { %v14974_v21 = vadd.f32 %v14159_v2, %v12628_v20  ;;  %v9762_v49 = vpop.f32.mrb[59].mxu0 }
 0xb9f   :  { %v14975_v22 = vadd.f32 %v12628_v20, %v9762_v49  ;;  %v12730_v49 = vld [vmem:[%s16756_s2 + $0x3e8] sm:$0xff] }
 0xba0   :  { %v9774_v25 = vmul.f32 0.5, %v14974_v21  ;;  %v12729_v21 = vld [vmem:[%s16756_s2 + $0x3e0] sm:$0xff] }
 0xba1   :  { %v9773_v26 = vmul.f32 0.5, %v14975_v22  ;;  %v14173_v27 = vpop.f32.mrb[60].mxu0  ;;  %v14930_v24 = vpack.c.bf16 %v12730_v49, %v12729_v21 }
 0xba2   :  { %15148 = vtanh.f32 %v9774_v25  ;;  %v9939_v18 = vpop.f32.mrb[61].mxu0 }
 0xba3   :  { %15150 = vtanh.f32 %v9773_v26  ;;  %14178 = vmatprep.mubr.msk.f32.mxu1 %vm37_vm0, %v9939_v18 }
 0xba4   :  { %14179 = vmatmul.mubr.msk.f32.vlgmr.msra.gmra.mrb[66].mxu1 %vm37_vm0, %v14173_v27 }
 0xba5   :  { %14857 = vmatpush3.bf16.msra.mxu1 %v14854_v57  ;;  %v14187_v36 = vpop.f32.mrb[62].mxu0  ;;  %v14894_v57 = vpack.c.bf16 %v12700_v48, %v12699_v51 }
 0xba6   :  { %v10100_v52 = vpop.f32.mrb[63].mxu0  ;;  %14863 = vmatprep.subr.bf16.mxu1 %v14862_v16 }
 0xba7   :  { %14192 = vmatprep.mubr.msk.f32.mxu1 %vm37_vm0, %v10100_v52 }
 0xbac   :  { %v15149_v58 = vpop.eup %15148  ;;  %14193 = vmatmul.mubr.msk.f32.vlgmr.msra.gmra.mrb[66].mxu1 %vm37_vm0, %v14187_v36 }
 0xbad   :  { %v15151_v41 = vpop.eup %15150  ;;  %v9778_v8 = vadd.f32 1.0, %v15149_v58  ;;  %14865 = vmatpush3.bf16.msra.mxu1 %v14862_v16  ;;  %v12735_v58 = vld [vmem:[%s16756_s2 + $0x420] sm:$0xff] }
 0xbae   :  { %v9777_v14 = vadd.f32 1.0, %v15151_v41  ;;  %v12736_v41 = vld [vmem:[%s16756_s2 + $0x428] sm:$0xff] }
 0xbaf   :  { %v9780_v40 = vmul.f32 0.5, %v9778_v8 }
 0xbb0   :  { %v9779_v15 = vmul.f32 0.5, %v9777_v14 }
 0xbb2   :  { %v16559_v17 = vpack.c.bf16 %v9780_v40, %v9779_v15  ;;  %v14938_v40 = vpack.c.bf16 %v12736_v41, %v12735_v58 }
 0xbb4   :  { %14859 = vmatprep.subr.bf16.mxu0 %v16559_v17 }
 0xbb5   :  { %14861 = vmatpush3.bf16.msra.mxu0 %v16559_v17 }
 0xbb6   :  { %14867 = vmatprep.subr.bf16.mxu0 %v16411_v59 }
 0xbb8   :  { %14200 = vmatmul.mubr.msk.f32.vlgmr.msra.gmra.mrb[64].mxu0 %vm37_vm0, %v16131_v7  ;;  %v12703_v7 = vld [vmem:[%s16755_s3 + $0xa0] sm:$0xff] }
 0xbb9   :  { %14869 = vmatpush3.bf16.msra.mxu0 %v16411_v59  ;;  %14213 = vmatprep.mubr.msk.f32.mxu0 %vm37_vm0, %v16139_v53  ;;  %v12704_v53 = vld [vmem:[%s16755_s3 + $0xa8] sm:$0xff] }
 0xbba   :  { %14875 = vmatprep.subr.bf16.mxu0 %v16518_v46 }
 0xbbc   :  { %14214 = vmatmul.mubr.msk.f32.vlgmr.msra.gmra.mrb[66].mxu0 %vm37_vm0, %v16147_v54  ;;  %v14898_v54 = vpack.c.bf16 %v12704_v53, %v12703_v7  ;;  %v12741_v53 = vld [vmem:[%s16756_s2 + $0x430] sm:$0xff] }
 0xbbd   :  { %14877 = vmatpush3.bf16.msra.mxu0 %v16518_v46  ;;  %14227 = vmatprep.mubr.msk.f32.mxu0 %vm37_vm0, %v16155_v55  ;;  %v12681_v55 = vld [vmem:[%s16756_s2 + $0x3f0] sm:$0xff] }
 0xbbe   :  { %14883 = vmatprep.subr.bf16.mxu0 %v16559_v17 }
 0xbc0   :  { %14228 = vmatmul.mubr.msk.f32.vlgmr.msra.gmra.mrb[68].mxu0 %vm37_vm0, %v16169_v3  ;;  %v12682_v3 = vld [vmem:[%s16756_s2 + $0x3f8] sm:$0xff] }
 0xbc1   :  { %14885 = vmatpush3.bf16.msra.mxu0 %v16559_v17  ;;  %14241 = vmatprep.mubr.msk.f32.mxu0 %vm37_vm0, %v16177_v63  ;;  %v14870_v63 = vpack.c.bf16 %v12682_v3, %v12681_v55 }
 0xbc2   :  { %14891 = vmatprep.subr.bf16.mxu0 %v16518_v46 }
 0xbc3   :  { %14871 = vmatprep.subr.bf16.mxu1 %v14870_v63 }
 0xbc4   :  { %14242 = vmatmul.mubr.msk.f32.vlgmr.msra.gmra.mrb[70].mxu0 %vm37_vm0, %v16185_v5  ;;  %v12711_v5 = vld [vmem:[%s16756_s2 + $0x390] sm:$0xff] }
 0xbc5   :  { %14893 = vmatpush3.bf16.msra.mxu0 %v16518_v46  ;;  %14255 = vmatprep.mubr.msk.f32.mxu0 %vm37_vm0, %v16193_v12  ;;  %v12712_v12 = vld [vmem:[%s16756_s2 + $0x398] sm:$0xff] }
 0xbc6   :  { %14899 = vmatprep.subr.bf16.mxu0 %v14898_v54 }
 0xbc8   :  { %14256 = vmatmul.mubr.msk.f32.vlgmr.msra.gmra.mrb[72].mxu0 %vm37_vm0, %v16200_v13  ;;  %v14906_v13 = vpack.c.bf16 %v12712_v12, %v12711_v5  ;;  %v12747_v5 = vld [vmem:[%s16756_s2 + $0x440] sm:$0xff]  ;;  %v12748_v12 = vld [vmem:[%s16756_s2 + $0x448] sm:$0xff] }
 0xbc9   :  { %14901 = vmatpush3.bf16.msra.mxu0 %v14898_v54  ;;  %14269 = vmatprep.mubr.msk.f32.mxu0 %vm37_vm0, %v16514_v45  ;;  %v14886_v45 = vpack.c.bf16 %v12694_v42, %v12693_v35  ;;  %v12742_v54 = vld [vmem:[%s16756_s2 + $0x438] sm:$0xff] }
 0xbca   :  { %14907 = vmatprep.subr.bf16.mxu0 %v14906_v13  ;;  %v14946_v3 = vpack.c.bf16 %v12742_v54, %v12741_v53 }
 0xbcc   :  { %14270 = vmatmul.mubr.msk.f32.vlgmr.msra.gmra.mrb[74].mxu0 %vm37_vm0, %v16512_v44 }
 0xbcd   :  { %14909 = vmatpush3.bf16.msra.mxu0 %v14906_v13  ;;  %v14954_v13 = vpack.c.bf16 %v12748_v12, %v12747_v5 }
 0xc8b   :  { %v14201_v30 = vpop.f32.mrb[64].mxu0 }
 0xc8c   :  { %v10261_v31 = vpop.f32.mrb[65].mxu0 }
 0xc8d   :  { %14206 = vmatprep.mubr.msk.f32.mxu1 %vm37_vm0, %v10261_v31 }
 0xc8e   :  { %14207 = vmatmul.mubr.msk.f32.vlgmr.msra.gmra.mrb[66].mxu1 %vm37_vm0, %v14201_v30 }
 0xc8f   :  { %14873 = vmatpush3.bf16.msra.mxu1 %v14870_v63  ;;  %v14215_v33 = vpop.f32.mrb[66].mxu0 }
 0xc90   :  { %v10422_v34 = vpop.f32.mrb[67].mxu0  ;;  %14879 = vmatprep.subr.bf16.mxu1 %v14878_v32 }
 0xc91   :  { %14220 = vmatprep.mubr.msk.f32.mxu1 %vm37_vm0, %v10422_v34 }
 0xc93   :  { %v14229_v43 = vpop.f32.mrb[68].mxu0 }
 0xc94   :  { %v10583_v44 = vpop.f32.mrb[69].mxu0 }
 0xc96   :  { %14221 = vmatmul.mubr.msk.f32.vlgmr.msra.gmra.mrb[66].mxu1 %vm37_vm0, %v14215_v33 }
 0xc97   :  { %14881 = vmatpush3.bf16.msra.mxu1 %v14878_v32  ;;  %14234 = vmatprep.mubr.msk.f32.mxu1 %vm37_vm0, %v10583_v44  ;;  %v14243_v50 = vpop.f32.mrb[70].mxu0 }
 0xc98   :  { %14887 = vmatprep.subr.bf16.mxu1 %v14886_v45  ;;  %v10744_v47 = vpop.f32.mrb[71].mxu0 }
 0xc9b   :  { %v14257_v56 = vpop.f32.mrb[72].mxu0 }
 0xc9c   :  { %v10905_v20 = vpop.f32.mrb[73].mxu0 }
 0xc9e   :  { %14235 = vmatmul.mubr.msk.f32.vlgmr.msra.gmra.mrb[66].mxu1 %vm37_vm0, %v14229_v43 }
 0xc9f   :  { %14889 = vmatpush3.bf16.msra.mxu1 %v14886_v45  ;;  %14248 = vmatprep.mubr.msk.f32.mxu1 %vm37_vm0, %v10744_v47 }
 0xca0   :  { %14895 = vmatprep.subr.bf16.mxu1 %v14894_v57 }
 0xca6   :  { %14249 = vmatmul.mubr.msk.f32.vlgmr.msra.gmra.mrb[66].mxu1 %vm37_vm0, %v14243_v50 }
 0xca7   :  { %14897 = vmatpush3.bf16.msra.mxu1 %v14894_v57  ;;  %14262 = vmatprep.mubr.msk.f32.mxu1 %vm37_vm0, %v10905_v20 }
 0xca8   :  { %14903 = vmatprep.subr.bf16.mxu1 %v16411_v59 }
 0xcae   :  { %14263 = vmatmul.mubr.msk.f32.vlgmr.msra.gmra.mrb[66].mxu1 %vm37_vm0, %v14257_v56 }
 0xcaf   :  { %14905 = vmatpush3.bf16.msra.mxu1 %v16411_v59  ;;  %14276 = vmatprep.mubr.msk.f32.mxu1 %vm37_vm0, %v16253_v28  ;;  %v12717_v28 = vld [vmem:[%s16756_s2 + $0x3a0] sm:$0xff] }
 0xcb0   :  { %14911 = vmatprep.subr.bf16.mxu1 %v16518_v46 }
 0xcb2   :  { %14277 = vmatmul.mubr.msk.f32.vlgmr.msra.gmra.mrb[68].mxu1 %vm37_vm0, %v16261_v60  ;;  %v12718_v60 = vld [vmem:[%s16756_s2 + $0x3a8] sm:$0xff] }
 0xcb3   :  { %14913 = vmatpush3.bf16.msra.mxu1 %v16518_v46  ;;  %14290 = vmatprep.mubr.msk.f32.mxu1 %vm37_vm0, %v16269_v6  ;;  %v14914_v6 = vpack.c.bf16 %v12718_v60, %v12717_v28 }
 0xcb4   :  { %14919 = vmatprep.subr.bf16.mxu1 %v16559_v17 }
 0xcb5   :  { %14915 = vmatprep.subr.bf16.mxu0 %v14914_v6 }
 0xcb6   :  { %14291 = vmatmul.mubr.msk.f32.vlgmr.msra.gmra.mrb[70].mxu1 %vm37_vm0, %v16277_v61  ;;  %v12658_v61 = vld [vmem:[%s16757_s4 + $0x9] ss:$0 sm:$0xff] }
 0xcb7   :  { %14921 = vmatpush3.bf16.msra.mxu1 %v16559_v17  ;;  %14304 = vmatprep.mubr.msk.f32.mxu1 %vm37_vm0, %v16285_v62 }
 0xcb8   :  { %14927 = vmatprep.subr.bf16.mxu1 %v16411_v59 }
 0xcba   :  { %14305 = vmatmul.mubr.msk.f32.vlgmr.msra.gmra.mrb[72].mxu1 %vm37_vm0, %v16293_v0 }
 0xcbb   :  { %14929 = vmatpush3.bf16.msra.mxu1 %v16411_v59  ;;  %14318 = vmatprep.mubr.msk.f32.mxu1 %vm37_vm0, %v16301_v9 }
 0xcbc   :  { %14935 = vmatprep.subr.bf16.mxu1 %v16411_v59 }
 0xcbe   :  { %14319 = vmatmul.mubr.msk.f32.vlgmr.msra.gmra.mrb[74].mxu1 %vm37_vm0, %v16309_v1 }
 0xcbf   :  { %14937 = vmatpush3.bf16.msra.mxu1 %v16411_v59  ;;  %14332 = vmatprep.mubr.msk.f32.mxu1 %vm37_vm0, %v16317_v10  ;;  %v12723_v10 = vld [vmem:[%s16756_s2 + $0x3b0] sm:$0xff] }
 0xcc0   :  { %14943 = vmatprep.subr.bf16.mxu1 %v16518_v46 }
 0xcc2   :  { %14333 = vmatmul.mubr.msk.f32.vlgmr.msra.gmra.mrb[76].mxu1 %vm37_vm0, %v16331_v4  ;;  %v12724_v4 = vld [vmem:[%s16756_s2 + $0x3b8] sm:$0xff] }
 0xcc3   :  { %14945 = vmatpush3.bf16.msra.mxu1 %v16518_v46  ;;  %14346 = vmatprep.mubr.msk.f32.mxu1 %vm37_vm0, %v16339_v11  ;;  %v14922_v59 = vpack.c.bf16 %v12724_v4, %v12723_v10 }
 0xcc4   :  { %14951 = vmatprep.subr.bf16.mxu1 %v16559_v17 }
 0xcc6   :  { %14347 = vmatmul.mubr.msk.f32.vlgmr.msra.gmra.mrb[78].mxu1 %vm37_vm0, %v16347_v37 }
 0xcc7   :  { %14953 = vmatpush3.bf16.msra.mxu1 %v16559_v17  ;;  %14360 = vmatprep.mubr.msk.f32.mxu1 %vm37_vm0, %v16355_v38 }
 0xcca   :  { %14361 = vmatmul.mubr.msk.f32.vlgmr.msra.gmra.mrb[80].mxu1 %vm37_vm0, %v16362_v39 }
 0xd81   :  { %v14264_v62 = vpop.f32.mrb[66].mxu1 }
 0xd82   :  { %v14976_v0 = vadd.f32 %v14264_v62, %v12658_v61  ;;  %v10989_v9 = vpop.f32.mrb[67].mxu1 }
 0xd83   :  { %v14977_v1 = vadd.f32 %v12658_v61, %v10989_v9 }
 0xd84   :  { %v11001_v11 = vmul.f32 0.5, %v14976_v0 }
 0xd85   :  { %v11000_v37 = vmul.f32 0.5, %v14977_v1  ;;  %v14278_v38 = vpop.f32.mrb[68].mxu1 }
 0xd86   :  { %15152 = vtanh.f32 %v11001_v11  ;;  %v11166_v39 = vpop.f32.mrb[69].mxu1 }
 0xd87   :  { %15154 = vtanh.f32 %v11000_v37  ;;  %14283 = vmatprep.mubr.msk.f32.mxu0 %vm37_vm0, %v11166_v39 }
 0xd88   :  { %14284 = vmatmul.mubr.msk.f32.vlgmr.msra.gmra.mrb[74].mxu0 %vm37_vm0, %v14278_v38 }
 0xd89   :  { %14917 = vmatpush3.bf16.msra.mxu0 %v14914_v6  ;;  %v14292_v46 = vpop.f32.mrb[70].mxu1 }
 0xd8a   :  { %v11327_v2 = vpop.f32.mrb[71].mxu1  ;;  %14923 = vmatprep.subr.bf16.mxu0 %v14922_v59 }
 0xd8b   :  { %14297 = vmatprep.mubr.msk.f32.mxu0 %vm37_vm0, %v11327_v2 }
 0xd8d   :  { %v14306_v22 = vpop.f32.mrb[72].mxu1 }
 0xd8e   :  { %v11488_v23 = vpop.f32.mrb[73].mxu1 }
 0xd90   :  { %v15153_v25 = vpop.eup %15152  ;;  %14298 = vmatmul.mubr.msk.f32.vlgmr.msra.gmra.mrb[74].mxu0 %vm37_vm0, %v14292_v46 }
 0xd91   :  { %v15155_v26 = vpop.eup %15154  ;;  %v11005_v27 = vadd.f32 1.0, %v15153_v25  ;;  %14925 = vmatpush3.bf16.msra.mxu0 %v14922_v59  ;;  %14311 = vmatprep.mubr.msk.f32.mxu0 %vm37_vm0, %v11488_v23  ;;  %v14320_v18 = vpop.f32.mrb[74].mxu1 }
 0xd92   :  { %v11004_v16 = vadd.f32 1.0, %v15155_v26  ;;  %14931 = vmatprep.subr.bf16.mxu0 %v14930_v24  ;;  %v11649_v36 = vpop.f32.mrb[75].mxu1 }
 0xd93   :  { %v11007_v52 = vmul.f32 0.5, %v11005_v27 }
 0xd94   :  { %v11006_v8 = vmul.f32 0.5, %v11004_v16 }
 0xd95   :  { %12236 = vst.msk [vmem:[%s16758_s5 + $0x8] sm:$0xff] %vm37_vm0, %v11007_v52  ;;  %v14334_v14 = vpop.f32.mrb[76].mxu1 }
 0xd96   :  { %12235 = vst.msk [vmem:[%s16758_s5] sm:$0xff] %vm37_vm0, %v11006_v8  ;;  %v11810_v15 = vpop.f32.mrb[77].mxu1 }
 0xd98   :  { %14312 = vmatmul.mubr.msk.f32.vlgmr.msra.gmra.mrb[74].mxu0 %vm37_vm0, %v14306_v22 }
 0xd99   :  { %14933 = vmatpush3.bf16.msra.mxu0 %v14930_v24  ;;  %14325 = vmatprep.mubr.msk.f32.mxu0 %vm37_vm0, %v11649_v36  ;;  %v14348_v17 = vpop.f32.mrb[78].mxu1 }
 0xd9a   :  { %14939 = vmatprep.subr.bf16.mxu0 %v14938_v40  ;;  %v11971_v7 = vpop.f32.mrb[79].mxu1 }
 0xd9d   :  { %v14362_v55 = vpop.f32.mrb[80].mxu1 }
 0xd9e   :  { %v12132_v63 = vpop.f32.mrb[81].mxu1 }
 0xda0   :  { %14326 = vmatmul.mubr.msk.f32.vlgmr.msra.gmra.mrb[74].mxu0 %vm37_vm0, %v14320_v18 }
 0xda1   :  { %14941 = vmatpush3.bf16.msra.mxu0 %v14938_v40  ;;  %14339 = vmatprep.mubr.msk.f32.mxu0 %vm37_vm0, %v11810_v15 }
 0xda2   :  { %14947 = vmatprep.subr.bf16.mxu0 %v14946_v3 }
 0xda8   :  { %14340 = vmatmul.mubr.msk.f32.vlgmr.msra.gmra.mrb[74].mxu0 %vm37_vm0, %v14334_v14 }
 0xda9   :  { %14949 = vmatpush3.bf16.msra.mxu0 %v14946_v3  ;;  %14353 = vmatprep.mubr.msk.f32.mxu0 %vm37_vm0, %v11971_v7 }
 0xdaa   :  { %14955 = vmatprep.subr.bf16.mxu0 %v14954_v13 }
 0xdb0   :  { %14354 = vmatmul.mubr.msk.f32.vlgmr.msra.gmra.mrb[74].mxu0 %vm37_vm0, %v14348_v17 }
 0xdb1   :  { %14957 = vmatpush3.bf16.msra.mxu0 %v14954_v13  ;;  %14367 = vmatprep.mubr.msk.f32.mxu0 %vm37_vm0, %v12132_v63 }
 0xdb8   :  { %14368 = vmatmul.mubr.msk.f32.vlgmr.msra.gmra.mrb[74].mxu0 %vm37_vm0, %v14362_v55 }
 0xe8b   :  { %v14369_v29 = vpop.f32.mrb[74].mxu0 }
 0xe8c   :  { %v14978_v30 = vadd.f32 %v14369_v29, %v12706_v19  ;;  %v12216_v31 = vpop.f32.mrb[75].mxu0 }
 0xe8d   :  { %v14979_v32 = vadd.f32 %v12706_v19, %v12216_v31 }
 0xe8e   :  { %v12228_v33 = vmul.f32 0.5, %v14978_v30 }
 0xe8f   :  { %v12227_v34 = vmul.f32 0.5, %v14979_v32 }
 0xe90   :  { %15156 = vtanh.f32 %v12228_v33 }
 0xe91   :  { %15158 = vtanh.f32 %v12227_v34 }
 0xe9a   :  { %v15157_v35 = vpop.eup %15156 }
 0xe9b   :  { %v15159_v42 = vpop.eup %15158  ;;  %v12232_v43 = vadd.f32 1.0, %v15157_v35 }
 0xe9c   :  { %v12231_v44 = vadd.f32 1.0, %v15159_v42 }
 0xe9d   :  { %v12234_v45 = vmul.f32 0.5, %v12232_v43 }
 0xe9e   :  { %v12233_v50 = vmul.f32 0.5, %v12231_v44 }
 0xe9f   :  { %12752 = vst.msk [vmem:[%s16758_s5 + $0x18] sm:$0xff] %vm37_vm0, %v12234_v45 }
 0xea0   :  { %12751 = vst.msk [vmem:[%s16758_s5 + $0x10] sm:$0xff] %vm37_vm0, %v12233_v50 }

</bundles_post_ra>
